<compile_context>
chip_gen: v7x
topology: tpu7x:2x2x1
jax: 0.10.0
libtpu: 0.0.40
codegen_flags: <defaults>
</compile_context>

<pallas_src>
import jax
import jax.numpy as jnp
from jax.experimental import pallas as pl
from jax.experimental.pallas import tpu as pltpu

NUM_FEATURES = 32


def _round_up(x, m):
    return ((x + m - 1) // m) * m


def _num_tensorcores():
    """Best-effort TC-per-chip detection (v7x = 2, v5e/v6e = 1)."""
    try:
        kind = jax.devices()[0].device_kind.lower()
        return 2 if "v7" in kind else 1
    except Exception:
        return 1


def _update_kernel(x_ref, wbig_ref, w1b_ref, b1_ref, w2_ref, b2_ref, out_ref):
    """One (tn, 4F) row-tile.

    x_ref   : (tn, 4F)   lane-dense [s | v_x | v_y | v_z]
    wbig_ref: (4F, 7F)   fused weight -> cols [L_x|L_y|L_z | R_x|R_y|R_z | s@W1a]
    w1b_ref : (F, F)     rows of W1.T that multiply right_norm
    b1_ref  : (1, F)
    w2_ref  : (F, 3F)    W2.T
    b2_ref  : (1, 3F)
    out_ref : (tn, 4F)   [delta_s | dv_x | dv_y | dv_z]
    """
    F = out_ref.shape[-1] // 4

    # One K=128 MXU matmul yields all U/V projections plus the scalar half of
    # the first MLP layer (s @ W1a.T).
    proj = jnp.dot(x_ref[...], wbig_ref[...], preferred_element_type=jnp.float32)
    left = proj[:, 0 * F:3 * F]           # (tn, 3F) contiguous [L_x|L_y|L_z]
    right = proj[:, 3 * F:6 * F]          # (tn, 3F) contiguous [R_x|R_y|R_z]
    s_part = proj[:, 6 * F:7 * F]         # (tn, F)  = s @ W1a.T

    # ||right||_2 over the spatial axis: one wide multiply + two 32-lane adds.
    r2 = right * right
    right_norm = jnp.sqrt(r2[:, 0:F] + r2[:, F:2 * F] + r2[:, 2 * F:3 * F])

    # upd_right MLP (scalar partial already folded into the big matmul).
    h = s_part + jnp.dot(right_norm, w1b_ref[...],
                         preferred_element_type=jnp.float32) + b1_ref[...]
    h = h * jax.nn.sigmoid(h)             # SiLU
    feats = jnp.dot(h, w2_ref[...], preferred_element_type=jnp.float32) + b2_ref[...]
    a = feats[:, 0 * F:1 * F]
    b = feats[:, 1 * F:2 * F]
    c = feats[:, 2 * F:3 * F]

    # delta_s = <left, right>_spatial * b + c
    lr = left * right
    inner = lr[:, 0:F] + lr[:, F:2 * F] + lr[:, 2 * F:3 * F]
    delta_s = inner * b + c

    # delta_v = a * left, with `a` broadcast across the three spatial parts.
    a3 = jnp.concatenate([a, a, a], axis=-1)    # (tn, 3F)
    delta_v = a3 * left

    # Single unmasked lane-dense (tn, 128) store.
    out_ref[...] = jnp.concatenate([delta_s, delta_v], axis=-1).astype(out_ref.dtype)


def _build_fused_weight(U_w, V_w, W1):
    """(4F, 7F) weight. Rows: [s | v_x | v_y | v_z].
    Cols: [L_x | L_y | L_z | R_x | R_y | R_z | s_part]."""
    F = U_w.shape[0]
    Z = jnp.zeros((F, F), U_w.dtype)
    Ut, Vt = U_w.T, V_w.T
    W1a_t = W1.T[:F, :]                   # rows of W1.T that multiply `s`
    row_s = jnp.concatenate([Z, Z, Z, Z, Z, Z, W1a_t], axis=1)
    row_x = jnp.concatenate([Ut, Z, Z, Vt, Z, Z, Z], axis=1)
    row_y = jnp.concatenate([Z, Ut, Z, Z, Vt, Z, Z], axis=1)
    row_z = jnp.concatenate([Z, Z, Ut, Z, Z, Vt, Z], axis=1)
    return jnp.concatenate([row_s, row_x, row_y, row_z], axis=0)


def deepdft_update(scalar, vector, params, *, tile_n=1024):
    """scalar: (N, 1, F), vector: (N, 3, F) -> (delta_s (N,1,F), delta_v (N,3,F))."""
    N, _, F = scalar.shape
    U_w, V_w, W1, b1, W2, b2 = params

    # Single lane-dense input slab [s | v_x | v_y | v_z] -> (N, 4F) = (N, 128).
    x = jnp.concatenate([scalar.reshape(N, F), vector.reshape(N, 3 * F)], axis=-1)

    # Host-side (one-time, tiny) weight prep.
    W_big = _build_fused_weight(U_w, V_w, W1)        # (4F, 7F)
    W1b_t = W1.T[F:, :]                              # (F, F)  multiplies right_norm
    W2t = W2.T                                       # (F, 3F)
    b1r = b1.reshape(1, F)
    b2r = b2.reshape(1, 3 * F)

    # Tile selection: single-tile fast path for small N, big tiles otherwise.
    if N <= tile_n:
        tn = max(8, _round_up(N, 8))
        num_tiles = 1
    else:
        tn = tile_n
        num_tiles = pl.cdiv(N, tn)
        # Even tile count only on dual-TC chips (v7x) so the parallel axis can
        # split across both cores; costs at most one padded tile.
        if _num_tensorcores() > 1 and num_tiles % 2 == 1:
            num_tiles += 1
    Np = num_tiles * tn
    if Np != N:
        x = jnp.pad(x, ((0, Np - N), (0, 0)))   # zero rows -> no NaNs, sliced off

    fused = pl.pallas_call(
        _update_kernel,
        out_shape=jax.ShapeDtypeStruct((Np, 4 * F), scalar.dtype),
        grid_spec=pltpu.PrefetchScalarGridSpec(
            num_scalar_prefetch=0,
            grid=(num_tiles,),
            in_specs=[
                pl.BlockSpec((tn, 4 * F), lambda i: (i, 0)),      # input slab
                pl.BlockSpec((4 * F, 7 * F), lambda i: (0, 0)),   # fused weight
                pl.BlockSpec((F, F), lambda i: (0, 0)),           # W1b.T
                pl.BlockSpec((1, F), lambda i: (0, 0)),           # b1
                pl.BlockSpec((F, 3 * F), lambda i: (0, 0)),       # W2.T
                pl.BlockSpec((1, 3 * F), lambda i: (0, 0)),       # b2
            ],
            out_specs=pl.BlockSpec((tn, 4 * F), lambda i: (i, 0)),
        ),
        compiler_params=pltpu.CompilerParams(dimension_semantics=("parallel",)),
    )(x, W_big, W1b_t, b1r, W2t, b2r)

    fused = fused[:N]
    delta_s = fused[:, :F][:, None, :]               # (N, 1, F)  cheap slice
    delta_v = fused[:, F:].reshape(N, 3, F)          # (N, 3, F)  contiguous reshape
    return delta_s, delta_v


def deepdft_update_ref(scalar, vector, params):
    """Pure-JAX reference mirroring the PyTorch forward exactly."""
    U_w, V_w, W1, b1, W2, b2 = params
    F = scalar.shape[-1]
    left = vector @ U_w.T
    right = vector @ V_w.T
    right_norm = jnp.linalg.norm(right, axis=-2, keepdims=True)
    right_concat = jnp.concatenate((scalar, right_norm), axis=-1)
    h = right_concat @ W1.T + b1
    h = jax.nn.silu(h)
    feats = h @ W2.T + b2
    a, b, c = feats[..., :F], feats[..., F:2 * F], feats[..., 2 * F:]
    delta_v = a * left
    inner = jnp.sum(left * right, axis=-2, keepdims=True)
    delta_s = inner * b + c
    return delta_s, delta_v


def make_params(key, F):
    """Deterministic synthetic parameters (same shapes as the torch module)."""
    ks = jax.random.split(key, 6)
    U_w = jax.random.normal(ks[0], (F, F), jnp.float32) * 0.1        # U: Linear(F,F,bias=False)
    V_w = jax.random.normal(ks[1], (F, F), jnp.float32) * 0.1        # V: Linear(F,F,bias=False)
    W1 = jax.random.normal(ks[2], (F, 2 * F), jnp.float32) * 0.1     # Linear(2F, F)
    b1 = jax.random.normal(ks[3], (F,), jnp.float32) * 0.1
    W2 = jax.random.normal(ks[4], (3 * F, F), jnp.float32) * 0.1     # Linear(F, 3F)
    b2 = jax.random.normal(ks[5], (3 * F,), jnp.float32) * 0.1
    return (U_w, V_w, W1, b1, W2, b2)


if __name__ == "__main__":
    F = NUM_FEATURES
    N = 300  # number of nodes / atoms

    key = jax.random.PRNGKey(0)
    k_s, k_v, k_p = jax.random.split(key, 3)
    scalar = jax.random.normal(k_s, (N, 1, F), jnp.float32)
    vector = jax.random.normal(k_v, (N, 3, F), jnp.float32)
    params = make_params(k_p, F)

    ref_s, ref_v = deepdft_update_ref(scalar, vector, params)

    # Default config: single-tile fast path (tn = 304, grid = (1,)).
    delta_s, delta_v = deepdft_update(scalar, vector, params)
    delta_s = jax.block_until_ready(delta_s)
    delta_v = jax.block_until_ready(delta_v)
    assert delta_s.shape == (N, 1, F) and delta_v.shape == (N, 3, F)
    assert jnp.allclose(delta_s, ref_s, atol=1e-4, rtol=1e-4)
    assert jnp.allclose(delta_v, ref_v, atol=1e-4, rtol=1e-4)

    # Small-tile config exercises the multi-tile grid + padding path.
    delta_s2, delta_v2 = deepdft_update(scalar, vector, params, tile_n=128)
    delta_s2 = jax.block_until_ready(delta_s2)
    delta_v2 = jax.block_until_ready(delta_v2)
    assert jnp.allclose(delta_s2, ref_s, atol=1e-4, rtol=1e-4)
    assert jnp.allclose(delta_v2, ref_v, atol=1e-4, rtol=1e-4)

    print("KERNEL_OK")
</pallas_src>

<mosaic_0001>
module attributes {stable_mosaic.version = 11 : i64} {
  func.func @_update_kernel(%arg0: i32, %arg1: memref<304x128xf32, #tpu.memory_space<vmem>>, %arg2: memref<128x224xf32, #tpu.memory_space<vmem>>, %arg3: memref<32x32xf32, #tpu.memory_space<vmem>>, %arg4: memref<1x32xf32, #tpu.memory_space<vmem>>, %arg5: memref<32x96xf32, #tpu.memory_space<vmem>>, %arg6: memref<1x96xf32, #tpu.memory_space<vmem>>, %arg7: memref<304x128xf32, #tpu.memory_space<vmem>>) attributes {dimension_semantics = [#tpu.dimension_semantics<parallel>], iteration_bounds = array<i64: 1>, scalar_prefetch = 0 : i64, scratch_operands = 0 : i64, tpu.core_type = #tpu.core_type<tc>, window_params = [{transform_indices = @transform_0, window_bounds = array<i64: 304, 128>}, {pipeline_mode = #tpu.pipeline_mode<synchronous>, transform_indices = @transform_1, window_bounds = array<i64: 128, 224>}, {pipeline_mode = #tpu.pipeline_mode<synchronous>, transform_indices = @transform_2, window_bounds = array<i64: 32, 32>}, {pipeline_mode = #tpu.pipeline_mode<synchronous>, transform_indices = @transform_3, window_bounds = array<i64: 1, 32>}, {pipeline_mode = #tpu.pipeline_mode<synchronous>, transform_indices = @transform_4, window_bounds = array<i64: 32, 96>}, {pipeline_mode = #tpu.pipeline_mode<synchronous>, transform_indices = @transform_5, window_bounds = array<i64: 1, 96>}, {transform_indices = @transform_6, window_bounds = array<i64: 304, 128>}]} {
    %c0 = arith.constant 0 : index
    %c0_0 = arith.constant 0 : index
    %0 = vector.load %arg1[%c0, %c0_0] : memref<304x128xf32, #tpu.memory_space<vmem>>, vector<304x128xf32>
    %c0_1 = arith.constant 0 : index
    %c0_2 = arith.constant 0 : index
    %1 = vector.load %arg2[%c0_1, %c0_2] : memref<128x224xf32, #tpu.memory_space<vmem>>, vector<128x224xf32>
    %cst = arith.constant dense<0.000000e+00> : vector<304x224xf32>
    %2 = tpu.matmul %0, %1, %cst {dimension_numbers = #tpu.dot_dimension_numbers<[1], [0], [0], [1], [0, 0, 1, 1], [], []>} : vector<304x128xf32>, vector<128x224xf32>, vector<304x224xf32> -> vector<304x224xf32>
    %3 = vector.extract_strided_slice %2 {offsets = [0, 0], sizes = [304, 96], strides = [1, 1]} : vector<304x224xf32> to vector<304x96xf32>
    %4 = vector.extract_strided_slice %2 {offsets = [0, 96], sizes = [304, 96], strides = [1, 1]} : vector<304x224xf32> to vector<304x96xf32>
    %5 = vector.extract_strided_slice %2 {offsets = [0, 192], sizes = [304, 32], strides = [1, 1]} : vector<304x224xf32> to vector<304x32xf32>
    %6 = arith.mulf %4, %4 : vector<304x96xf32>
    %7 = vector.extract_strided_slice %6 {offsets = [0, 0], sizes = [304, 32], strides = [1, 1]} : vector<304x96xf32> to vector<304x32xf32>
    %8 = vector.extract_strided_slice %6 {offsets = [0, 32], sizes = [304, 32], strides = [1, 1]} : vector<304x96xf32> to vector<304x32xf32>
    %9 = arith.addf %7, %8 : vector<304x32xf32>
    %10 = vector.extract_strided_slice %6 {offsets = [0, 64], sizes = [304, 32], strides = [1, 1]} : vector<304x96xf32> to vector<304x32xf32>
    %11 = arith.addf %9, %10 : vector<304x32xf32>
    %12 = math.sqrt %11 : vector<304x32xf32>
    %c0_3 = arith.constant 0 : index
    %c0_4 = arith.constant 0 : index
    %13 = vector.load %arg3[%c0_3, %c0_4] : memref<32x32xf32, #tpu.memory_space<vmem>>, vector<32x32xf32>
    %cst_5 = arith.constant dense<0.000000e+00> : vector<304x32xf32>
    %14 = tpu.matmul %12, %13, %cst_5 {dimension_numbers = #tpu.dot_dimension_numbers<[1], [0], [0], [1], [0, 0, 1, 1], [], []>} : vector<304x32xf32>, vector<32x32xf32>, vector<304x32xf32> -> vector<304x32xf32>
    %15 = arith.addf %5, %14 : vector<304x32xf32>
    %c0_6 = arith.constant 0 : index
    %c0_7 = arith.constant 0 : index
    %16 = vector.load %arg4[%c0_6, %c0_7] : memref<1x32xf32, #tpu.memory_space<vmem>>, vector<1x32xf32>
    %17 = vector.broadcast %16 : vector<1x32xf32> to vector<304x32xf32>
    %18 = arith.addf %15, %17 : vector<304x32xf32>
    %19 = arith.negf %18 : vector<304x32xf32>
    %20 = math.exp %19 : vector<304x32xf32>
    %cst_8 = arith.constant 1.000000e+00 : f32
    %21 = vector.broadcast %cst_8 : f32 to vector<304x32xf32>
    %22 = arith.addf %21, %20 : vector<304x32xf32>
    %23 = arith.divf %21, %22 : vector<304x32xf32>
    %24 = arith.mulf %18, %23 : vector<304x32xf32>
    %c0_9 = arith.constant 0 : index
    %c0_10 = arith.constant 0 : index
    %25 = vector.load %arg5[%c0_9, %c0_10] : memref<32x96xf32, #tpu.memory_space<vmem>>, vector<32x96xf32>
    %cst_11 = arith.constant dense<0.000000e+00> : vector<304x96xf32>
    %26 = tpu.matmul %24, %25, %cst_11 {dimension_numbers = #tpu.dot_dimension_numbers<[1], [0], [0], [1], [0, 0, 1, 1], [], []>} : vector<304x32xf32>, vector<32x96xf32>, vector<304x96xf32> -> vector<304x96xf32>
    %c0_12 = arith.constant 0 : index
    %c0_13 = arith.constant 0 : index
    %27 = vector.load %arg6[%c0_12, %c0_13] : memref<1x96xf32, #tpu.memory_space<vmem>>, vector<1x96xf32>
    %28 = vector.broadcast %27 : vector<1x96xf32> to vector<304x96xf32>
    %29 = arith.addf %26, %28 : vector<304x96xf32>
    %30 = vector.extract_strided_slice %29 {offsets = [0, 0], sizes = [304, 32], strides = [1, 1]} : vector<304x96xf32> to vector<304x32xf32>
    %31 = vector.extract_strided_slice %29 {offsets = [0, 32], sizes = [304, 32], strides = [1, 1]} : vector<304x96xf32> to vector<304x32xf32>
    %32 = vector.extract_strided_slice %29 {offsets = [0, 64], sizes = [304, 32], strides = [1, 1]} : vector<304x96xf32> to vector<304x32xf32>
    %33 = arith.mulf %3, %4 : vector<304x96xf32>
    %34 = vector.extract_strided_slice %33 {offsets = [0, 0], sizes = [304, 32], strides = [1, 1]} : vector<304x96xf32> to vector<304x32xf32>
    %35 = vector.extract_strided_slice %33 {offsets = [0, 32], sizes = [304, 32], strides = [1, 1]} : vector<304x96xf32> to vector<304x32xf32>
    %36 = arith.addf %34, %35 : vector<304x32xf32>
    %37 = vector.extract_strided_slice %33 {offsets = [0, 64], sizes = [304, 32], strides = [1, 1]} : vector<304x96xf32> to vector<304x32xf32>
    %38 = arith.addf %36, %37 : vector<304x32xf32>
    %39 = arith.mulf %38, %31 : vector<304x32xf32>
    %40 = arith.addf %39, %32 : vector<304x32xf32>
    %41 = tpu.concatenate %30, %30, %30 in 1 : vector<304x32xf32>, vector<304x32xf32>, vector<304x32xf32> -> vector<304x96xf32>
    %42 = arith.mulf %41, %3 : vector<304x96xf32>
    %43 = tpu.concatenate %40, %42 in 1 : vector<304x32xf32>, vector<304x96xf32> -> vector<304x128xf32>
    %c0_14 = arith.constant 0 : index
    %c0_15 = arith.constant 0 : index
    %44 = vector.load %arg7[%c0_14, %c0_15] : memref<304x128xf32, #tpu.memory_space<vmem>>, vector<304x128xf32>
    tpu.vector_store %arg7[%c0_14, %c0_15], %43 {strides = array<i32>} : memref<304x128xf32, #tpu.memory_space<vmem>>, vector<304x128xf32>,
    return
  }
  func.func @transform_0(%arg0: i32) -> (i32, i32) {
    %c0_i32 = arith.constant 0 : i32
    %c0_i32_0 = arith.constant 0 : i32
    return %arg0, %c0_i32 : i32, i32
  }
  func.func @transform_1(%arg0: i32) -> (i32, i32) {
    %c0_i32 = arith.constant 0 : i32
    %c0_i32_0 = arith.constant 0 : i32
    %c0_i32_1 = arith.constant 0 : i32
    return %c0_i32, %c0_i32_0 : i32, i32
  }
  func.func @transform_2(%arg0: i32) -> (i32, i32) {
    %c0_i32 = arith.constant 0 : i32
    %c0_i32_0 = arith.constant 0 : i32
    %c0_i32_1 = arith.constant 0 : i32
    return %c0_i32, %c0_i32_0 : i32, i32
  }
  func.func @transform_3(%arg0: i32) -> (i32, i32) {
    %c0_i32 = arith.constant 0 : i32
    %c0_i32_0 = arith.constant 0 : i32
    %c0_i32_1 = arith.constant 0 : i32
    return %c0_i32, %c0_i32_0 : i32, i32
  }
  func.func @transform_4(%arg0: i32) -> (i32, i32) {
    %c0_i32 = arith.constant 0 : i32
    %c0_i32_0 = arith.constant 0 : i32
    %c0_i32_1 = arith.constant 0 : i32
    return %c0_i32, %c0_i32_0 : i32, i32
  }
  func.func @transform_5(%arg0: i32) -> (i32, i32) {
    %c0_i32 = arith.constant 0 : i32
    %c0_i32_0 = arith.constant 0 : i32
    %c0_i32_1 = arith.constant 0 : i32
    return %c0_i32, %c0_i32_0 : i32, i32
  }
  func.func @transform_6(%arg0: i32) -> (i32, i32) {
    %c0_i32 = arith.constant 0 : i32
    %c0_i32_0 = arith.constant 0 : i32
    return %arg0, %c0_i32 : i32, i32
  }
}

</mosaic_0001>

<bundles_post_ra>
// kernel: tpu_custom_call.1
= control target key start
LH: loop header
LB: loop body
LE: loop exit
PB: predicated region body
PF: predicated region fallthrough
CT: control target
= control target key end

     0   :  { %v4616_v7 = vmov 0.0   ;;  %s7641_s0 = inlined_call_operand.vmem [shape: f32[304,128], index: 0, kind: input, shape index: {}]   ;;  %s7642_s1 = inlined_call_operand.vmem [shape: f32[128,224], index: 1, kind: input, shape index: {}]   ;;  %s7643_s2 = inlined_call_operand.vmem [shape: f32[32,32], index: 2, kind: input, shape index: {}]   ;;  %s7644_s3 = inlined_call_operand.vmem [shape: f32[1,32], index: 3, kind: input, shape index: {}]   ;;  %s7645_s4 = inlined_call_operand.vmem [shape: f32[32,96], index: 4, kind: input, shape index: {}]   ;;  %s7646_s5 = inlined_call_operand.vmem [shape: f32[1,96], index: 5, kind: input, shape index: {}]   ;;  %s7647_s6 = inlined_call_operand.hbm [shape: f32[304,128], index: 6, kind: output, shape index: {}]  }
   0x1   :  { %v63_v0 = vld [vmem:[%s7642_s1 + $0x8] sm:$0xff]  ;;  %v65_v1 = vld [vmem:[%s7642_s1 + $0x18] sm:$0xff]  ;;  %v62_v2 = vld [vmem:[%s7642_s1] sm:$0xff]  ;;  %158 = vmatprep.mubr.f32.mxu0 %v4616_v7 }
   0x2   :  { %v4309_v3 = vpack.c.bf16 %v65_v1, %v63_v0  ;;  %v64_v4 = vld [vmem:[%s7642_s1 + $0x10] sm:$0xff]  ;;  %v67_v5 = vld [vmem:[%s7642_s1 + $0x28] sm:$0xff]  ;;  %v69_v6 = vld [vmem:[%s7642_s1 + $0x38] sm:$0xff] }
   0x3   :  { %v4311_v8 = vpack.c.bf16 %v64_v4, %v62_v2  ;;  %v4313_v9 = vpack.c.bf16 %v69_v6, %v67_v5  ;;  %v66_v10 = vld [vmem:[%s7642_s1 + $0x20] sm:$0xff]  ;;  %v68_v11 = vld [vmem:[%s7642_s1 + $0x30] sm:$0xff]  ;;  %v71_v12 = vld [vmem:[%s7642_s1 + $0x48] sm:$0xff] }
   0x4   :  { %4310 = vmatprep.subr.bf16.mxu0 %v4309_v3  ;;  %v73_v13 = vld [vmem:[%s7642_s1 + $0x58] sm:$0xff]  ;;  %v4315_v14 = vpack.c.bf16 %v68_v11, %v66_v10  ;;  %v70_v16 = vld [vmem:[%s7642_s1 + $0x40] sm:$0xff]  ;;  %v72_v17 = vld [vmem:[%s7642_s1 + $0x50] sm:$0xff] }
   0x5   :  { %4312 = vmatpush1.bf16.msra.mxu0 %v4311_v8  ;;  %v4317_v15 = vpack.c.bf16 %v73_v13, %v71_v12  ;;  %v75_v18 = vld [vmem:[%s7642_s1 + $0x68] sm:$0xff]  ;;  %v77_v19 = vld [vmem:[%s7642_s1 + $0x78] sm:$0xff]  ;;  %v4319_v20 = vpack.c.bf16 %v72_v17, %v70_v16  ;;  %v74_v22 = vld [vmem:[%s7642_s1 + $0x60] sm:$0xff] }
   0x6   :  { %4314 = vmatprep.subr.bf16.mxu0 %v4313_v9  ;;  %v4321_v21 = vpack.c.bf16 %v77_v19, %v75_v18  ;;  %v76_v23 = vld [vmem:[%s7642_s1 + $0x70] sm:$0xff]  ;;  %v79_v24 = vld [vmem:[%s7642_s1 + $0x88] sm:$0xff]  ;;  %v81_v25 = vld [vmem:[%s7642_s1 + $0x98] sm:$0xff] }
   0x7   :  { %v4323_v26 = vpack.c.bf16 %v76_v23, %v74_v22  ;;  %v4325_v27 = vpack.c.bf16 %v81_v25, %v79_v24  ;;  %v78_v28 = vld [vmem:[%s7642_s1 + $0x80] sm:$0xff]  ;;  %v80_v29 = vld [vmem:[%s7642_s1 + $0x90] sm:$0xff]  ;;  %v83_v30 = vld [vmem:[%s7642_s1 + $0xa8] sm:$0xff] }
   0x8   :  { %v85_v31 = vld [vmem:[%s7642_s1 + $0xb8] sm:$0xff]  ;;  %v4327_v32 = vpack.c.bf16 %v80_v29, %v78_v28  ;;  %v82_v34 = vld [vmem:[%s7642_s1 + $0xa0] sm:$0xff]  ;;  %v84_v35 = vld [vmem:[%s7642_s1 + $0xb0] sm:$0xff] }
   0x9   :  { %4316 = vmatpush1.bf16.msra.mxu0 %v4315_v14  ;;  %v4329_v33 = vpack.c.bf16 %v85_v31, %v83_v30  ;;  %v87_v36 = vld [vmem:[%s7642_s1 + $0xc8] sm:$0xff]  ;;  %v89_v37 = vld [vmem:[%s7642_s1 + $0xd8] sm:$0xff]  ;;  %v4331_v38 = vpack.c.bf16 %v84_v35, %v82_v34 }
   0xa   :  { %4318 = vmatprep.subr.bf16.mxu0 %v4317_v15 }
   0xd   :  { %4320 = vmatpush1.bf16.msra.mxu0 %v4319_v20 }
   0xe   :  { %4322 = vmatprep.subr.bf16.mxu0 %v4321_v21 }
  0x11   :  { %4324 = vmatpush1.bf16.msra.mxu0 %v4323_v26 }
  0x12   :  { %4326 = vmatprep.subr.bf16.mxu0 %v4325_v27 }
  0x15   :  { %4328 = vmatpush1.bf16.msra.mxu0 %v4327_v32 }
  0x16   :  { %11 = vsyncpa [#allocation3], 0  ;;  %4330 = vmatprep.subr.bf16.mxu0 %v4329_v33  ;;  %v4333_v39 = vpack.c.bf16 %v89_v37, %v87_v36  ;;  %v86_v40 = vld [vmem:[%s7642_s1 + $0xc0] sm:$0xff]  ;;  %v88_v41 = vld [vmem:[%s7642_s1 + $0xd0] sm:$0xff]  ;;  %s4617_s28 = smov 64   ;;  %s4618_s16 = smov 32  }
  0x17   :  { %v91_v42 = vld [vmem:[%s7642_s1 + $0xe8] sm:$0xff]  ;;  %v93_v43 = vld [vmem:[%s7642_s1 + $0xf8] sm:$0xff]  ;;  %v4335_v44 = vpack.c.bf16 %v88_v41, %v86_v40  ;;  %v90_v46 = vld [vmem:[%s7642_s1 + $0xe0] sm:$0xff] }
  0x18   :  { %v4337_v45 = vpack.c.bf16 %v93_v43, %v91_v42  ;;  %v92_v47 = vld [vmem:[%s7642_s1 + $0xf0] sm:$0xff]  ;;  %v24_v49 = vld [vmem:[%s7641_s0] sm:$0xff]  ;;  %v25_v50 = vld [vmem:[%s7641_s0 + $0x8] sm:$0xff] }
  0x19   :  { %4332 = vmatpush1.bf16.msra.mxu0 %v4331_v38  ;;  %v4339_v48 = vpack.c.bf16 %v92_v47, %v90_v46  ;;  %v26_v51 = vld [vmem:[%s7641_s0 + $0x10] sm:$0xff]  ;;  %v27_v52 = vld [vmem:[%s7641_s0 + $0x18] sm:$0xff]  ;;  %v28_v53 = vld [vmem:[%s7641_s0 + $0x20] sm:$0xff] }
  0x1a   :  { %4334 = vmatprep.subr.bf16.mxu0 %v4333_v39  ;;  %v29_v54 = vld [vmem:[%s7641_s0 + $0x28] sm:$0xff]  ;;  %v4017_v55 = vld [vmem:[%s7644_s3] ss:$0 sm:$0xff]  ;;  %v30_v56 = vld [vmem:[%s7641_s0 + $0x30] sm:$0xff] }
  0x1b   :  { %1717 = vrot.lane.b32.xlu0 %v4017_v55, %s4617_s28  ;;  %v31_v57 = vld [vmem:[%s7641_s0 + $0x38] sm:$0xff]  ;;  %v32_v58 = vld [vmem:[%s7641_s0 + $0x40] sm:$0xff]  ;;  %v33_v59 = vld [vmem:[%s7641_s0 + $0x48] sm:$0xff] }
  0x1c   :  { %v34_v60 = vld [vmem:[%s7641_s0 + $0x50] sm:$0xff]  ;;  %v35_v61 = vld [vmem:[%s7641_s0 + $0x58] sm:$0xff]  ;;  %v36_v62 = vld [vmem:[%s7641_s0 + $0x60] sm:$0xff] }
  0x1d   :  { %4336 = vmatpush1.bf16.msra.mxu0 %v4335_v44  ;;  %v37_v63 = vld [vmem:[%s7641_s0 + $0x68] sm:$0xff]  ;;  %v38_v0 = vld [vmem:[%s7641_s0 + $0x70] sm:$0xff]  ;;  %v39_v1 = vld [vmem:[%s7641_s0 + $0x78] sm:$0xff] }
  0x1e   :  { %4338 = vmatprep.subr.bf16.mxu0 %v4337_v45  ;;  %v40_v2 = vld [vmem:[%s7641_s0 + $0x80] sm:$0xff]  ;;  %v41_v3 = vld [vmem:[%s7641_s0 + $0x88] sm:$0xff]  ;;  %v42_v4 = vld [vmem:[%s7641_s0 + $0x90] sm:$0xff] }
  0x1f   :  { %v43_v5 = vld [vmem:[%s7641_s0 + $0x98] sm:$0xff]  ;;  %v44_v6 = vld [vmem:[%s7641_s0 + $0xa0] sm:$0xff]  ;;  %v45_v8 = vld [vmem:[%s7641_s0 + $0xa8] sm:$0xff] }
  0x20   :  { %v46_v9 = vld [vmem:[%s7641_s0 + $0xb0] sm:$0xff]  ;;  %v47_v10 = vld [vmem:[%s7641_s0 + $0xb8] sm:$0xff]  ;;  %v48_v11 = vld [vmem:[%s7641_s0 + $0xc0] sm:$0xff] }
  0x21   :  { %4340 = vmatpush1.bf16.msra.mxu0 %v4339_v48  ;;  %v49_v12 = vld [vmem:[%s7641_s0 + $0xc8] sm:$0xff]  ;;  %v50_v13 = vld [vmem:[%s7641_s0 + $0xd0] sm:$0xff]  ;;  %v51_v14 = vld [vmem:[%s7641_s0 + $0xd8] sm:$0xff] }
  0x22   :  { %v52_v15 = vld [vmem:[%s7641_s0 + $0xe0] sm:$0xff]  ;;  %v53_v16 = vld [vmem:[%s7641_s0 + $0xe8] sm:$0xff]  ;;  %v54_v17 = vld [vmem:[%s7641_s0 + $0xf0] sm:$0xff] }
  0x23   :  { %v55_v18 = vld [vmem:[%s7641_s0 + $0xf8] sm:$0xff]  ;;  %v56_v19 = vld [vmem:[%s7641_s0 + $0x100] sm:$0xff]  ;;  %v57_v20 = vld [vmem:[%s7641_s0 + $0x108] sm:$0xff] }
  0x24   :  { %159 = vmatmul.mubr.f32.vlgmr.msra.gmra.mrb[0].mxu0 %v24_v49  ;;  %v58_v21 = vld [vmem:[%s7641_s0 + $0x110] sm:$0xff]  ;;  %v59_v22 = vld [vmem:[%s7641_s0 + $0x118] sm:$0xff]  ;;  %v60_v23 = vld [vmem:[%s7641_s0 + $0x120] sm:$0xff] }
  0x25   :  { %164 = vmatprep.mubr.f32.mxu0 %v4616_v7  ;;  %v61_v24 = vld [vmem:[%s7641_s0 + $0x128] sm:$0xff]  ;;  %s4619_s0 = smov 96  }
  0x28   :  { %165 = vmatmul.mubr.f32.gmra.mrb[2].mxu0 %v25_v50 }
  0x29   :  { %170 = vmatprep.mubr.f32.mxu0 %v4616_v7 }
  0x2c   :  { %171 = vmatmul.mubr.f32.gmra.mrb[4].mxu0 %v26_v51 }
  0x2d   :  { %176 = vmatprep.mubr.f32.mxu0 %v4616_v7 }
  0x30   :  { %177 = vmatmul.mubr.f32.gmra.mrb[6].mxu0 %v27_v52 }
  0x31   :  { %182 = vmatprep.mubr.f32.mxu0 %v4616_v7 }
  0x34   :  { %183 = vmatmul.mubr.f32.gmra.mrb[8].mxu0 %v28_v53 }
  0x35   :  { %188 = vmatprep.mubr.f32.mxu0 %v4616_v7 }
  0x38   :  { %189 = vmatmul.mubr.f32.gmra.mrb[10].mxu0 %v29_v54 }
  0x39   :  { %194 = vmatprep.mubr.f32.mxu0 %v4616_v7 }
  0x3c   :  { %195 = vmatmul.mubr.f32.gmra.mrb[12].mxu0 %v30_v56 }
  0x3d   :  { %200 = vmatprep.mubr.f32.mxu0 %v4616_v7 }
  0x40   :  { %201 = vmatmul.mubr.f32.gmra.mrb[14].mxu0 %v31_v57 }
  0x41   :  { %206 = vmatprep.mubr.f32.mxu0 %v4616_v7 }
  0x44   :  { %207 = vmatmul.mubr.f32.gmra.mrb[16].mxu0 %v32_v58 }
  0x45   :  { %212 = vmatprep.mubr.f32.mxu0 %v4616_v7 }
  0x48   :  { %213 = vmatmul.mubr.f32.gmra.mrb[18].mxu0 %v33_v59 }
  0x49   :  { %218 = vmatprep.mubr.f32.mxu0 %v4616_v7 }
  0x4c   :  { %219 = vmatmul.mubr.f32.gmra.mrb[20].mxu0 %v34_v60 }
  0x4d   :  { %224 = vmatprep.mubr.f32.mxu0 %v4616_v7 }
  0x50   :  { %225 = vmatmul.mubr.f32.gmra.mrb[22].mxu0 %v35_v61 }
  0x51   :  { %230 = vmatprep.mubr.f32.mxu0 %v4616_v7 }
  0x54   :  { %231 = vmatmul.mubr.f32.gmra.mrb[24].mxu0 %v36_v62 }
  0x55   :  { %236 = vmatprep.mubr.f32.mxu0 %v4616_v7 }
  0x58   :  { %237 = vmatmul.mubr.f32.gmra.mrb[26].mxu0 %v37_v63 }
  0x59   :  { %242 = vmatprep.mubr.f32.mxu0 %v4616_v7 }
  0x5c   :  { %243 = vmatmul.mubr.f32.gmra.mrb[28].mxu0 %v38_v0 }
  0x5d   :  { %248 = vmatprep.mubr.f32.mxu0 %v4616_v7 }
  0x60   :  { %249 = vmatmul.mubr.f32.gmra.mrb[30].mxu0 %v39_v1 }
  0x61   :  { %254 = vmatprep.mubr.f32.mxu0 %v4616_v7 }
  0x64   :  { %255 = vmatmul.mubr.f32.gmra.mrb[32].mxu0 %v40_v2 }
  0x65   :  { %260 = vmatprep.mubr.f32.mxu0 %v4616_v7 }
  0x68   :  { %261 = vmatmul.mubr.f32.gmra.mrb[34].mxu0 %v41_v3 }
  0x69   :  { %266 = vmatprep.mubr.f32.mxu0 %v4616_v7 }
  0x6c   :  { %267 = vmatmul.mubr.f32.gmra.mrb[36].mxu0 %v42_v4 }
  0x6d   :  { %272 = vmatprep.mubr.f32.mxu0 %v4616_v7 }
  0x70   :  { %273 = vmatmul.mubr.f32.gmra.mrb[38].mxu0 %v43_v5 }
  0x71   :  { %278 = vmatprep.mubr.f32.mxu0 %v4616_v7 }
  0x74   :  { %279 = vmatmul.mubr.f32.gmra.mrb[40].mxu0 %v44_v6 }
  0x75   :  { %284 = vmatprep.mubr.f32.mxu0 %v4616_v7 }
  0x78   :  { %285 = vmatmul.mubr.f32.gmra.mrb[42].mxu0 %v45_v8 }
  0x79   :  { %290 = vmatprep.mubr.f32.mxu0 %v4616_v7 }
  0x7c   :  { %291 = vmatmul.mubr.f32.gmra.mrb[44].mxu0 %v46_v9 }
  0x7d   :  { %296 = vmatprep.mubr.f32.mxu0 %v4616_v7 }
  0x80   :  { %297 = vmatmul.mubr.f32.gmra.mrb[46].mxu0 %v47_v10 }
  0x81   :  { %302 = vmatprep.mubr.f32.mxu0 %v4616_v7 }
  0x84   :  { %303 = vmatmul.mubr.f32.gmra.mrb[48].mxu0 %v48_v11 }
  0x85   :  { %308 = vmatprep.mubr.f32.mxu0 %v4616_v7 }
  0x88   :  { %309 = vmatmul.mubr.f32.gmra.mrb[50].mxu0 %v49_v12 }
  0x89   :  { %314 = vmatprep.mubr.f32.mxu0 %v4616_v7 }
  0x8c   :  { %315 = vmatmul.mubr.f32.gmra.mrb[52].mxu0 %v50_v13 }
  0x8d   :  { %320 = vmatprep.mubr.f32.mxu0 %v4616_v7 }
  0x90   :  { %321 = vmatmul.mubr.f32.gmra.mrb[54].mxu0 %v51_v14 }
  0x91   :  { %326 = vmatprep.mubr.f32.mxu0 %v4616_v7 }
  0x94   :  { %327 = vmatmul.mubr.f32.gmra.mrb[56].mxu0 %v52_v15 }
  0x95   :  { %332 = vmatprep.mubr.f32.mxu0 %v4616_v7 }
  0x98   :  { %333 = vmatmul.mubr.f32.gmra.mrb[58].mxu0 %v53_v16 }
  0x99   :  { %338 = vmatprep.mubr.f32.mxu0 %v4616_v7 }
  0x9c   :  { %339 = vmatmul.mubr.f32.gmra.mrb[60].mxu0 %v54_v17 }
  0x9d   :  { %344 = vmatprep.mubr.f32.mxu0 %v4616_v7 }
  0xa0   :  { %345 = vmatmul.mubr.f32.gmra.mrb[62].mxu0 %v55_v18 }
  0xa1   :  { %350 = vmatprep.mubr.f32.mxu0 %v4616_v7 }
  0xa4   :  { %351 = vmatmul.mubr.f32.gmra.mrb[64].mxu0 %v56_v19 }
  0xa5   :  { %356 = vmatprep.mubr.f32.mxu0 %v4616_v7 }
  0xa8   :  { %357 = vmatmul.mubr.f32.gmra.mrb[66].mxu0 %v57_v20 }
  0xa9   :  { %362 = vmatprep.mubr.f32.mxu0 %v4616_v7 }
  0xac   :  { %363 = vmatmul.mubr.f32.gmra.mrb[68].mxu0 %v58_v21 }
  0xad   :  { %368 = vmatprep.mubr.f32.mxu0 %v4616_v7 }
  0xb0   :  { %369 = vmatmul.mubr.f32.gmra.mrb[70].mxu0 %v59_v22 }
  0xb1   :  { %374 = vmatprep.mubr.f32.mxu0 %v4616_v7 }
  0xb4   :  { %375 = vmatmul.mubr.f32.gmra.mrb[72].mxu0 %v60_v23 }
  0xb5   :  { %380 = vmatprep.mubr.f32.mxu0 %v4616_v7 }
  0xb8   :  { %381 = vmatmul.mubr.f32.gmra.mrb[74].mxu0 %v61_v24 }
  0xf7   :  { %v4910_v25 = vpop.f32.mrb[0].mxu0 }
  0xf8   :  { %7807 = vst [vmem:[#allocation5_spill] sm:$0xff] %v4910_v25  ;;  %2556 = vrot.lane.b32.xlu1 %v4910_v25, %s4618_s16  ;;  %v4914_v26 = vpop.f32.mrb[1].mxu0 }
  0xf9   :  { %7808 = vst [vmem:[#allocation6_spill] sm:$0xff] %v4914_v26  ;;  %2558 = vrot.lane.b32.xlu0 %v4914_v26, %s4618_s16  ;;  %v388_v27 = vmul.f32 %v4914_v26, %v4914_v26 }
  0xfb   :  { %v4920_v7 = vpop.f32.mrb[2].mxu0 }
  0xfc   :  { %7809 = vst [vmem:[#allocation7_spill] sm:$0xff] %v4920_v7  ;;  %2560 = vrot.lane.b32.xlu1 %v4920_v7, %s4618_s16  ;;  %v4924_v28 = vpop.f32.mrb[3].mxu0 }
  0xfd   :  { %7810 = vst [vmem:[#allocation8_spill] sm:$0xff] %v4924_v28  ;;  %v390_v29 = vmul.f32 %v4924_v28, %v4924_v28  ;;  %501 = vrot.lane.b32.xlu0 %v388_v27, %s4619_s0 }
  0xff   :  { %v4929_v30 = vpop.f32.mrb[4].mxu0 }
 0x100   :  { %7811 = vst [vmem:[#allocation9_spill] sm:$0xff] %v4929_v30  ;;  %655 = vrot.lane.b32.xlu1 %v390_v29, %s4617_s28  ;;  %v4932_v31 = vpop.f32.mrb[5].mxu0 }
 0x101   :  { %7812 = vst [vmem:[#allocation10_spill] sm:$0xff] %v4932_v31  ;;  %653 = vrot.lane.b32.xlu0 %v388_v27, %s4617_s28  ;;  %v392_v34 = vmul.f32 %v4932_v31, %v4932_v31 }
 0x103   :  { %v4935_v32 = vpop.f32.mrb[6].mxu0 }
 0x104   :  { %7813 = vst [vmem:[#allocation11_spill] sm:$0xff] %v4935_v32  ;;  %2564 = vrot.lane.b32.xlu1 %v4929_v30, %s4618_s16  ;;  %v4939_v33 = vpop.f32.mrb[7].mxu0 }
 0x105   :  { %7814 = vst [vmem:[#allocation12_spill] sm:$0xff] %v4939_v33  ;;  %2562 = vrot.lane.b32.xlu0 %v4924_v28, %s4618_s16  ;;  %v394_v39 = vmul.f32 %v4939_v33, %v4939_v33 }
 0x107   :  { %v4945_v35 = vpop.f32.mrb[8].mxu0 }
 0x108   :  { %7815 = vst [vmem:[#allocation13_spill] sm:$0xff] %v4945_v35  ;;  %505 = vrot.lane.b32.xlu1 %v392_v34, %s4619_s0  ;;  %v4948_v36 = vpop.f32.mrb[9].mxu0 }
 0x109   :  { %7816 = vst [vmem:[#allocation14_spill] sm:$0xff] %v4948_v36  ;;  %503 = vrot.lane.b32.xlu0 %v390_v29, %s4619_s0  ;;  %v396_v46 = vmul.f32 %v4948_v36, %v4948_v36 }
 0x10b   :  { %v4951_v37 = vpop.f32.mrb[10].mxu0 }
 0x10c   :  { %7817 = vst [vmem:[#allocation15_spill] sm:$0xff] %v4951_v37  ;;  %2568 = vrot.lane.b32.xlu1 %v4935_v32, %s4618_s16  ;;  %v4955_v38 = vpop.f32.mrb[11].mxu0 }
 0x10d   :  { %7818 = vst [vmem:[#allocation16_spill] sm:$0xff] %v4955_v38  ;;  %2566 = vrot.lane.b32.xlu0 %v4932_v31, %s4618_s16  ;;  %v398_v49 = vmul.f32 %v4955_v38, %v4955_v38 }
 0x10f   :  { %v4961_v40 = vpop.f32.mrb[12].mxu0 }
 0x110   :  { %7819 = vst [vmem:[#allocation17_spill] sm:$0xff] %v4961_v40  ;;  %507 = vrot.lane.b32.xlu1 %v394_v39, %s4619_s0  ;;  %v4964_v41 = vpop.f32.mrb[13].mxu0 }
 0x111   :  { %7820 = vst [vmem:[#allocation18_spill] sm:$0xff] %v4964_v41  ;;  %657 = vrot.lane.b32.xlu0 %v392_v34, %s4617_s28  ;;  %v400_v56 = vmul.f32 %v4964_v41, %v4964_v41 }
 0x113   :  { %v4967_v42 = vpop.f32.mrb[14].mxu0 }
 0x114   :  { %7821 = vst [vmem:[#allocation19_spill] sm:$0xff] %v4967_v42  ;;  %659 = vrot.lane.b32.xlu1 %v394_v39, %s4617_s28  ;;  %v4970_v43 = vpop.f32.mrb[15].mxu0 }
 0x115   :  { %7822 = vst [vmem:[#allocation20_spill] sm:$0xff] %v4970_v43  ;;  %2570 = vrot.lane.b32.xlu0 %v4939_v33, %s4618_s16  ;;  %v402_v59 = vmul.f32 %v4970_v43, %v4970_v43 }
 0x117   :  { %v4974_v44 = vpop.f32.mrb[16].mxu0 }
 0x118   :  { %7823 = vst [vmem:[#allocation21_spill] sm:$0xff] %v4974_v44  ;;  %2572 = vrot.lane.b32.xlu1 %v4945_v35, %s4618_s16  ;;  %v4978_v45 = vpop.f32.mrb[17].mxu0 }
 0x119   :  { %7824 = vst [vmem:[#allocation22_spill] sm:$0xff] %v4978_v45  ;;  %2574 = vrot.lane.b32.xlu0 %v4948_v36, %s4618_s16  ;;  %v404_v2 = vmul.f32 %v4978_v45, %v4978_v45 }
 0x11b   :  { %v4984_v47 = vpop.f32.mrb[18].mxu0 }
 0x11c   :  { %7825 = vst [vmem:[#allocation23_spill] sm:$0xff] %v4984_v47  ;;  %2576 = vrot.lane.b32.xlu1 %v4951_v37, %s4618_s16  ;;  %v4988_v48 = vpop.f32.mrb[19].mxu0 }
 0x11d   :  { %7826 = vst [vmem:[#allocation24_spill] sm:$0xff] %v4988_v48  ;;  %509 = vrot.lane.b32.xlu0 %v396_v46, %s4619_s0  ;;  %v406_v5 = vmul.f32 %v4988_v48, %v4988_v48 }
 0x11f   :  { %v4993_v50 = vpop.f32.mrb[20].mxu0 }
 0x120   :  { %7827 = vst [vmem:[#allocation25_spill] sm:$0xff] %v4993_v50  ;;  %511 = vrot.lane.b32.xlu1 %v398_v49, %s4619_s0  ;;  %v4996_v51 = vpop.f32.mrb[21].mxu0 }
 0x121   :  { %7828 = vst [vmem:[#allocation26_spill] sm:$0xff] %v4996_v51  ;;  %661 = vrot.lane.b32.xlu0 %v396_v46, %s4617_s28  ;;  %v408_v13 = vmul.f32 %v4996_v51, %v4996_v51 }
 0x123   :  { %v4999_v52 = vpop.f32.mrb[22].mxu0 }
 0x124   :  { %7829 = vst [vmem:[#allocation27_spill] sm:$0xff] %v4999_v52  ;;  %663 = vrot.lane.b32.xlu1 %v398_v49, %s4617_s28  ;;  %v5002_v53 = vpop.f32.mrb[23].mxu0 }
 0x125   :  { %7830 = vst [vmem:[#allocation28_spill] sm:$0xff] %v5002_v53  ;;  %2578 = vrot.lane.b32.xlu0 %v4955_v38, %s4618_s16  ;;  %v410_v16 = vmul.f32 %v5002_v53, %v5002_v53 }
 0x127   :  { %v5006_v54 = vpop.f32.mrb[24].mxu0 }
 0x128   :  { %7831 = vst [vmem:[#allocation29_spill] sm:$0xff] %v5006_v54  ;;  %2580 = vrot.lane.b32.xlu1 %v4961_v40, %s4618_s16  ;;  %v5010_v55 = vpop.f32.mrb[25].mxu0 }
 0x129   :  { %7832 = vst [vmem:[#allocation30_spill] sm:$0xff] %v5010_v55  ;;  %2582 = vrot.lane.b32.xlu0 %v4964_v41, %s4618_s16  ;;  %v412_v23 = vmul.f32 %v5010_v55, %v5010_v55 }
 0x12b   :  { %v5016_v57 = vpop.f32.mrb[26].mxu0 }
 0x12c   :  { %7833 = vst [vmem:[#allocation31_spill] sm:$0xff] %v5016_v57  ;;  %2584 = vrot.lane.b32.xlu1 %v4967_v42, %s4618_s16  ;;  %v5020_v58 = vpop.f32.mrb[27].mxu0 }
 0x12d   :  { %7834 = vst [vmem:[#allocation32_spill] sm:$0xff] %v5020_v58  ;;  %513 = vrot.lane.b32.xlu0 %v400_v56, %s4619_s0  ;;  %v414_v29 = vmul.f32 %v5020_v58, %v5020_v58 }
 0x12f   :  { %v5025_v60 = vpop.f32.mrb[28].mxu0 }
 0x130   :  { %7835 = vst [vmem:[#allocation33_spill] sm:$0xff] %v5025_v60  ;;  %515 = vrot.lane.b32.xlu1 %v402_v59, %s4619_s0  ;;  %v5028_v61 = vpop.f32.mrb[29].mxu0 }
 0x131   :  { %7836 = vst [vmem:[#allocation34_spill] sm:$0xff] %v5028_v61  ;;  %665 = vrot.lane.b32.xlu0 %v400_v56, %s4617_s28  ;;  %v416_v46 = vmul.f32 %v5028_v61, %v5028_v61 }
 0x133   :  { %v5031_v62 = vpop.f32.mrb[30].mxu0 }
 0x134   :  { %7837 = vst [vmem:[#allocation35_spill] sm:$0xff] %v5031_v62  ;;  %667 = vrot.lane.b32.xlu1 %v402_v59, %s4617_s28  ;;  %v5034_v63 = vpop.f32.mrb[31].mxu0 }
 0x135   :  { %7838 = vst [vmem:[#allocation36_spill] sm:$0xff] %v5034_v63  ;;  %2586 = vrot.lane.b32.xlu0 %v4970_v43, %s4618_s16  ;;  %v418_v56 = vmul.f32 %v5034_v63, %v5034_v63 }
 0x137   :  { %v5038_v0 = vpop.f32.mrb[32].mxu0 }
 0x138   :  { %7839 = vst [vmem:[#allocation37_spill] sm:$0xff] %v5038_v0  ;;  %2588 = vrot.lane.b32.xlu1 %v4974_v44, %s4618_s16  ;;  %v5042_v1 = vpop.f32.mrb[33].mxu0 }
 0x139   :  { %7840 = vst [vmem:[#allocation38_spill] sm:$0xff] %v5042_v1  ;;  %2590 = vrot.lane.b32.xlu0 %v4978_v45, %s4618_s16 }
 0x13b   :  { %v5048_v3 = vpop.f32.mrb[34].mxu0 }
 0x13c   :  { %7841 = vst [vmem:[#allocation39_spill] sm:$0xff] %v5048_v3  ;;  %2592 = vrot.lane.b32.xlu1 %v4984_v47, %s4618_s16  ;;  %v5052_v4 = vpop.f32.mrb[35].mxu0 }
 0x13d   :  { %7842 = vst [vmem:[#allocation40_spill] sm:$0xff] %v5052_v4  ;;  %517 = vrot.lane.b32.xlu0 %v404_v2, %s4619_s0 }
 0x13f   :  { %v5057_v6 = vpop.f32.mrb[36].mxu0 }
 0x140   :  { %7843 = vst [vmem:[#allocation41_spill] sm:$0xff] %v5057_v6  ;;  %519 = vrot.lane.b32.xlu1 %v406_v5, %s4619_s0  ;;  %v5060_v8 = vpop.f32.mrb[37].mxu0 }
 0x141   :  { %7844 = vst [vmem:[#allocation42_spill] sm:$0xff] %v5060_v8  ;;  %669 = vrot.lane.b32.xlu0 %v404_v2, %s4617_s28  ;;  %v5137_v2 = vpop.permute.xlu0 %1717  ;;  %v424_v43 = vmul.f32 %v5060_v8, %v5060_v8 }
 0x142   :  { %7863 = vst [vmem:[#allocation61_spill] sm:$0xff] %v5137_v2 }
 0x143   :  { %v5063_v9 = vpop.f32.mrb[38].mxu0 }
 0x144   :  { %7845 = vst [vmem:[#allocation43_spill] sm:$0xff] %v5063_v9  ;;  %671 = vrot.lane.b32.xlu1 %v406_v5, %s4617_s28  ;;  %v5066_v10 = vpop.f32.mrb[39].mxu0 }
 0x145   :  { %7846 = vst [vmem:[#allocation44_spill] sm:$0xff] %v5066_v10  ;;  %2594 = vrot.lane.b32.xlu0 %v4988_v48, %s4618_s16  ;;  %v426_v31 = vmul.f32 %v5066_v10, %v5066_v10 }
 0x147   :  { %v5070_v11 = vpop.f32.mrb[40].mxu0 }
 0x148   :  { %7847 = vst [vmem:[#allocation45_spill] sm:$0xff] %v5070_v11  ;;  %2596 = vrot.lane.b32.xlu1 %v4993_v50, %s4618_s16  ;;  %v5074_v12 = vpop.f32.mrb[41].mxu0 }
 0x149   :  { %7848 = vst [vmem:[#allocation46_spill] sm:$0xff] %v5074_v12  ;;  %2598 = vrot.lane.b32.xlu0 %v4996_v51, %s4618_s16  ;;  %v422_v51 = vmul.f32 %v5052_v4, %v5052_v4 }
 0x14b   :  { %v5080_v14 = vpop.f32.mrb[42].mxu0 }
 0x14c   :  { %7849 = vst [vmem:[#allocation47_spill] sm:$0xff] %v5080_v14  ;;  %2600 = vrot.lane.b32.xlu1 %v4999_v52, %s4618_s16  ;;  %v5084_v15 = vpop.f32.mrb[43].mxu0 }
 0x14d   :  { %7850 = vst [vmem:[#allocation48_spill] sm:$0xff] %v5084_v15  ;;  %521 = vrot.lane.b32.xlu0 %v408_v13, %s4619_s0 }
 0x14f   :  { %v5089_v17 = vpop.f32.mrb[44].mxu0 }
 0x150   :  { %7851 = vst [vmem:[#allocation49_spill] sm:$0xff] %v5089_v17  ;;  %523 = vrot.lane.b32.xlu1 %v410_v16, %s4619_s0  ;;  %v5092_v18 = vpop.f32.mrb[45].mxu0 }
 0x151   :  { %7852 = vst [vmem:[#allocation50_spill] sm:$0xff] %v5092_v18  ;;  %673 = vrot.lane.b32.xlu0 %v408_v13, %s4617_s28 }
 0x153   :  { %v5095_v19 = vpop.f32.mrb[46].mxu0 }
 0x154   :  { %7853 = vst [vmem:[#allocation51_spill] sm:$0xff] %v5095_v19  ;;  %675 = vrot.lane.b32.xlu1 %v410_v16, %s4617_s28  ;;  %v5098_v20 = vpop.f32.mrb[47].mxu0 }
 0x155   :  { %7854 = vst [vmem:[#allocation52_spill] sm:$0xff] %v5098_v20  ;;  %2602 = vrot.lane.b32.xlu0 %v5002_v53, %s4618_s16 }
 0x157   :  { %v5102_v21 = vpop.f32.mrb[48].mxu0 }
 0x158   :  { %7855 = vst [vmem:[#allocation53_spill] sm:$0xff] %v5102_v21  ;;  %2604 = vrot.lane.b32.xlu1 %v5006_v54, %s4618_s16  ;;  %v5106_v22 = vpop.f32.mrb[49].mxu0 }
 0x159   :  { %7856 = vst [vmem:[#allocation54_spill] sm:$0xff] %v5106_v22  ;;  %2606 = vrot.lane.b32.xlu0 %v5010_v55, %s4618_s16 }
 0x15b   :  { %v5112_v24 = vpop.f32.mrb[50].mxu0 }
 0x15c   :  { %7857 = vst [vmem:[#allocation55_spill] sm:$0xff] %v5112_v24  ;;  %2608 = vrot.lane.b32.xlu1 %v5016_v57, %s4618_s16  ;;  %v5116_v27 = vpop.f32.mrb[51].mxu0 }
 0x15d   :  { %7858 = vst [vmem:[#allocation56_spill] sm:$0xff] %v5116_v27  ;;  %525 = vrot.lane.b32.xlu0 %v412_v23, %s4619_s0 }
 0x15f   :  { %v5121_v34 = vpop.f32.mrb[52].mxu0 }
 0x160   :  { %7859 = vst [vmem:[#allocation57_spill] sm:$0xff] %v5121_v34  ;;  %527 = vrot.lane.b32.xlu1 %v414_v29, %s4619_s0  ;;  %v5124_v39 = vpop.f32.mrb[53].mxu0 }
 0x161   :  { %7860 = vst [vmem:[#allocation58_spill] sm:$0xff] %v5124_v39  ;;  %677 = vrot.lane.b32.xlu0 %v412_v23, %s4617_s28  ;;  %v420_v23 = vmul.f32 %v5042_v1, %v5042_v1 }
 0x163   :  { %v5129_v49 = vpop.f32.mrb[54].mxu0 }
 0x164   :  { %7861 = vst [vmem:[#allocation59_spill] sm:$0xff] %v5129_v49  ;;  %679 = vrot.lane.b32.xlu1 %v414_v29, %s4617_s28  ;;  %v5134_v59 = vpop.f32.mrb[55].mxu0 }
 0x165   :  { %7862 = vst [vmem:[#allocation60_spill] sm:$0xff] %v5134_v59  ;;  %529 = vrot.lane.b32.xlu0 %v416_v46, %s4619_s0 }
 0x167   :  { %v5139_v5 = vpop.f32.mrb[56].mxu0 }
 0x168   :  { %7864 = vst [vmem:[#allocation62_spill] sm:$0xff] %v5139_v5  ;;  %531 = vrot.lane.b32.xlu1 %v418_v56, %s4619_s0  ;;  %v5142_v13 = vpop.f32.mrb[57].mxu0 }
 0x169   :  { %7865 = vst [vmem:[#allocation63_spill] sm:$0xff] %v5142_v13  ;;  %681 = vrot.lane.b32.xlu0 %v416_v46, %s4617_s28 }
 0x16a   :  { %v5145_v16 = vpop.permute.xlu1 %2556 }
 0x16b   :  { %7866 = vst [vmem:[#allocation64_spill] sm:$0xff] %v5145_v16  ;;  %v5149_v29 = vpop.permute.xlu0 %2558  ;;  %v5151_v55 = vpop.f32.mrb[58].mxu0  ;;  %v428_v16 = vmul.f32 %v5074_v12, %v5074_v12 }
 0x16c   :  { %7867 = vst [vmem:[#allocation65_spill] sm:$0xff] %v5149_v29  ;;  %7868 = vst [vmem:[#allocation66_spill] sm:$0xff] %v5151_v55  ;;  %683 = vrot.lane.b32.xlu1 %v418_v56, %s4617_s28  ;;  %v5156_v53 = vpop.f32.mrb[59].mxu0 }
 0x16d   :  { %7869 = vst [vmem:[#allocation67_spill] sm:$0xff] %v5156_v53  ;;  %533 = vrot.lane.b32.xlu0 %v420_v23, %s4619_s0 }
 0x16e   :  { %v5159_v45 = vpop.permute.xlu1 %2560 }
 0x16f   :  { %7870 = vst [vmem:[#allocation68_spill] sm:$0xff] %v5159_v45  ;;  %v5161_v46 = vpop.permute.xlu0 %501  ;;  %v5163_v48 = vpop.f32.mrb[60].mxu0 }
 0x170   :  { %7871 = vst [vmem:[#allocation69_spill] sm:$0xff] %v5163_v48  ;;  %535 = vrot.lane.b32.xlu1 %v422_v51, %s4619_s0  ;;  %v5166_v41 = vpop.f32.mrb[61].mxu0 }
 0x171   :  { %7872 = vst [vmem:[#allocation70_spill] sm:$0xff] %v5166_v41  ;;  %685 = vrot.lane.b32.xlu0 %v420_v23, %s4617_s28 }
 0x172   :  { %v5169_v56 = vpop.permute.xlu1 %655 }
 0x173   :  { %v5173_v36 = vpop.permute.xlu0 %653  ;;  %v5175_v38 = vpop.f32.mrb[62].mxu0 }
 0x174   :  { %7873 = vst [vmem:[#allocation71_spill] sm:$0xff] %v5175_v38  ;;  %687 = vrot.lane.b32.xlu1 %v422_v51, %s4617_s28  ;;  %v5180_v33 = vpop.f32.mrb[63].mxu0  ;;  %v444_v38 = vmul.f32 %v5142_v13, %v5142_v13 }
 0x175   :  { %7874 = vst [vmem:[#allocation72_spill] sm:$0xff] %v5180_v33  ;;  %537 = vrot.lane.b32.xlu0 %v424_v43, %s4619_s0 }
 0x176   :  { %v5183_v26 = vpop.permute.xlu1 %2564 }
 0x177   :  { %7875 = vst [vmem:[#allocation73_spill] sm:$0xff] %v5183_v26  ;;  %v5185_v23 = vpop.permute.xlu0 %2562  ;;  %v5187_v2 = vpop.f32.mrb[64].mxu0  ;;  %v430_v26 = vmul.f32 %v5084_v15, %v5084_v15  ;;  %v432_v15 = vmul.f32 %v5092_v18, %v5092_v18 }
 0x178   :  { %7876 = vst [vmem:[#allocation74_spill] sm:$0xff] %v5185_v23  ;;  %7877 = vst [vmem:[#allocation75_spill] sm:$0xff] %v5187_v2  ;;  %539 = vrot.lane.b32.xlu1 %v426_v31, %s4619_s0  ;;  %v5190_v28 = vpop.f32.mrb[65].mxu0 }
 0x179   :  { %7878 = vst [vmem:[#allocation76_spill] sm:$0xff] %v5190_v28  ;;  %689 = vrot.lane.b32.xlu0 %v424_v43, %s4617_s28 }
 0x17a   :  { %v5193_v51 = vpop.permute.xlu1 %505 }
 0x17b   :  { %v504_v29 = vpop.permute.xlu0 %503  ;;  %v5197_v45 = vpop.f32.mrb[66].mxu0 }
 0x17c   :  { %7879 = vst [vmem:[#allocation77_spill] sm:$0xff] %v5197_v45  ;;  %691 = vrot.lane.b32.xlu1 %v426_v31, %s4617_s28  ;;  %v5202_v23 = vpop.f32.mrb[67].mxu0 }
 0x17d   :  { %7880 = vst [vmem:[#allocation78_spill] sm:$0xff] %v5202_v23  ;;  %541 = vrot.lane.b32.xlu0 %v428_v16, %s4619_s0 }
 0x17e   :  { %v5205_v10 = vpop.permute.xlu1 %2568 }
 0x17f   :  { %7881 = vst [vmem:[#allocation79_spill] sm:$0xff] %v5205_v10  ;;  %v5207_v43 = vpop.permute.xlu0 %2566  ;;  %v5209_v8 = vpop.f32.mrb[68].mxu0 }
 0x180   :  { %7882 = vst [vmem:[#allocation80_spill] sm:$0xff] %v5207_v43  ;;  %7883 = vst [vmem:[#allocation81_spill] sm:$0xff] %v5209_v8  ;;  %543 = vrot.lane.b32.xlu1 %v430_v26, %s4619_s0  ;;  %v5212_v12 = vpop.f32.mrb[69].mxu0  ;;  %v434_v43 = vmul.f32 %v5098_v20, %v5098_v20  ;;  %v436_v20 = vmul.f32 %v5106_v22, %v5106_v22 }
 0x181   :  { %7884 = vst [vmem:[#allocation82_spill] sm:$0xff] %v5212_v12  ;;  %693 = vrot.lane.b32.xlu0 %v428_v16, %s4617_s28 }
 0x182   :  { %v5215_v31 = vpop.permute.xlu1 %507 }
 0x183   :  { %v5219_v4 = vpop.permute.xlu0 %657  ;;  %v5221_v1 = vpop.f32.mrb[70].mxu0 }
 0x184   :  { %7885 = vst [vmem:[#allocation83_spill] sm:$0xff] %v5221_v1  ;;  %695 = vrot.lane.b32.xlu1 %v430_v26, %s4617_s28  ;;  %v5226_v10 = vpop.f32.mrb[71].mxu0 }
 0x185   :  { %7886 = vst [vmem:[#allocation84_spill] sm:$0xff] %v5226_v10  ;;  %545 = vrot.lane.b32.xlu0 %v432_v15, %s4619_s0 }
 0x186   :  { %v5229_v63 = vpop.permute.xlu1 %659 }
 0x187   :  { %v5231_v16 = vpop.permute.xlu0 %2570  ;;  %v5233_v8 = vpop.f32.mrb[72].mxu0 }
 0x188   :  { %7887 = vst [vmem:[#allocation85_spill] sm:$0xff] %v5231_v16  ;;  %7888 = vst [vmem:[#allocation86_spill] sm:$0xff] %v5233_v8  ;;  %547 = vrot.lane.b32.xlu1 %v434_v43, %s4619_s0  ;;  %v5236_v18 = vpop.f32.mrb[73].mxu0  ;;  %v438_v16 = vmul.f32 %v5116_v27, %v5116_v27  ;;  %v442_v27 = vmul.f32 %v5134_v59, %v5134_v59 }
 0x189   :  { %7889 = vst [vmem:[#allocation87_spill] sm:$0xff] %v5236_v18  ;;  %697 = vrot.lane.b32.xlu0 %v432_v15, %s4617_s28 }
 0x18a   :  { %v5239_v26 = vpop.permute.xlu1 %2572 }
 0x18b   :  { %7890 = vst [vmem:[#allocation88_spill] sm:$0xff] %v5239_v26  ;;  %v5243_v1 = vpop.permute.xlu0 %2574  ;;  %v5245_v45 = vpop.f32.mrb[74].mxu0 }
 0x18c   :  { %7891 = vst [vmem:[#allocation89_spill] sm:$0xff] %v5243_v1  ;;  %7892 = vst [vmem:[#allocation90_spill] sm:$0xff] %v5245_v45  ;;  %699 = vrot.lane.b32.xlu1 %v434_v43, %s4617_s28  ;;  %v5250_v8 = vpop.f32.mrb[75].mxu0  ;;  %v440_v43 = vmul.f32 %v5124_v39, %v5124_v39  ;;  %v389_v39 = vmul.f32 %v4920_v7, %v4920_v7 }
 0x18d   :  { %7893 = vst [vmem:[#allocation91_spill] sm:$0xff] %v5250_v8  ;;  %549 = vrot.lane.b32.xlu0 %v436_v20, %s4619_s0 }
 0x18e   :  { %v5253_v2 = vpop.permute.xlu1 %2576  ;;  %v616_v59 = vadd.f32 %v504_v29, %v389_v39 }
 0x18f   :  { %7894 = vst [vmem:[#allocation92_spill] sm:$0xff] %v5253_v2  ;;  %v5255_v15 = vpop.permute.xlu0 %509 }
 0x190   :  { %551 = vrot.lane.b32.xlu1 %v438_v16, %s4619_s0 }
 0x191   :  { %701 = vrot.lane.b32.xlu0 %v436_v20, %s4617_s28  ;;  %v387_v20 = vmul.f32 %v4910_v25, %v4910_v25  ;;  %v446_v25 = vmul.f32 %v5156_v53, %v5156_v53 }
 0x192   :  { %v5259_v26 = vpop.permute.xlu1 %511 }
 0x193   :  { %v5263_v1 = vpop.permute.xlu0 %661 }
 0x194   :  { %703 = vrot.lane.b32.xlu1 %v438_v16, %s4617_s28  ;;  %v615_v16 = vadd.f32 %v5161_v46, %v387_v20  ;;  %v5296_v46 = vadd.f32 %v5169_v56, %v616_v59  ;;  %v448_v56 = vmul.f32 %v5166_v41, %v5166_v41 }
 0x195   :  { %553 = vrot.lane.b32.xlu0 %v440_v43, %s4619_s0 }
 0x196   :  { %v5269_v2 = vpop.permute.xlu1 %663  ;;  %vm814_vm2 = vcmp.eq.f32.partialorder %v5296_v46, inf  ;;  %vm816_vm3 = vcmp.eq.f32.partialorder %v5296_v46, 0.0 }
 0x197   :  { %v5271_v22 = vpop.permute.xlu0 %2578 }
 0x198   :  { %7895 = vst [vmem:[#allocation93_spill] sm:$0xff] %v5271_v22  ;;  %555 = vrot.lane.b32.xlu1 %v442_v27, %s4619_s0  ;;  %v5287_v22 = vadd.f32 %v5173_v36, %v615_v16  ;;  %v1071_v36 = vld [vmem:[%s7643_s2] sm:$0xff]  ;;  %v450_v16 = vmul.f32 %v5180_v33, %v5180_v33 }
 0x199   :  { %705 = vrot.lane.b32.xlu0 %v440_v43, %s4617_s28 }
 0x19a   :  { %v5280_v45 = vpop.permute.xlu1 %2580  ;;  %4364 = vrsqrt.f32 %v5287_v22  ;;  %vm807_vm0 = vcmp.eq.f32.partialorder %v5287_v22, inf  ;;  %vm809_vm1 = vcmp.eq.f32.partialorder %v5287_v22, 0.0 }
 0x19b   :  { %7896 = vst [vmem:[#allocation94_spill] sm:$0xff] %v5280_v45  ;;  %v5284_v48 = vpop.permute.xlu0 %2582  ;;  %4366 = vrsqrt.f32 %v5296_v46 }
 0x19c   :  { %7897 = vst [vmem:[#allocation95_spill] sm:$0xff] %v5284_v48  ;;  %707 = vrot.lane.b32.xlu1 %v442_v27, %s4617_s28  ;;  %v1072_v27 = vld [vmem:[%s7643_s2 + $0x8] sm:$0xff] }
 0x19d   :  { %557 = vrot.lane.b32.xlu0 %v444_v38, %s4619_s0  ;;  %v4341_v59 = vpack.c.bf16 %v1072_v27, %v1071_v36  ;;  %v1073_v36 = vld [vmem:[%s7643_s2 + $0x10] sm:$0xff]  ;;  %v1074_v27 = vld [vmem:[%s7643_s2 + $0x18] sm:$0xff] }
 0x19e   :  { %v5293_v43 = vpop.permute.xlu1 %2584 }
 0x19f   :  { %7898 = vst [vmem:[#allocation96_spill] sm:$0xff] %v5293_v43  ;;  %v5298_v39 = vpop.permute.xlu0 %513  ;;  %4342 = vmatprep.subr.bf16.mxu1 %v4341_v59 }
 0x1a0   :  { %559 = vrot.lane.b32.xlu1 %v446_v25, %s4619_s0  ;;  %4344 = vmatpush3.bf16.msra.mxu1 %v4341_v59 }
 0x1a1   :  { %709 = vrot.lane.b32.xlu0 %v444_v38, %s4617_s28  ;;  %v391_v38 = vmul.f32 %v4929_v30, %v4929_v30  ;;  %v4345_v30 = vpack.c.bf16 %v1074_v27, %v1073_v36  ;;  %v452_v36 = vmul.f32 %v5190_v28, %v5190_v28 }
 0x1a2   :  { %v5309_v29 = vpop.permute.xlu1 %515 }
 0x1a3   :  { %v5313_v20 = vpop.permute.xlu0 %665  ;;  %v617_v45 = vadd.f32 %v5193_v51, %v391_v38  ;;  %4346 = vmatprep.subr.bf16.mxu1 %v4345_v30 }
 0x1a4   :  { %711 = vrot.lane.b32.xlu1 %v446_v25, %s4617_s28  ;;  %v393_v25 = vmul.f32 %v4935_v32, %v4935_v32  ;;  %v4365_v33 = vpop.eup %4364  ;;  %4348 = vmatpush3.bf16.msra.mxu1 %v4345_v30 }
 0x1a5   :  { %561 = vrot.lane.b32.xlu0 %v448_v56, %s4619_s0  ;;  %v5336_v59 = vadd.f32 %v5219_v4, %v617_v45  ;;  %v454_v45 = vmul.f32 %v5202_v23, %v5202_v23  ;;  %v4367_v4 = vpop.eup %4366  ;;  %v806_v30 = vmul.f32 %v4365_v33, %v5287_v22 }
 0x1a6   :  { %v5329_v48 = vpop.permute.xlu1 %667  ;;  %v618_v7 = vadd.f32 %v5215_v31, %v393_v25  ;;  %v810_v25 = vand.u32 2147483648, %v5287_v22 }
 0x1a7   :  { %v5333_v43 = vpop.permute.xlu0 %2586  ;;  %4368 = vrsqrt.f32 %v5336_v59  ;;  %vm821_vm4 = vcmp.eq.f32.partialorder %v5336_v59, inf  ;;  %vm823_vm5 = vcmp.eq.f32.partialorder %v5336_v59, 0.0 }
 0x1a8   :  { %7899 = vst [vmem:[#allocation97_spill] sm:$0xff] %v5333_v43  ;;  %563 = vrot.lane.b32.xlu1 %v450_v16, %s4619_s0  ;;  %v5344_v38 = vadd.f32 %v5229_v63, %v618_v7  ;;  %v813_v63 = vmul.f32 %v4367_v4, %v5296_v46 }
 0x1a9   :  { %713 = vrot.lane.b32.xlu0 %v448_v56, %s4617_s28  ;;  %v808_v56 = vsel %vm807_vm0, %v5287_v22, %v806_v30  ;;  %v395_v30 = vmul.f32 %v4945_v35, %v4945_v35  ;;  %v397_v22 = vmul.f32 %v4951_v37, %v4951_v37 }
 0x1aa   :  { %v5341_v51 = vpop.permute.xlu1 %2588  ;;  %4370 = vrsqrt.f32 %v5344_v38  ;;  %v811_v33 = vsel %vm809_vm1, %v810_v25, %v808_v56  ;;  %vm828_vm6 = vcmp.eq.f32.partialorder %v5344_v38, inf  ;;  %vm830_vm7 = vcmp.eq.f32.partialorder %v5344_v38, 0.0 }
 0x1ab   :  { %7900 = vst [vmem:[#allocation98_spill] sm:$0xff] %v5341_v51  ;;  %v5348_v27 = vpop.permute.xlu0 %2590  ;;  %v619_v25 = vadd.f32 %v5255_v15, %v395_v30  ;;  %v620_v43 = vadd.f32 %v5259_v26, %v397_v22  ;;  %v401_v15 = vmul.f32 %v4967_v42, %v4967_v42  ;;  %v399_v26 = vmul.f32 %v4961_v40, %v4961_v40 }
 0x1ac   :  { %7901 = vst [vmem:[#allocation99_spill] sm:$0xff] %v5348_v27  ;;  %715 = vrot.lane.b32.xlu1 %v450_v16, %s4617_s28  ;;  %v815_v27 = vsel %vm814_vm2, %v5296_v46, %v813_v63  ;;  %v405_v30 = vmul.f32 %v4984_v47, %v4984_v47 }
 0x1ad   :  { %565 = vrot.lane.b32.xlu0 %v452_v36, %s4619_s0  ;;  %v5390_v37 = vadd.f32 %v5263_v1, %v619_v25 }
 0x1ae   :  { %v5356_v31 = vpop.permute.xlu1 %2592 }
 0x1af   :  { %7902 = vst [vmem:[#allocation100_spill] sm:$0xff] %v5356_v31  ;;  %v518_v7 = vpop.permute.xlu0 %517  ;;  %4372 = vrsqrt.f32 %v5390_v37  ;;  %vm835_vm9 = vcmp.eq.f32.partialorder %v5390_v37, inf  ;;  %vm837_vm11 = vcmp.eq.f32.partialorder %v5390_v37, 0.0 }
 0x1b0   :  { %567 = vrot.lane.b32.xlu1 %v454_v45, %s4619_s0 }
 0x1b1   :  { %717 = vrot.lane.b32.xlu0 %v452_v36, %s4617_s28  ;;  %v817_v36 = vand.u32 2147483648, %v5296_v46  ;;  %v4369_v4 = vpop.eup %4368 }
 0x1b2   :  { %v520_v16 = vpop.permute.xlu1 %519  ;;  %v820_v46 = vmul.f32 %v4369_v4, %v5336_v59  ;;  %v622_v4 = vadd.f32 %v5309_v29, %v401_v15 }
 0x1b3   :  { %v5365_v51 = vpop.permute.xlu0 %669  ;;  %v818_v63 = vsel %vm816_vm3, %v817_v36, %v815_v27  ;;  %v5395_v27 = vadd.f32 %v5269_v2, %v620_v43  ;;  %v621_v43 = vadd.f32 %v5298_v39, %v399_v26  ;;  %v403_v39 = vmul.f32 %v4974_v44, %v4974_v44 }
 0x1b4   :  { %719 = vrot.lane.b32.xlu1 %v454_v45, %s4617_s28  ;;  %v456_v45 = vmul.f32 %v5212_v12, %v5212_v12  ;;  %v4371_v35 = vpop.eup %4370  ;;  %v822_v2 = vsel %vm821_vm4, %v5336_v59, %v820_v46  ;;  %v624_v15 = vadd.f32 %v520_v16, %v405_v30 }
 0x1b5   :  { %1113 = vrot.lane.b32.xlu0 %v811_v33, %s4618_s16  ;;  %v458_v33 = vmul.f32 %v5226_v10, %v5226_v10  ;;  %v827_v1 = vmul.f32 %v4371_v35, %v5344_v38  ;;  %4374 = vrsqrt.f32 %v5395_v27  ;;  %v5418_v35 = vadd.f32 %v5329_v48, %v622_v4 }
 0x1b6   :  { %v672_v31 = vpop.permute.xlu1 %671  ;;  %v831_v48 = vand.u32 2147483648, %v5344_v38  ;;  %v623_v26 = vadd.f32 %v518_v7, %v403_v39  ;;  %v407_v7 = vmul.f32 %v4993_v50, %v4993_v50  ;;  %vm842_vm8 = vcmp.eq.f32.partialorder %v5395_v27, inf }
 0x1b7   :  { %v5380_v56 = vpop.permute.xlu0 %2594  ;;  %v829_v46 = vsel %vm828_vm6, %v5344_v38, %v827_v1  ;;  %4376 = vrsqrt.f32 %v5418_v35  ;;  %v462_v38 = vmul.f32 %v5250_v8, %v5250_v8  ;;  %vm844_vm10 = vcmp.eq.f32.partialorder %v5395_v27, 0.0 }
 0x1b8   :  { %1115 = vrot.lane.b32.xlu1 %v818_v63, %s4618_s16  ;;  %v824_v63 = vand.u32 2147483648, %v5336_v59  ;;  %v409_v59 = vmul.f32 %v4999_v52, %v4999_v52  ;;  %v832_v16 = vsel %vm830_vm7, %v831_v48, %v829_v46  ;;  %vm856_vm12 = vcmp.eq.f32.partialorder %v5418_v35, inf }
 0x1b9   :  { %569 = vrot.lane.b32.xlu0 %v456_v45, %s4619_s0  ;;  %vm858_vm14 = vcmp.eq.f32.partialorder %v5418_v35, 0.0 }
 0x1ba   :  { %v5392_v32 = vpop.permute.xlu1 %2596  ;;  %v825_v25 = vsel %vm823_vm5, %v824_v63, %v822_v2  ;;  %v5441_v2 = vadd.f32 %v5365_v51, %v623_v26  ;;  %v4373_v51 = vpop.eup %4372 }
 0x1bb   :  { %v5399_v36 = vpop.permute.xlu0 %2598  ;;  %v834_v26 = vmul.f32 %v4373_v51, %v5390_v37  ;;  %v838_v51 = vand.u32 2147483648, %v5390_v37 }
 0x1bc   :  { %571 = vrot.lane.b32.xlu1 %v458_v33, %s4619_s0  ;;  %vm863_vm1 = vcmp.eq.f32.partialorder %v5441_v2, inf  ;;  %vm865_vm3 = vcmp.eq.f32.partialorder %v5441_v2, 0.0 }
 0x1bd   :  { %721 = vrot.lane.b32.xlu0 %v456_v45, %s4617_s28  ;;  %v5423_v45 = vadd.f32 %v5313_v20, %v621_v43  ;;  %v5435_v20 = vadd.f32 %v672_v31, %v624_v15 }
 0x1be   :  { %v5413_v22 = vpop.permute.xlu1 %2600 }
 0x1bf   :  { %v522_v29 = vpop.permute.xlu0 %521  ;;  %4378 = vrsqrt.f32 %v5423_v45  ;;  %v4375_v46 = vpop.eup %4374  ;;  %vm849_vm13 = vcmp.eq.f32.partialorder %v5423_v45, inf  ;;  %vm851_vm15 = vcmp.eq.f32.partialorder %v5423_v45, 0.0  ;;  %vm870_vm0 = vcmp.eq.f32.partialorder %v5435_v20, inf }
 0x1c0   :  { %723 = vrot.lane.b32.xlu1 %v458_v33, %s4617_s28  ;;  %v460_v33 = vmul.f32 %v5236_v18, %v5236_v18  ;;  %v625_v43 = vadd.f32 %v522_v29, %v407_v7  ;;  %4380 = vrsqrt.f32 %v5435_v20  ;;  %v841_v48 = vmul.f32 %v4375_v46, %v5395_v27 }
 0x1c1   :  { %1117 = vrot.lane.b32.xlu0 %v825_v25, %s4618_s16  ;;  %4382 = vrsqrt.f32 %v5441_v2  ;;  %vm872_vm2 = vcmp.eq.f32.partialorder %v5435_v20, 0.0 }
 0x1c2   :  { %v524_v4 = vpop.permute.xlu1 %523  ;;  %v843_v7 = vsel %vm842_vm8, %v5395_v27, %v841_v48  ;;  %v413_v48 = vmul.f32 %v5016_v57, %v5016_v57 }
 0x1c3   :  { %v674_v1 = vpop.permute.xlu0 %673  ;;  %v626_v31 = vadd.f32 %v524_v4, %v409_v59  ;;  %v4377_v59 = vpop.eup %4376 }
 0x1c4   :  { %1119 = vrot.lane.b32.xlu1 %v832_v16, %s4618_s16  ;;  %v5455_v25 = vadd.f32 %v674_v1, %v625_v43  ;;  %v411_v16 = vmul.f32 %v5006_v54, %v5006_v54 }
 0x1c5   :  { %573 = vrot.lane.b32.xlu0 %v460_v33, %s4619_s0 }
 0x1c6   :  { %v676_v30 = vpop.permute.xlu1 %675  ;;  %vm877_vm5 = vcmp.eq.f32.partialorder %v5455_v25, inf  ;;  %vm879_vm7 = vcmp.eq.f32.partialorder %v5455_v25, 0.0 }
 0x1c7   :  { %v5450_v63 = vadd.f32 %v676_v30, %v626_v31  ;;  %v5452_v39 = vpop.permute.xlu0 %2602  ;;  %v855_v31 = vmul.f32 %v4377_v59, %v5418_v35  ;;  %v845_v30 = vand.u32 2147483648, %v5395_v27 }
 0x1c8   :  { %575 = vrot.lane.b32.xlu1 %v462_v38, %s4619_s0 }
 0x1c9   :  { %725 = vrot.lane.b32.xlu0 %v460_v33, %s4617_s28  ;;  %4384 = vrsqrt.f32 %v5450_v63  ;;  %v4379_v4 = vpop.eup %4378  ;;  %v846_v59 = vsel %vm844_vm10, %v845_v30, %v843_v7  ;;  %vm884_vm4 = vcmp.eq.f32.partialorder %v5450_v63, inf  ;;  %vm886_vm6 = vcmp.eq.f32.partialorder %v5450_v63, 0.0 }
 0x1ca   :  { %v5459_v15 = vpop.permute.xlu1 %2604  ;;  %4386 = vrsqrt.f32 %v5455_v25  ;;  %v4381_v43 = vpop.eup %4380  ;;  %v848_v46 = vmul.f32 %v4379_v4, %v5423_v45  ;;  %v857_v4 = vsel %vm856_vm12, %v5418_v35, %v855_v31  ;;  %v415_v31 = vmul.f32 %v5025_v60, %v5025_v60 }
 0x1cb   :  { %7903 = vst [vmem:[#allocation101_spill] sm:$0xff] %v5459_v15  ;;  %v5462_v29 = vpop.permute.xlu0 %2606  ;;  %v869_v27 = vmul.f32 %v4381_v43, %v5435_v20  ;;  %v852_v43 = vand.u32 2147483648, %v5423_v45 }
 0x1cc   :  { %7904 = vst [vmem:[#allocation102_spill] sm:$0xff] %v5462_v29  ;;  %727 = vrot.lane.b32.xlu1 %v462_v38, %s4617_s28  ;;  %v836_v38 = vsel %vm835_vm9, %v5390_v37, %v834_v26  ;;  %v850_v7 = vsel %vm849_vm13, %v5423_v45, %v848_v46 }
 0x1cd   :  { %2610 = vrot.lane.b32.xlu0 %v5020_v58, %s4618_s16  ;;  %v4383_v58 = vpop.eup %4382  ;;  %v839_v29 = vsel %vm837_vm11, %v838_v51, %v836_v38  ;;  %v871_v46 = vsel %vm870_vm0, %v5435_v20, %v869_v27  ;;  %v866_v27 = vand.u32 2147483648, %v5441_v2 }
 0x1ce   :  { %v5470_v33 = vpop.permute.xlu1 %2608  ;;  %v862_v38 = vmul.f32 %v4383_v58, %v5441_v2  ;;  %v853_v58 = vsel %vm851_vm15, %v852_v43, %v850_v7  ;;  %v880_v43 = vand.u32 2147483648, %v5455_v25 }
 0x1cf   :  { %v526_v1 = vpop.permute.xlu0 %525 }
 0x1d0   :  { %2612 = vrot.lane.b32.xlu1 %v5025_v60, %s4618_s16  ;;  %v627_v54 = vadd.f32 %v526_v1, %v411_v16  ;;  %v859_v16 = vand.u32 2147483648, %v5418_v35  ;;  %v873_v35 = vand.u32 2147483648, %v5435_v20 }
 0x1d1   :  { %2614 = vrot.lane.b32.xlu0 %v5028_v61, %s4618_s16 }
 0x1d2   :  { %v528_v15 = vpop.permute.xlu1 %527  ;;  %v860_v51 = vsel %vm858_vm14, %v859_v16, %v857_v4  ;;  %v874_v16 = vsel %vm872_vm2, %v873_v35, %v871_v46 }
 0x1d3   :  { %v678_v26 = vpop.permute.xlu0 %677  ;;  %v4385_v1 = vpop.eup %4384  ;;  %v628_v37 = vadd.f32 %v528_v15, %v413_v48 }
 0x1d4   :  { %v5491_v61 = vadd.f32 %v678_v26, %v627_v54  ;;  %1123 = vrot.lane.b32.xlu1 %v846_v59, %s4618_s16  ;;  %v4387_v54 = vpop.eup %4386  ;;  %v883_v48 = vmul.f32 %v4385_v1, %v5450_v63  ;;  %v864_v26 = vsel %vm863_vm1, %v5441_v2, %v862_v38 }
 0x1d5   :  { %1121 = vrot.lane.b32.xlu0 %v839_v29, %s4618_s16  ;;  %v876_v45 = vmul.f32 %v4387_v54, %v5455_v25  ;;  %v867_v38 = vsel %vm865_vm3, %v866_v27, %v864_v26 }
 0x1d6   :  { %4388 = vrsqrt.f32 %v5491_v61  ;;  %v680_v30 = vpop.permute.xlu1 %679  ;;  %v885_v54 = vsel %vm884_vm4, %v5450_v63, %v883_v48  ;;  %v419_v48 = vmul.f32 %v5038_v0, %v5038_v0  ;;  %vm891_vm8 = vcmp.eq.f32.partialorder %v5491_v61, inf }
 0x1d7   :  { %v5506_v15 = vadd.f32 %v680_v30, %v628_v37  ;;  %v530_v29 = vpop.permute.xlu0 %529  ;;  %v417_v37 = vmul.f32 %v5031_v62, %v5031_v62  ;;  %v887_v30 = vand.u32 2147483648, %v5450_v63  ;;  %vm893_vm9 = vcmp.eq.f32.partialorder %v5491_v61, 0.0 }
 0x1d8   :  { %1127 = vrot.lane.b32.xlu1 %v860_v51, %s4618_s16  ;;  %v629_v59 = vadd.f32 %v530_v29, %v415_v31  ;;  %v878_v31 = vsel %vm877_vm5, %v5455_v25, %v876_v45 }
 0x1d9   :  { %4390 = vrsqrt.f32 %v5506_v15  ;;  %1125 = vrot.lane.b32.xlu0 %v853_v58, %s4618_s16  ;;  %v888_v58 = vsel %vm886_vm6, %v887_v30, %v885_v54  ;;  %v881_v35 = vsel %vm879_vm7, %v880_v43, %v878_v31  ;;  %vm898_vm10 = vcmp.eq.f32.partialorder %v5506_v15, inf }
 0x1da   :  { %v532_v4 = vpop.permute.xlu1 %531  ;;  %vm900_vm11 = vcmp.eq.f32.partialorder %v5506_v15, 0.0 }
 0x1db   :  { %v682_v1 = vpop.permute.xlu0 %681  ;;  %v630_v20 = vadd.f32 %v532_v4, %v417_v37  ;;  %v421_v4 = vmul.f32 %v5048_v3, %v5048_v3 }
 0x1dc   :  { %v5525_v7 = vadd.f32 %v682_v1, %v629_v59  ;;  %1131 = vrot.lane.b32.xlu1 %v874_v16, %s4618_s16  ;;  %v894_v59 = vand.u32 2147483648, %v5491_v61 }
 0x1dd   :  { %1129 = vrot.lane.b32.xlu0 %v867_v38, %s4618_s16 }
 0x1de   :  { %4392 = vrsqrt.f32 %v5525_v7  ;;  %v684_v2 = vpop.permute.xlu1 %683  ;;  %vm905_vm12 = vcmp.eq.f32.partialorder %v5525_v7, inf  ;;  %vm907_vm13 = vcmp.eq.f32.partialorder %v5525_v7, 0.0 }
 0x1df   :  { %v5536_v29 = vadd.f32 %v684_v2, %v630_v20  ;;  %v534_v51 = vpop.permute.xlu0 %533  ;;  %v901_v20 = vand.u32 2147483648, %v5506_v15 }
 0x1e0   :  { %v4389_v46 = vpop.eup %4388  ;;  %1135 = vrot.lane.b32.xlu1 %v888_v58, %s4618_s16  ;;  %v631_v26 = vadd.f32 %v534_v51, %v419_v48  ;;  %v423_v58 = vmul.f32 %v5057_v6, %v5057_v6 }
 0x1e1   :  { %4394 = vrsqrt.f32 %v5536_v29  ;;  %1133 = vrot.lane.b32.xlu0 %v881_v35, %s4618_s16  ;;  %v890_v63 = vmul.f32 %v4389_v46, %v5491_v61  ;;  %vm912_vm14 = vcmp.eq.f32.partialorder %v5536_v29, inf  ;;  %vm914_vm15 = vcmp.eq.f32.partialorder %v5536_v29, 0.0 }
 0x1e2   :  { %v536_v45 = vpop.permute.xlu1 %535 }
 0x1e3   :  { %v4391_v25 = vpop.eup %4390  ;;  %v686_v27 = vpop.permute.xlu0 %685  ;;  %v892_v37 = vsel %vm891_vm8, %v5491_v61, %v890_v63  ;;  %v632_v54 = vadd.f32 %v536_v45, %v421_v4  ;;  %v908_v63 = vand.u32 2147483648, %v5525_v7 }
 0x1e4   :  { %v783_v1 = vadd.f32 %v686_v27, %v631_v26  ;;  %v895_v16 = vsel %vm893_vm9, %v894_v59, %v892_v37  ;;  %v897_v38 = vmul.f32 %v4391_v25, %v5506_v15 }
 0x1e5   :  { %1137 = vrot.lane.b32.xlu0 %v895_v16, %s4618_s16  ;;  %v915_v16 = vand.u32 2147483648, %v5536_v29 }
 0x1e6   :  { %4396 = vrsqrt.f32 %v783_v1  ;;  %v688_v30 = vpop.permute.xlu1 %687  ;;  %v899_v31 = vsel %vm898_vm10, %v5506_v15, %v897_v38  ;;  %v425_v15 = vmul.f32 %v5063_v9, %v5063_v9  ;;  %vm919_vm0 = vcmp.eq.f32.partialorder %v783_v1, inf }
 0x1e7   :  { %v784_v2 = vadd.f32 %v688_v30, %v632_v54  ;;  %v538_v43 = vpop.permute.xlu0 %537  ;;  %v902_v61 = vsel %vm900_vm11, %v901_v20, %v899_v31  ;;  %vm921_vm1 = vcmp.eq.f32.partialorder %v783_v1, 0.0 }
 0x1e8   :  { %v4393_v51 = vpop.eup %4392  ;;  %1139 = vrot.lane.b32.xlu1 %v902_v61, %s4618_s16  ;;  %v633_v48 = vadd.f32 %v538_v43, %v423_v58  ;;  %v427_v43 = vmul.f32 %v5070_v11, %v5070_v11 }
 0x1e9   :  { %4398 = vrsqrt.f32 %v784_v2  ;;  %v904_v46 = vmul.f32 %v4393_v51, %v5525_v7  ;;  %vm926_vm2 = vcmp.eq.f32.partialorder %v784_v2, inf  ;;  %vm928_vm3 = vcmp.eq.f32.partialorder %v784_v2, 0.0 }
 0x1ea   :  { %v540_v35 = vpop.permute.xlu1 %539 }
 0x1eb   :  { %v4395_v26 = vpop.eup %4394  ;;  %v690_v45 = vpop.permute.xlu0 %689  ;;  %v906_v59 = vsel %vm905_vm12, %v5525_v7, %v904_v46  ;;  %v634_v37 = vadd.f32 %v540_v35, %v425_v15  ;;  %v922_v46 = vand.u32 2147483648, %v783_v1  ;;  %v429_v35 = vmul.f32 %v5080_v14, %v5080_v14 }
 0x1ec   :  { %v785_v25 = vadd.f32 %v690_v45, %v633_v48  ;;  %v909_v4 = vsel %vm907_vm13, %v908_v63, %v906_v59  ;;  %v911_v27 = vmul.f32 %v4395_v26, %v5536_v29 }
 0x1ed   :  { %1141 = vrot.lane.b32.xlu0 %v909_v4, %s4618_s16  ;;  %v929_v4 = vand.u32 2147483648, %v784_v2 }
 0x1ee   :  { %4400 = vrsqrt.f32 %v785_v25  ;;  %v692_v38 = vpop.permute.xlu1 %691  ;;  %v913_v54 = vsel %vm912_vm14, %v5536_v29, %v911_v27  ;;  %vm933_vm4 = vcmp.eq.f32.partialorder %v785_v25, inf  ;;  %vm935_vm5 = vcmp.eq.f32.partialorder %v785_v25, 0.0 }
 0x1ef   :  { %v786_v20 = vadd.f32 %v692_v38, %v634_v37  ;;  %v542_v30 = vpop.permute.xlu0 %541  ;;  %v916_v7 = vsel %vm914_vm15, %v915_v16, %v913_v54 }
 0x1f0   :  { %v4397_v31 = vpop.eup %4396  ;;  %1143 = vrot.lane.b32.xlu1 %v916_v7, %s4618_s16  ;;  %v635_v51 = vadd.f32 %v542_v30, %v427_v43  ;;  %v431_v7 = vmul.f32 %v5089_v17, %v5089_v17 }
 0x1f1   :  { %4402 = vrsqrt.f32 %v786_v20  ;;  %v918_v61 = vmul.f32 %v4397_v31, %v783_v1  ;;  %vm940_vm6 = vcmp.eq.f32.partialorder %v786_v20, inf  ;;  %vm942_vm7 = vcmp.eq.f32.partialorder %v786_v20, 0.0 }
 0x1f2   :  { %v544_v58 = vpop.permute.xlu1 %543 }
 0x1f3   :  { %v4399_v48 = vpop.eup %4398  ;;  %v694_v29 = vpop.permute.xlu0 %693  ;;  %v920_v63 = vsel %vm919_vm0, %v783_v1, %v918_v61  ;;  %v636_v59 = vadd.f32 %v544_v58, %v429_v35  ;;  %v936_v61 = vand.u32 2147483648, %v785_v25  ;;  %v433_v58 = vmul.f32 %v5095_v19, %v5095_v19 }
 0x1f4   :  { %v787_v26 = vadd.f32 %v694_v29, %v635_v51  ;;  %v923_v15 = vsel %vm921_vm1, %v922_v46, %v920_v63  ;;  %v925_v45 = vmul.f32 %v4399_v48, %v784_v2 }
 0x1f5   :  { %1145 = vrot.lane.b32.xlu0 %v923_v15, %s4618_s16  ;;  %v943_v15 = vand.u32 2147483648, %v786_v20 }
 0x1f6   :  { %4404 = vrsqrt.f32 %v787_v26  ;;  %v696_v27 = vpop.permute.xlu1 %695  ;;  %v927_v37 = vsel %vm926_vm2, %v784_v2, %v925_v45  ;;  %vm947_vm8 = vcmp.eq.f32.partialorder %v787_v26, inf  ;;  %vm949_vm9 = vcmp.eq.f32.partialorder %v787_v26, 0.0 }
 0x1f7   :  { %v788_v16 = vadd.f32 %v696_v27, %v636_v59  ;;  %v546_v38 = vpop.permute.xlu0 %545  ;;  %v930_v54 = vsel %vm928_vm3, %v929_v4, %v927_v37 }
 0x1f8   :  { %v4401_v30 = vpop.eup %4400  ;;  %1147 = vrot.lane.b32.xlu1 %v930_v54, %s4618_s16  ;;  %v637_v31 = vadd.f32 %v546_v38, %v431_v7  ;;  %v435_v54 = vmul.f32 %v5102_v21, %v5102_v21 }
 0x1f9   :  { %4406 = vrsqrt.f32 %v788_v16  ;;  %v932_v1 = vmul.f32 %v4401_v30, %v785_v25  ;;  %vm954_vm10 = vcmp.eq.f32.partialorder %v788_v16, inf  ;;  %vm956_vm11 = vcmp.eq.f32.partialorder %v788_v16, 0.0 }
 0x1fa   :  { %v548_v43 = vpop.permute.xlu1 %547 }
 0x1fb   :  { %v4403_v51 = vpop.eup %4402  ;;  %v698_v2 = vpop.permute.xlu0 %697  ;;  %v934_v46 = vsel %vm933_vm4, %v785_v25, %v932_v1  ;;  %v638_v63 = vadd.f32 %v548_v43, %v433_v58  ;;  %v950_v1 = vand.u32 2147483648, %v787_v26  ;;  %v437_v43 = vmul.f32 %v5112_v24, %v5112_v24 }
 0x1fc   :  { %v789_v48 = vadd.f32 %v698_v2, %v637_v31  ;;  %v937_v35 = vsel %vm935_vm5, %v936_v61, %v934_v46  ;;  %v939_v29 = vmul.f32 %v4403_v51, %v786_v20 }
 0x1fd   :  { %1149 = vrot.lane.b32.xlu0 %v937_v35, %s4618_s16  ;;  %v957_v35 = vand.u32 2147483648, %v788_v16 }
 0x1fe   :  { %4408 = vrsqrt.f32 %v789_v48  ;;  %v700_v45 = vpop.permute.xlu1 %699  ;;  %v941_v59 = vsel %vm940_vm6, %v786_v20, %v939_v29  ;;  %vm961_vm12 = vcmp.eq.f32.partialorder %v789_v48, inf  ;;  %vm963_vm13 = vcmp.eq.f32.partialorder %v789_v48, 0.0 }
 0x1ff   :  { %v790_v4 = vadd.f32 %v700_v45, %v638_v63  ;;  %v550_v27 = vpop.permute.xlu0 %549  ;;  %v944_v37 = vsel %vm942_vm7, %v943_v15, %v941_v59 }
 0x200   :  { %v4405_v38 = vpop.eup %4404  ;;  %1151 = vrot.lane.b32.xlu1 %v944_v37, %s4618_s16  ;;  %v639_v30 = vadd.f32 %v550_v27, %v435_v54  ;;  %v439_v37 = vmul.f32 %v5121_v34, %v5121_v34 }
 0x201   :  { %4410 = vrsqrt.f32 %v790_v4  ;;  %v946_v25 = vmul.f32 %v4405_v38, %v787_v26  ;;  %vm968_vm14 = vcmp.eq.f32.partialorder %v790_v4, inf  ;;  %vm970_vm15 = vcmp.eq.f32.partialorder %v790_v4, 0.0 }
 0x202   :  { %v552_v7 = vpop.permute.xlu1 %551 }
 0x203   :  { %v4407_v31 = vpop.eup %4406  ;;  %v702_v20 = vpop.permute.xlu0 %701  ;;  %v948_v61 = vsel %vm947_vm8, %v787_v26, %v946_v25  ;;  %v640_v46 = vadd.f32 %v552_v7, %v437_v43  ;;  %v964_v25 = vand.u32 2147483648, %v789_v48  ;;  %v441_v7 = vmul.f32 %v5129_v49, %v5129_v49 }
 0x204   :  { %v791_v51 = vadd.f32 %v702_v20, %v639_v30  ;;  %v951_v58 = vsel %vm949_vm9, %v950_v1, %v948_v61  ;;  %v953_v2 = vmul.f32 %v4407_v31, %v788_v16 }
 0x205   :  { %1153 = vrot.lane.b32.xlu0 %v951_v58, %s4618_s16  ;;  %v971_v58 = vand.u32 2147483648, %v790_v4 }
 0x206   :  { %4412 = vrsqrt.f32 %v791_v51  ;;  %v704_v29 = vpop.permute.xlu1 %703  ;;  %v955_v63 = vsel %vm954_vm10, %v788_v16, %v953_v2  ;;  %vm975_vm0 = vcmp.eq.f32.partialorder %v791_v51, inf  ;;  %vm977_vm1 = vcmp.eq.f32.partialorder %v791_v51, 0.0 }
 0x207   :  { %v792_v15 = vadd.f32 %v704_v29, %v640_v46  ;;  %v554_v45 = vpop.permute.xlu0 %553  ;;  %v958_v59 = vsel %vm956_vm11, %v957_v35, %v955_v63 }
 0x208   :  { %v4409_v27 = vpop.eup %4408  ;;  %1155 = vrot.lane.b32.xlu1 %v958_v59, %s4618_s16  ;;  %v641_v38 = vadd.f32 %v554_v45, %v439_v37  ;;  %v443_v59 = vmul.f32 %v5139_v5, %v5139_v5 }
 0x209   :  { %4414 = vrsqrt.f32 %v792_v15  ;;  %v960_v26 = vmul.f32 %v4409_v27, %v789_v48  ;;  %vm982_vm2 = vcmp.eq.f32.partialorder %v792_v15, inf  ;;  %vm984_vm3 = vcmp.eq.f32.partialorder %v792_v15, 0.0 }
 0x20a   :  { %v556_v54 = vpop.permute.xlu1 %555 }
 0x20b   :  { %v4411_v30 = vpop.eup %4410  ;;  %v706_v16 = vpop.permute.xlu0 %705  ;;  %v962_v1 = vsel %vm961_vm12, %v789_v48, %v960_v26  ;;  %v642_v61 = vadd.f32 %v556_v54, %v441_v7  ;;  %v978_v26 = vand.u32 2147483648, %v791_v51  ;;  %v445_v54 = vmul.f32 %v5151_v55, %v5151_v55 }
 0x20c   :  { %v793_v31 = vadd.f32 %v706_v16, %v641_v38  ;;  %v965_v43 = vsel %vm963_vm13, %v964_v25, %v962_v1  ;;  %v967_v20 = vmul.f32 %v4411_v30, %v790_v4  ;;  %vm1189_vm12 = vcmask 261120  }
 0x20d   :  { %1157 = vrot.lane.b32.xlu0 %v965_v43, %s4618_s16  ;;  %v985_v43 = vand.u32 2147483648, %v792_v15 }
 0x20e   :  { %4416 = vrsqrt.f32 %v793_v31  ;;  %v708_v2 = vpop.permute.xlu1 %707  ;;  %v969_v46 = vsel %vm968_vm14, %v790_v4, %v967_v20  ;;  %vm989_vm4 = vcmp.eq.f32.partialorder %v793_v31, inf  ;;  %vm991_vm5 = vcmp.eq.f32.partialorder %v793_v31, 0.0 }
 0x20f   :  { %v794_v35 = vadd.f32 %v708_v2, %v642_v61  ;;  %v558_v29 = vpop.permute.xlu0 %557  ;;  %v972_v63 = vsel %vm970_vm15, %v971_v58, %v969_v46 }
 0x210   :  { %v4413_v45 = vpop.eup %4412  ;;  %1159 = vrot.lane.b32.xlu1 %v972_v63, %s4618_s16  ;;  %v643_v27 = vadd.f32 %v558_v29, %v443_v59  ;;  %v7905_v63 = vld [vmem:[#allocation69_spill] sm:$0xff] }
 0x211   :  { %4418 = vrsqrt.f32 %v794_v35  ;;  %v974_v48 = vmul.f32 %v4413_v45, %v791_v51  ;;  %v447_v45 = vmul.f32 %v7905_v63, %v7905_v63  ;;  %vm996_vm6 = vcmp.eq.f32.partialorder %v794_v35, inf }
 0x212   :  { %v560_v37 = vpop.permute.xlu1 %559  ;;  %vm998_vm7 = vcmp.eq.f32.partialorder %v794_v35, 0.0 }
 0x213   :  { %v4415_v38 = vpop.eup %4414  ;;  %v710_v4 = vpop.permute.xlu0 %709  ;;  %v976_v25 = vsel %vm975_vm0, %v791_v51, %v974_v48  ;;  %v644_v1 = vadd.f32 %v560_v37, %v445_v54 }
 0x214   :  { %v795_v30 = vadd.f32 %v710_v4, %v643_v27  ;;  %v979_v7 = vsel %vm977_vm1, %v978_v26, %v976_v25  ;;  %v981_v16 = vmul.f32 %v4415_v38, %v792_v15  ;;  %v992_v27 = vand.u32 2147483648, %v793_v31  ;;  %v7906_v26 = vld [vmem:[#allocation71_spill] sm:$0xff] }
 0x215   :  { %1161 = vrot.lane.b32.xlu0 %v979_v7, %s4618_s16  ;;  %v449_v38 = vmul.f32 %v7906_v26, %v7906_v26 }
 0x216   :  { %4420 = vrsqrt.f32 %v795_v30  ;;  %v712_v20 = vpop.permute.xlu1 %711  ;;  %v983_v61 = vsel %vm982_vm2, %v792_v15, %v981_v16  ;;  %vm1003_vm8 = vcmp.eq.f32.partialorder %v795_v30, inf  ;;  %vm1005_vm9 = vcmp.eq.f32.partialorder %v795_v30, 0.0 }
 0x217   :  { %v796_v58 = vadd.f32 %v712_v20, %v644_v1  ;;  %v562_v2 = vpop.permute.xlu0 %561  ;;  %v986_v46 = vsel %vm984_vm3, %v985_v43, %v983_v61  ;;  %v999_v1 = vand.u32 2147483648, %v794_v35 }
 0x218   :  { %v4417_v29 = vpop.eup %4416  ;;  %1163 = vrot.lane.b32.xlu1 %v986_v46, %s4618_s16  ;;  %v645_v59 = vadd.f32 %v562_v2, %v447_v45  ;;  %v7907_v45 = vld [vmem:[#allocation75_spill] sm:$0xff] }
 0x219   :  { %4422 = vrsqrt.f32 %v796_v58  ;;  %v988_v51 = vmul.f32 %v4417_v29, %v793_v31  ;;  %vm1010_vm10 = vcmp.eq.f32.partialorder %v796_v58, inf  ;;  %vm1012_vm11 = vcmp.eq.f32.partialorder %v796_v58, 0.0 }
 0x21a   :  { %v564_v48 = vpop.permute.xlu1 %563 }
 0x21b   :  { %v4419_v37 = vpop.eup %4418  ;;  %v714_v15 = vpop.permute.xlu0 %713  ;;  %v990_v54 = vsel %vm989_vm4, %v793_v31, %v988_v51  ;;  %v646_v16 = vadd.f32 %v564_v48, %v449_v38  ;;  %v451_v51 = vmul.f32 %v7907_v45, %v7907_v45  ;;  %v7908_v38 = vld [vmem:[#allocation77_spill] sm:$0xff] }
 0x21c   :  { %v797_v4 = vadd.f32 %v714_v15, %v645_v59  ;;  %v993_v25 = vsel %vm991_vm5, %v992_v27, %v990_v54  ;;  %v995_v7 = vmul.f32 %v4419_v37, %v794_v35  ;;  %v1006_v27 = vand.u32 2147483648, %v795_v30 }
 0x21d   :  { %1165 = vrot.lane.b32.xlu0 %v993_v25, %s4618_s16  ;;  %v453_v15 = vmul.f32 %v7908_v38, %v7908_v38 }
 0x21e   :  { %4424 = vrsqrt.f32 %v797_v4  ;;  %v716_v43 = vpop.permute.xlu1 %715  ;;  %v997_v20 = vsel %vm996_vm6, %v794_v35, %v995_v7  ;;  %vm1017_vm13 = vcmp.eq.f32.partialorder %v797_v4, inf  ;;  %vm1019_vm14 = vcmp.eq.f32.partialorder %v797_v4, 0.0 }
 0x21f   :  { %v798_v61 = vadd.f32 %v716_v43, %v646_v16  ;;  %v566_v2 = vpop.permute.xlu0 %565  ;;  %v1000_v46 = vsel %vm998_vm7, %v999_v1, %v997_v20  ;;  %v1013_v43 = vand.u32 2147483648, %v796_v58 }
 0x220   :  { %v4421_v29 = vpop.eup %4420  ;;  %1167 = vrot.lane.b32.xlu1 %v1000_v46, %s4618_s16  ;;  %v647_v59 = vadd.f32 %v566_v2, %v451_v51 }
 0x221   :  { %4426 = vrsqrt.f32 %v798_v61  ;;  %v1002_v31 = vmul.f32 %v4421_v29, %v795_v30  ;;  %vm1024_vm15 = vcmp.eq.f32.partialorder %v798_v61, inf  ;;  %vm1026_vm0 = vcmp.eq.f32.partialorder %v798_v61, 0.0 }
 0x222   :  { %v568_v48 = vpop.permute.xlu1 %567 }
 0x223   :  { %v4423_v37 = vpop.eup %4422  ;;  %v718_v35 = vpop.permute.xlu0 %717  ;;  %v1004_v54 = vsel %vm1003_vm8, %v795_v30, %v1002_v31  ;;  %v648_v1 = vadd.f32 %v568_v48, %v453_v15 }
 0x224   :  { %v799_v25 = vadd.f32 %v718_v35, %v647_v59  ;;  %v1007_v7 = vsel %vm1005_vm9, %v1006_v27, %v1004_v54  ;;  %v1009_v16 = vmul.f32 %v4423_v37, %v796_v58  ;;  %v1020_v59 = vand.u32 2147483648, %v797_v4 }
 0x225   :  { %1169 = vrot.lane.b32.xlu0 %v1007_v7, %s4618_s16  ;;  %v1027_v7 = vand.u32 2147483648, %v798_v61 }
 0x226   :  { %4428 = vrsqrt.f32 %v799_v25  ;;  %v720_v20 = vpop.permute.xlu1 %719  ;;  %v1011_v2 = vsel %vm1010_vm10, %v796_v58, %v1009_v16  ;;  %v7909_v58 = vld [vmem:[#allocation81_spill] sm:$0xff]  ;;  %vm1031_vm1 = vcmp.eq.f32.partialorder %v799_v25, inf  ;;  %vm1033_vm2 = vcmp.eq.f32.partialorder %v799_v25, 0.0 }
 0x227   :  { %v800_v46 = vadd.f32 %v720_v20, %v648_v1  ;;  %v1114_v29 = vpop.permute.xlu0 %1113  ;;  %v1014_v51 = vsel %vm1012_vm11, %v1013_v43, %v1011_v2  ;;  %v455_v15 = vmul.f32 %v7909_v58, %v7909_v58  ;;  %v7910_v43 = vld [vmem:[#allocation83_spill] sm:$0xff] }
 0x228   :  { %v4425_v60 = vpop.eup %4424  ;;  %4187 = vmatprep.mubr.msk.f32.mxu1 %vm1189_vm12, %v1114_v29  ;;  %1171 = vrot.lane.b32.xlu1 %v1014_v51, %s4618_s16  ;;  %v457_v20 = vmul.f32 %v7910_v43, %v7910_v43 }
 0x229   :  { %4430 = vrsqrt.f32 %v800_v46  ;;  %v1016_v30 = vmul.f32 %v4425_v60, %v797_v4  ;;  %vm1038_vm3 = vcmp.eq.f32.partialorder %v800_v46, inf  ;;  %vm1040_vm4 = vcmp.eq.f32.partialorder %v800_v46, 0.0 }
 0x22a   :  { %v1116_v31 = vpop.permute.xlu1 %1115 }
 0x22b   :  { %v4427_v48 = vpop.eup %4426  ;;  %4188 = vmatmul.mubr.msk.f32.vlgmr.msra.gmra.mrb[0].mxu1 %vm1189_vm12, %v1116_v31  ;;  %v570_v27 = vpop.permute.xlu0 %569  ;;  %v1018_v37 = vsel %vm1017_vm13, %v797_v4, %v1016_v30 }
 0x22c   :  { %v1021_v35 = vsel %vm1019_vm14, %v1020_v59, %v1018_v37  ;;  %v1023_v54 = vmul.f32 %v4427_v48, %v798_v61  ;;  %v649_v16 = vadd.f32 %v570_v27, %v455_v15  ;;  %v1034_v48 = vand.u32 2147483648, %v799_v25 }
 0x22d   :  { %1173 = vrot.lane.b32.xlu0 %v1021_v35, %s4618_s16  ;;  %vm3658_vm14 = vcmask 523264  }
 0x22e   :  { %v572_v60 = vpop.permute.xlu1 %571  ;;  %v1025_v1 = vsel %vm1024_vm15, %v798_v61, %v1023_v54 }
 0x22f   :  { %v722_v2 = vpop.permute.xlu0 %721  ;;  %v1028_v29 = vsel %vm1026_vm0, %v1027_v7, %v1025_v1  ;;  %v650_v30 = vadd.f32 %v572_v60, %v457_v20  ;;  %v1041_v7 = vand.u32 2147483648, %v800_v46 }
 0x230   :  { %v4429_v51 = vpop.eup %4428  ;;  %v801_v4 = vadd.f32 %v722_v2, %v649_v16  ;;  %1175 = vrot.lane.b32.xlu1 %v1028_v29, %s4618_s16  ;;  %v7911_v2 = vld [vmem:[#allocation86_spill] sm:$0xff] }
 0x231   :  { %v1030_v31 = vmul.f32 %v4429_v51, %v799_v25  ;;  %v459_v29 = vmul.f32 %v7911_v2, %v7911_v2 }
 0x232   :  { %4432 = vrsqrt.f32 %v801_v4  ;;  %v724_v59 = vpop.permute.xlu1 %723  ;;  %vm1045_vm5 = vcmp.eq.f32.partialorder %v801_v4, inf  ;;  %vm1047_vm6 = vcmp.eq.f32.partialorder %v801_v4, 0.0 }
 0x233   :  { %v4431_v37 = vpop.eup %4430  ;;  %v802_v27 = vadd.f32 %v724_v59, %v650_v30  ;;  %v1118_v15 = vpop.permute.xlu0 %1117  ;;  %v1032_v35 = vsel %vm1031_vm1, %v799_v25, %v1030_v31  ;;  %v7912_v30 = vld [vmem:[#allocation90_spill] sm:$0xff] }
 0x234   :  { %4190 = vmatprep.mubr.msk.f32.mxu1 %vm1189_vm12, %v1118_v15  ;;  %v1035_v61 = vsel %vm1033_vm2, %v1034_v48, %v1032_v35  ;;  %v1037_v54 = vmul.f32 %v4431_v37, %v800_v46  ;;  %v461_v31 = vmul.f32 %v7912_v30, %v7912_v30 }
 0x235   :  { %4434 = vrsqrt.f32 %v802_v27  ;;  %1177 = vrot.lane.b32.xlu0 %v1035_v61, %s4618_s16  ;;  %v1048_v61 = vand.u32 2147483648, %v801_v4  ;;  %vm1052_vm7 = vcmp.eq.f32.partialorder %v802_v27, inf  ;;  %vm1054_vm8 = vcmp.eq.f32.partialorder %v802_v27, 0.0 }
 0x236   :  { %v1120_v16 = vpop.permute.xlu1 %1119  ;;  %v1039_v60 = vsel %vm1038_vm3, %v800_v46, %v1037_v54 }
 0x237   :  { %4191 = vmatmul.mubr.msk.f32.gmra.mrb[2].mxu1 %vm1189_vm12, %v1120_v16  ;;  %v574_v1 = vpop.permute.xlu0 %573  ;;  %v1042_v20 = vsel %vm1040_vm4, %v1041_v7, %v1039_v60 }
 0x238   :  { %1179 = vrot.lane.b32.xlu1 %v1042_v20, %s4618_s16  ;;  %v651_v25 = vadd.f32 %v574_v1, %v459_v29  ;;  %v1055_v29 = vand.u32 2147483648, %v802_v27 }
 0x23a   :  { %v576_v51 = vpop.permute.xlu1 %575 }
 0x23b   :  { %v726_v59 = vpop.permute.xlu0 %725  ;;  %v652_v15 = vadd.f32 %v576_v51, %v461_v31 }
 0x23c   :  { %v4433_v48 = vpop.eup %4432  ;;  %v803_v37 = vadd.f32 %v726_v59, %v651_v25 }
 0x23d   :  { %v1044_v35 = vmul.f32 %v4433_v48, %v801_v4 }
 0x23e   :  { %4436 = vrsqrt.f32 %v803_v37  ;;  %v728_v46 = vpop.permute.xlu1 %727  ;;  %vm1059_vm9 = vcmp.eq.f32.partialorder %v803_v37, inf  ;;  %vm1061_vm10 = vcmp.eq.f32.partialorder %v803_v37, 0.0 }
 0x23f   :  { %v4435_v54 = vpop.eup %4434  ;;  %v804_v7 = vadd.f32 %v728_v46, %v652_v15  ;;  %v5632_v16 = vpop.permute.xlu0 %2610  ;;  %v1046_v60 = vsel %vm1045_vm5, %v801_v4, %v1044_v35 }
 0x240   :  { %v1049_v1 = vsel %vm1047_vm6, %v1048_v61, %v1046_v60  ;;  %v1051_v20 = vmul.f32 %v4435_v54, %v802_v27  ;;  %v1062_v61 = vand.u32 2147483648, %v803_v37 }
 0x241   :  { %4438 = vrsqrt.f32 %v804_v7  ;;  %1181 = vrot.lane.b32.xlu0 %v1049_v1, %s4618_s16  ;;  %vm1066_vm11 = vcmp.eq.f32.partialorder %v804_v7, inf  ;;  %vm1068_vm13 = vcmp.eq.f32.partialorder %v804_v7, 0.0 }
 0x242   :  { %v5635_v25 = vpop.permute.xlu1 %2612  ;;  %v1053_v51 = vsel %vm1052_vm7, %v802_v27, %v1051_v20 }
 0x243   :  { %v5637_v31 = vpop.permute.xlu0 %2614  ;;  %v1056_v59 = vsel %vm1054_vm8, %v1055_v29, %v1053_v51  ;;  %v1069_v29 = vand.u32 2147483648, %v804_v7 }
 0x244   :  { %1183 = vrot.lane.b32.xlu1 %v1056_v59, %s4618_s16 }
 0x246   :  { %v1124_v48 = vpop.permute.xlu1 %1123 }
 0x247   :  { %v1122_v15 = vpop.permute.xlu0 %1121 }
 0x248   :  { %v4437_v35 = vpop.eup %4436  ;;  %4193 = vmatprep.mubr.msk.f32.mxu1 %vm1189_vm12, %v1122_v15 }
 0x249   :  { %4194 = vmatmul.mubr.msk.f32.gmra.mrb[4].mxu1 %vm1189_vm12, %v1124_v48  ;;  %v1058_v4 = vmul.f32 %v4437_v35, %v803_v37 }
 0x24a   :  { %v1128_v46 = vpop.permute.xlu1 %1127 }
 0x24b   :  { %v4439_v54 = vpop.eup %4438  ;;  %v1126_v60 = vpop.permute.xlu0 %1125  ;;  %v1060_v1 = vsel %vm1059_vm9, %v803_v37, %v1058_v4  ;;  %v7913_v37 = vld [vmem:[#allocation36_spill] sm:$0xff] }
 0x24c   :  { %4196 = vmatprep.mubr.msk.f32.mxu1 %vm1189_vm12, %v1126_v60  ;;  %v1063_v27 = vsel %vm1061_vm10, %v1062_v61, %v1060_v1  ;;  %v1065_v20 = vmul.f32 %v4439_v54, %v804_v7  ;;  %v7915_v61 = vld [vmem:[#allocation40_spill] sm:$0xff]  ;;  %v7916_v60 = vld [vmem:[#allocation42_spill] sm:$0xff] }
 0x24d   :  { %1185 = vrot.lane.b32.xlu0 %v1063_v27, %s4618_s16  ;;  %4197 = vmatmul.mubr.msk.f32.gmra.mrb[6].mxu1 %vm1189_vm12, %v1128_v46  ;;  %v7917_v27 = vld [vmem:[#allocation44_spill] sm:$0xff] }
 0x24e   :  { %v1132_v51 = vpop.permute.xlu1 %1131  ;;  %v1067_v59 = vsel %vm1066_vm11, %v804_v7, %v1065_v20  ;;  %v7914_v7 = vld [vmem:[#allocation38_spill] sm:$0xff] }
 0x24f   :  { %v1130_v48 = vpop.permute.xlu0 %1129  ;;  %v1070_v15 = vsel %vm1068_vm13, %v1069_v29, %v1067_v59  ;;  %v7918_v29 = vld [vmem:[#allocation46_spill] sm:$0xff]  ;;  %v7919_v59 = vld [vmem:[#allocation48_spill] sm:$0xff] }
 0x250   :  { %1187 = vrot.lane.b32.xlu1 %v1070_v15, %s4618_s16  ;;  %4199 = vmatprep.mubr.msk.f32.mxu1 %vm1189_vm12, %v1130_v48  ;;  %v7920_v15 = vld [vmem:[#allocation50_spill] sm:$0xff] }
 0x251   :  { %2618 = vrot.lane.b32.xlu0 %v7913_v37, %s4618_s16  ;;  %4200 = vmatmul.mubr.msk.f32.gmra.mrb[8].mxu1 %vm1189_vm12, %v1132_v51 }
 0x252   :  { %v1136_v4 = vpop.permute.xlu1 %1135 }
 0x253   :  { %v1134_v35 = vpop.permute.xlu0 %1133 }
 0x254   :  { %2616 = vrot.lane.b32.xlu1 %v5031_v62, %s4618_s16  ;;  %4202 = vmatprep.mubr.msk.f32.mxu1 %vm1189_vm12, %v1134_v35 }
 0x255   :  { %2622 = vrot.lane.b32.xlu0 %v7914_v7, %s4618_s16  ;;  %4203 = vmatmul.mubr.msk.f32.gmra.mrb[10].mxu1 %vm1189_vm12, %v1136_v4  ;;  %v7921_v4 = vld [vmem:[#allocation52_spill] sm:$0xff] }
 0x257   :  { %v1138_v46 = vpop.permute.xlu0 %1137 }
 0x258   :  { %2620 = vrot.lane.b32.xlu1 %v5038_v0, %s4618_s16  ;;  %4205 = vmatprep.mubr.msk.f32.mxu1 %vm1189_vm12, %v1138_v46 }
 0x259   :  { %2626 = vrot.lane.b32.xlu0 %v7915_v61, %s4618_s16 }
 0x25a   :  { %v1140_v54 = vpop.permute.xlu1 %1139 }
 0x25b   :  { %4206 = vmatmul.mubr.msk.f32.gmra.mrb[12].mxu1 %vm1189_vm12, %v1140_v54  ;;  %v7922_v54 = vld [vmem:[#allocation54_spill] sm:$0xff] }
 0x25c   :  { %2624 = vrot.lane.b32.xlu1 %v5048_v3, %s4618_s16 }
 0x25d   :  { %2630 = vrot.lane.b32.xlu0 %v7916_v60, %s4618_s16 }
 0x25f   :  { %v1142_v1 = vpop.permute.xlu0 %1141 }
 0x260   :  { %2628 = vrot.lane.b32.xlu1 %v5057_v6, %s4618_s16  ;;  %4208 = vmatprep.mubr.msk.f32.mxu1 %vm1189_vm12, %v1142_v1 }
 0x261   :  { %2634 = vrot.lane.b32.xlu0 %v7917_v27, %s4618_s16 }
 0x262   :  { %v1144_v20 = vpop.permute.xlu1 %1143 }
 0x263   :  { %4209 = vmatmul.mubr.msk.f32.gmra.mrb[14].mxu1 %vm1189_vm12, %v1144_v20  ;;  %v7923_v20 = vld [vmem:[#allocation56_spill] sm:$0xff] }
 0x264   :  { %2632 = vrot.lane.b32.xlu1 %v5063_v9, %s4618_s16 }
 0x265   :  { %2638 = vrot.lane.b32.xlu0 %v7918_v29, %s4618_s16 }
 0x267   :  { %v1146_v51 = vpop.permute.xlu0 %1145 }
 0x268   :  { %2636 = vrot.lane.b32.xlu1 %v5070_v11, %s4618_s16  ;;  %4211 = vmatprep.mubr.msk.f32.mxu1 %vm1189_vm12, %v1146_v51 }
 0x269   :  { %2642 = vrot.lane.b32.xlu0 %v7919_v59, %s4618_s16 }
 0x26a   :  { %v1148_v48 = vpop.permute.xlu1 %1147 }
 0x26b   :  { %4212 = vmatmul.mubr.msk.f32.gmra.mrb[16].mxu1 %vm1189_vm12, %v1148_v48  ;;  %v7924_v48 = vld [vmem:[#allocation58_spill] sm:$0xff] }
 0x26c   :  { %2640 = vrot.lane.b32.xlu1 %v5080_v14, %s4618_s16 }
 0x26d   :  { %2646 = vrot.lane.b32.xlu0 %v7920_v15, %s4618_s16  ;;  %v7950_v15 = vld [vmem:[#allocation96_spill] sm:$0xff] }
 0x26f   :  { %v1150_v35 = vpop.permute.xlu0 %1149 }
 0x270   :  { %2644 = vrot.lane.b32.xlu1 %v5089_v17, %s4618_s16  ;;  %4214 = vmatprep.mubr.msk.f32.mxu1 %vm1189_vm12, %v1150_v35 }
 0x271   :  { %2650 = vrot.lane.b32.xlu0 %v7921_v4, %s4618_s16 }
 0x272   :  { %v1152_v46 = vpop.permute.xlu1 %1151 }
 0x273   :  { %4215 = vmatmul.mubr.msk.f32.gmra.mrb[18].mxu1 %vm1189_vm12, %v1152_v46  ;;  %v7925_v46 = vld [vmem:[#allocation60_spill] sm:$0xff] }
 0x274   :  { %2648 = vrot.lane.b32.xlu1 %v5095_v19, %s4618_s16 }
 0x275   :  { %2654 = vrot.lane.b32.xlu0 %v7922_v54, %s4618_s16  ;;  %v7946_v54 = vld [vmem:[#allocation88_spill] sm:$0xff] }
 0x277   :  { %v1154_v1 = vpop.permute.xlu0 %1153 }
 0x278   :  { %2652 = vrot.lane.b32.xlu1 %v5102_v21, %s4618_s16  ;;  %4217 = vmatprep.mubr.msk.f32.mxu1 %vm1189_vm12, %v1154_v1 }
 0x279   :  { %2658 = vrot.lane.b32.xlu0 %v7923_v20, %s4618_s16  ;;  %v7949_v20 = vld [vmem:[#allocation97_spill] sm:$0xff] }
 0x27a   :  { %v1156_v51 = vpop.permute.xlu1 %1155 }
 0x27b   :  { %4218 = vmatmul.mubr.msk.f32.gmra.mrb[20].mxu1 %vm1189_vm12, %v1156_v51 }
 0x27c   :  { %2656 = vrot.lane.b32.xlu1 %v5112_v24, %s4618_s16 }
 0x27d   :  { %2662 = vrot.lane.b32.xlu0 %v7924_v48, %s4618_s16  ;;  %v7937_v48 = vld [vmem:[#allocation80_spill] sm:$0xff] }
 0x27f   :  { %v1158_v35 = vpop.permute.xlu0 %1157 }
 0x280   :  { %2660 = vrot.lane.b32.xlu1 %v5121_v34, %s4618_s16  ;;  %4220 = vmatprep.mubr.msk.f32.mxu1 %vm1189_vm12, %v1158_v35 }
 0x281   :  { %2666 = vrot.lane.b32.xlu0 %v7925_v46, %s4618_s16  ;;  %v7942_v46 = vld [vmem:[#allocation92_spill] sm:$0xff] }
 0x282   :  { %v1160_v1 = vpop.permute.xlu1 %1159 }
 0x283   :  { %4221 = vmatmul.mubr.msk.f32.gmra.mrb[22].mxu1 %vm1189_vm12, %v1160_v1 }
 0x284   :  { %2664 = vrot.lane.b32.xlu1 %v5129_v49, %s4618_s16 }
 0x285   :  { %2670 = vrot.lane.b32.xlu0 %v5142_v13, %s4618_s16 }
 0x287   :  { %v1162_v51 = vpop.permute.xlu0 %1161 }
 0x288   :  { %2668 = vrot.lane.b32.xlu1 %v5139_v5, %s4618_s16  ;;  %4223 = vmatprep.mubr.msk.f32.mxu1 %vm1189_vm12, %v1162_v51  ;;  %v7926_v51 = vld [vmem:[#allocation72_spill] sm:$0xff] }
 0x289   :  { %2674 = vrot.lane.b32.xlu0 %v5156_v53, %s4618_s16  ;;  %v7933_v53 = vld [vmem:[#allocation85_spill] sm:$0xff] }
 0x28a   :  { %v1164_v35 = vpop.permute.xlu1 %1163 }
 0x28b   :  { %4224 = vmatmul.mubr.msk.f32.gmra.mrb[24].mxu1 %vm1189_vm12, %v1164_v35 }
 0x28c   :  { %2672 = vrot.lane.b32.xlu1 %v5151_v55, %s4618_s16 }
 0x28d   :  { %2678 = vrot.lane.b32.xlu0 %v5166_v41, %s4618_s16 }
 0x28f   :  { %v1166_v1 = vpop.permute.xlu0 %1165 }
 0x290   :  { %2676 = vrot.lane.b32.xlu1 %v7905_v63, %s4618_s16  ;;  %4226 = vmatprep.mubr.msk.f32.mxu1 %vm1189_vm12, %v1166_v1 }
 0x291   :  { %2682 = vrot.lane.b32.xlu0 %v7926_v51, %s4618_s16  ;;  %v7931_v51 = vld [vmem:[#allocation7_spill] sm:$0xff] }
 0x292   :  { %v1168_v13 = vpop.permute.xlu1 %1167 }
 0x293   :  { %4227 = vmatmul.mubr.msk.f32.gmra.mrb[26].mxu1 %vm1189_vm12, %v1168_v13 }
 0x294   :  { %2680 = vrot.lane.b32.xlu1 %v7906_v26, %s4618_s16 }
 0x295   :  { %2686 = vrot.lane.b32.xlu0 %v5190_v28, %s4618_s16  ;;  %v7928_v28 = vld [vmem:[#allocation68_spill] sm:$0xff] }
 0x297   :  { %v1170_v35 = vpop.permute.xlu0 %1169 }
 0x298   :  { %2684 = vrot.lane.b32.xlu1 %v7907_v45, %s4618_s16  ;;  %4229 = vmatprep.mubr.msk.f32.mxu1 %vm1189_vm12, %v1170_v35 }
 0x299   :  { %2690 = vrot.lane.b32.xlu0 %v5202_v23, %s4618_s16 }
 0x29a   :  { %v1172_v1 = vpop.permute.xlu1 %1171 }
 0x29b   :  { %4230 = vmatmul.mubr.msk.f32.gmra.mrb[28].mxu1 %vm1189_vm12, %v1172_v1 }
 0x29c   :  { %2688 = vrot.lane.b32.xlu1 %v7908_v38, %s4618_s16 }
 0x29d   :  { %2694 = vrot.lane.b32.xlu0 %v5212_v12, %s4618_s16  ;;  %v7927_v12 = vld [vmem:[#allocation74_spill] sm:$0xff] }
 0x29e   :  { %v2709_v23 = vsel %vm1189_vm12, %v7928_v28, %v7927_v12  ;;  %v7934_v28 = vld [vmem:[#allocation79_spill] sm:$0xff] }
 0x29f   :  { %v1174_v13 = vpop.permute.xlu0 %1173  ;;  %v2711_v12 = vsel %vm1189_vm12, %v7934_v28, %v7933_v53  ;;  %v7943_v28 = vld [vmem:[#allocation9_spill] sm:$0xff] }
 0x2a0   :  { %2692 = vrot.lane.b32.xlu1 %v7909_v58, %s4618_s16  ;;  %4232 = vmatprep.mubr.msk.f32.mxu1 %vm1189_vm12, %v1174_v13 }
 0x2a1   :  { %2698 = vrot.lane.b32.xlu0 %v5226_v10, %s4618_s16  ;;  %v7930_v10 = vld [vmem:[#allocation64_spill] sm:$0xff] }
 0x2a2   :  { %v1176_v35 = vpop.permute.xlu1 %1175 }
 0x2a3   :  { %4233 = vmatmul.mubr.msk.f32.gmra.mrb[30].mxu1 %vm1189_vm12, %v1176_v35  ;;  %v7929_v35 = vld [vmem:[#allocation65_spill] sm:$0xff] }
 0x2a4   :  { %2696 = vrot.lane.b32.xlu1 %v7910_v43, %s4618_s16  ;;  %v2708_v41 = vsel %vm1189_vm12, %v7930_v10, %v7929_v35  ;;  %v7938_v10 = vld [vmem:[#allocation73_spill] sm:$0xff]  ;;  %v7939_v35 = vld [vmem:[#allocation11_spill] sm:$0xff] }
 0x2a5   :  { %2702 = vrot.lane.b32.xlu0 %v5236_v18, %s4618_s16  ;;  %v5768_v18 = vmul.f32 %v2709_v23, %v7931_v51  ;;  %v2710_v23 = vsel %vm1189_vm12, %v7938_v10, %v7937_v48  ;;  %v5785_v51 = vmul.f32 %v2711_v12, %v7939_v35  ;;  %v7947_v10 = vld [vmem:[#allocation15_spill] sm:$0xff] }
 0x2a7   :  { %v1178_v1 = vpop.permute.xlu0 %1177  ;;  %7932 = vst [vmem:[#allocation36_spill] sm:$0xff] %v5768_v18  ;;  %7940 = vst [vmem:[#allocation40_spill] sm:$0xff] %v5785_v51 }
 0x2a8   :  { %2700 = vrot.lane.b32.xlu1 %v7911_v2, %s4618_s16  ;;  %4235 = vmatprep.mubr.msk.f32.mxu1 %vm1189_vm12, %v1178_v1  ;;  %v7935_v1 = vld [vmem:[#allocation5_spill] sm:$0xff] }
 0x2a9   :  { %2706 = vrot.lane.b32.xlu0 %v5250_v8, %s4618_s16  ;;  %v5779_v8 = vmul.f32 %v2708_v41, %v7935_v1  ;;  %v5795_v41 = vmul.f32 %v2710_v23, %v7943_v28  ;;  %v7945_v1 = vld [vmem:[#allocation89_spill] sm:$0xff] }
 0x2aa   :  { %v1180_v13 = vpop.permute.xlu1 %1179  ;;  %v2712_v48 = vsel %vm1189_vm12, %v7946_v54, %v7945_v1  ;;  %v7951_v23 = vld [vmem:[#allocation13_spill] sm:$0xff]  ;;  %v7953_v1 = vld [vmem:[#allocation95_spill] sm:$0xff] }
 0x2ab   :  { %4236 = vmatmul.mubr.msk.f32.gmra.mrb[32].mxu1 %vm1189_vm12, %v1180_v13  ;;  %7936 = vst [vmem:[#allocation38_spill] sm:$0xff] %v5779_v8  ;;  %v7941_v13 = vld [vmem:[#allocation93_spill] sm:$0xff]  ;;  %7944 = vst [vmem:[#allocation42_spill] sm:$0xff] %v5795_v41 }
 0x2ac   :  { %2704 = vrot.lane.b32.xlu1 %v7912_v30, %s4618_s16  ;;  %v2713_v53 = vsel %vm1189_vm12, %v7942_v46, %v7941_v13  ;;  %v2715_v46 = vsel %vm1189_vm12, %v7950_v15, %v7949_v20  ;;  %v5812_v13 = vmul.f32 %v2712_v48, %v7951_v23  ;;  %v7956_v15 = vld [vmem:[#allocation100_spill] sm:$0xff]  ;;  %v7958_v48 = vld [vmem:[#allocation99_spill] sm:$0xff] }
 0x2ad   :  { %2862 = vrot.lane.b32.xlu0 %v5768_v18, %s4619_s0  ;;  %v5801_v12 = vmul.f32 %v2713_v53, %v7947_v10  ;;  %v7954_v53 = vld [vmem:[#allocation94_spill] sm:$0xff]  ;;  %v5818_v28 = vmul.f32 %v2715_v46, %v4967_v42  ;;  %v2717_v20 = vsel %vm1189_vm12, %v7956_v15, %v5380_v56  ;;  %v2719_v56 = vsel %vm1189_vm12, %v5413_v22, %v5452_v39 }
 0x2ae   :  { %7952 = vst [vmem:[#allocation46_spill] sm:$0xff] %v5812_v13  ;;  %v2714_v10 = vsel %vm1189_vm12, %v7954_v53, %v7953_v1  ;;  %v7959_v1 = vld [vmem:[#allocation98_spill] sm:$0xff]  ;;  %v5835_v53 = vmul.f32 %v2717_v20, %v4984_v47  ;;  %v5851_v15 = vmul.f32 %v2719_v56, %v4999_v52  ;;  %v2721_v22 = vsel %vm1189_vm12, %v5470_v33, %v5632_v16  ;;  %v7967_v16 = vld [vmem:[#allocation29_spill] sm:$0xff] }
 0x2af   :  { %7948 = vst [vmem:[#allocation44_spill] sm:$0xff] %v5801_v12  ;;  %7955 = vst [vmem:[#allocation48_spill] sm:$0xff] %v5818_v28  ;;  %v2716_v46 = vsel %vm1189_vm12, %v7959_v1, %v7958_v48  ;;  %v7965_v48 = vld [vmem:[#allocation101_spill] sm:$0xff] }
 0x2b0   :  { %2860 = vrot.lane.b32.xlu1 %v5779_v8, %s4619_s0  ;;  %7960 = vst [vmem:[#allocation74_spill] sm:$0xff] %v5835_v53  ;;  %7962 = vst [vmem:[#allocation65_spill] sm:$0xff] %v5851_v15 }
 0x2b1   :  { %2866 = vrot.lane.b32.xlu0 %v5785_v51, %s4619_s0 }
 0x2b3   :  { %v1182_v35 = vpop.permute.xlu0 %1181 }
 0x2b4   :  { %2864 = vrot.lane.b32.xlu1 %v5795_v41, %s4619_s0  ;;  %4238 = vmatprep.mubr.msk.f32.mxu1 %vm1189_vm12, %v1182_v35  ;;  %v5829_v35 = vmul.f32 %v2714_v10, %v4961_v40  ;;  %v5845_v10 = vmul.f32 %v2716_v46, %v4974_v44  ;;  %v5868_v46 = vmul.f32 %v2721_v22, %v5016_v57 }
 0x2b5   :  { %2870 = vrot.lane.b32.xlu0 %v5801_v12, %s4619_s0 }
 0x2b6   :  { %v1184_v54 = vpop.permute.xlu1 %1183  ;;  %7957 = vst [vmem:[#allocation52_spill] sm:$0xff] %v5829_v35  ;;  %7961 = vst [vmem:[#allocation68_spill] sm:$0xff] %v5845_v10 }
 0x2b7   :  { %4239 = vmatmul.mubr.msk.f32.gmra.mrb[34].mxu1 %vm1189_vm12, %v1184_v54  ;;  %v2718_v54 = vsel %vm1189_vm12, %v5392_v32, %v5399_v36  ;;  %v7964_v36 = vld [vmem:[#allocation102_spill] sm:$0xff]  ;;  %7966 = vst [vmem:[#allocation85_spill] sm:$0xff] %v5868_v46 }
 0x2b8   :  { %2868 = vrot.lane.b32.xlu1 %v5812_v13, %s4619_s0  ;;  %v5862_v39 = vmul.f32 %v2718_v54, %v4993_v50  ;;  %v2720_v1 = vsel %vm1189_vm12, %v7965_v48, %v7964_v36 }
 0x2b9   :  { %2874 = vrot.lane.b32.xlu0 %v5818_v28, %s4619_s0  ;;  %v5876_v56 = vmul.f32 %v2720_v1, %v7967_v16 }
 0x2ba   :  { %7963 = vst [vmem:[#allocation64_spill] sm:$0xff] %v5862_v39 }
 0x2bb   :  { %7968 = vst [vmem:[#allocation79_spill] sm:$0xff] %v5876_v56 }
 0x2bc   :  { %2872 = vrot.lane.b32.xlu1 %v5829_v35, %s4619_s0 }
 0x2bd   :  { %2878 = vrot.lane.b32.xlu0 %v5835_v53, %s4619_s0 }
 0x2bf   :  { %v1186_v20 = vpop.permute.xlu0 %1185 }
 0x2c0   :  { %2876 = vrot.lane.b32.xlu1 %v5845_v10, %s4619_s0  ;;  %4241 = vmatprep.mubr.msk.f32.mxu1 %vm1189_vm12, %v1186_v20  ;;  %v2722_v20 = vsel %vm1189_vm12, %v5635_v25, %v5637_v31 }
 0x2c1   :  { %2882 = vrot.lane.b32.xlu0 %v5851_v15, %s4619_s0 }
 0x2c2   :  { %v1188_v32 = vpop.permute.xlu1 %1187 }
 0x2c3   :  { %v2619_v33 = vpop.permute.xlu0 %2618  ;;  %4242 = vmatmul.mubr.msk.f32.gmra.mrb[36].mxu1 %vm1189_vm12, %v1188_v32  ;;  %v7970_v32 = vld [vmem:[#allocation33_spill] sm:$0xff] }
 0x2c4   :  { %2880 = vrot.lane.b32.xlu1 %v5862_v39, %s4619_s0  ;;  %v5888_v57 = vmul.f32 %v2722_v20, %v7970_v32 }
 0x2c5   :  { %2886 = vrot.lane.b32.xlu0 %v5868_v46, %s4619_s0 }
 0x2c6   :  { %v2617_v54 = vpop.permute.xlu1 %2616  ;;  %7971 = vst [vmem:[#allocation73_spill] sm:$0xff] %v5888_v57 }
 0x2c7   :  { %v2723_v22 = vsel %vm1189_vm12, %v2617_v54, %v2619_v33  ;;  %v2623_v36 = vpop.permute.xlu0 %2622 }
 0x2c8   :  { %v5883_v48 = vmul.f32 %v2723_v22, %v5031_v62  ;;  %2884 = vrot.lane.b32.xlu1 %v5876_v56, %s4619_s0 }
 0x2ca   :  { %7969 = vst [vmem:[#allocation80_spill] sm:$0xff] %v5883_v48  ;;  %2890 = vrot.lane.b32.xlu0 %v5883_v48, %s4619_s0  ;;  %v2621_v1 = vpop.permute.xlu1 %2620 }
 0x2cb   :  { %v2724_v16 = vsel %vm1189_vm12, %v2621_v1, %v2623_v36  ;;  %v2627_v50 = vpop.permute.xlu0 %2626 }
 0x2cc   :  { %2888 = vrot.lane.b32.xlu1 %v5888_v57, %s4619_s0  ;;  %v5896_v25 = vmul.f32 %v2724_v16, %v5038_v0 }
 0x2ce   :  { %7972 = vst [vmem:[#allocation93_spill] sm:$0xff] %v5896_v25  ;;  %v2625_v31 = vpop.permute.xlu1 %2624 }
 0x2cf   :  { %v2725_v33 = vsel %vm1189_vm12, %v2625_v31, %v2627_v50  ;;  %v2631_v54 = vpop.permute.xlu0 %2630 }
 0x2d0   :  { %v5900_v20 = vmul.f32 %v2725_v33, %v5048_v3  ;;  %2892 = vrot.lane.b32.xlu1 %v5896_v25, %s4619_s0 }
 0x2d2   :  { %7973 = vst [vmem:[#allocation92_spill] sm:$0xff] %v5900_v20  ;;  %2894 = vrot.lane.b32.xlu0 %v5900_v20, %s4619_s0  ;;  %v2629_v22 = vpop.permute.xlu1 %2628 }
 0x2d3   :  { %v2726_v36 = vsel %vm1189_vm12, %v2629_v22, %v2631_v54  ;;  %v2635_v1 = vpop.permute.xlu0 %2634 }
 0x2d4   :  { %v5908_v16 = vmul.f32 %v2726_v36, %v5057_v6 }
 0x2d6   :  { %2896 = vrot.lane.b32.xlu1 %v5908_v16, %s4619_s0  ;;  %v2633_v50 = vpop.permute.xlu1 %2632 }
 0x2d7   :  { %v2727_v31 = vsel %vm1189_vm12, %v2633_v50, %v2635_v1  ;;  %v2639_v33 = vpop.permute.xlu0 %2638 }
 0x2d8   :  { %v5914_v0 = vmul.f32 %v2727_v31, %v5063_v9 }
 0x2da   :  { %2898 = vrot.lane.b32.xlu0 %v5914_v0, %s4619_s0  ;;  %v2637_v3 = vpop.permute.xlu1 %2636 }
 0x2db   :  { %v2728_v54 = vsel %vm1189_vm12, %v2637_v3, %v2639_v33  ;;  %v2643_v22 = vpop.permute.xlu0 %2642 }
 0x2dc   :  { %v5920_v36 = vmul.f32 %v2728_v54, %v5070_v11 }
 0x2de   :  { %2900 = vrot.lane.b32.xlu1 %v5920_v36, %s4619_s0  ;;  %v2641_v6 = vpop.permute.xlu1 %2640 }
 0x2df   :  { %v2729_v1 = vsel %vm1189_vm12, %v2641_v6, %v2643_v22  ;;  %v2647_v50 = vpop.permute.xlu0 %2646 }
 0x2e0   :  { %v5926_v31 = vmul.f32 %v2729_v1, %v5080_v14 }
 0x2e2   :  { %2902 = vrot.lane.b32.xlu0 %v5926_v31, %s4619_s0  ;;  %v2645_v9 = vpop.permute.xlu1 %2644 }
 0x2e3   :  { %v2730_v3 = vsel %vm1189_vm12, %v2645_v9, %v2647_v50  ;;  %v2651_v33 = vpop.permute.xlu0 %2650 }
 0x2e4   :  { %v5932_v54 = vmul.f32 %v2730_v3, %v5089_v17 }
 0x2e6   :  { %7974 = vst [vmem:[#allocation89_spill] sm:$0xff] %v5932_v54  ;;  %2904 = vrot.lane.b32.xlu1 %v5932_v54, %s4619_s0  ;;  %v2649_v11 = vpop.permute.xlu1 %2648 }
 0x2e7   :  { %v2731_v6 = vsel %vm1189_vm12, %v2649_v11, %v2651_v33  ;;  %v2655_v22 = vpop.permute.xlu0 %2654 }
 0x2e8   :  { %v5938_v1 = vmul.f32 %v2731_v6, %v5095_v19 }
 0x2ea   :  { %2906 = vrot.lane.b32.xlu0 %v5938_v1, %s4619_s0  ;;  %v2653_v14 = vpop.permute.xlu1 %2652 }
 0x2eb   :  { %v2732_v9 = vsel %vm1189_vm12, %v2653_v14, %v2655_v22  ;;  %v2659_v50 = vpop.permute.xlu0 %2658 }
 0x2ec   :  { %v5944_v3 = vmul.f32 %v2732_v9, %v5102_v21 }
 0x2ee   :  { %7975 = vst [vmem:[#allocation88_spill] sm:$0xff] %v5944_v3  ;;  %2908 = vrot.lane.b32.xlu1 %v5944_v3, %s4619_s0  ;;  %v2657_v17 = vpop.permute.xlu1 %2656 }
 0x2ef   :  { %v2733_v11 = vsel %vm1189_vm12, %v2657_v17, %v2659_v50  ;;  %v2663_v33 = vpop.permute.xlu0 %2662 }
 0x2f0   :  { %v5950_v6 = vmul.f32 %v2733_v11, %v5112_v24 }
 0x2f2   :  { %7976 = vst [vmem:[#allocation97_spill] sm:$0xff] %v5950_v6  ;;  %2910 = vrot.lane.b32.xlu0 %v5950_v6, %s4619_s0  ;;  %v2661_v19 = vpop.permute.xlu1 %2660 }
 0x2f3   :  { %v2734_v14 = vsel %vm1189_vm12, %v2661_v19, %v2663_v33  ;;  %v2667_v22 = vpop.permute.xlu0 %2666 }
 0x2f4   :  { %v5956_v9 = vmul.f32 %v2734_v14, %v5121_v34 }
 0x2f6   :  { %7977 = vst [vmem:[#allocation96_spill] sm:$0xff] %v5956_v9  ;;  %2912 = vrot.lane.b32.xlu1 %v5956_v9, %s4619_s0  ;;  %v2665_v21 = vpop.permute.xlu1 %2664 }
 0x2f7   :  { %v2735_v17 = vsel %vm1189_vm12, %v2665_v21, %v2667_v22  ;;  %v2671_v50 = vpop.permute.xlu0 %2670 }
 0x2f8   :  { %v5962_v11 = vmul.f32 %v2735_v17, %v5129_v49 }
 0x2fa   :  { %7978 = vst [vmem:[#allocation13_spill] sm:$0xff] %v5962_v11  ;;  %2914 = vrot.lane.b32.xlu0 %v5962_v11, %s4619_s0  ;;  %v2669_v24 = vpop.permute.xlu1 %2668 }
 0x2fb   :  { %v2736_v19 = vsel %vm1189_vm12, %v2669_v24, %v2671_v50  ;;  %v2675_v33 = vpop.permute.xlu0 %2674 }
 0x2fc   :  { %v5968_v14 = vmul.f32 %v2736_v19, %v5139_v5 }
 0x2fe   :  { %7979 = vst [vmem:[#allocation95_spill] sm:$0xff] %v5968_v14  ;;  %v5970_v34 = vpop.f32.mrb[0].mxu1  ;;  %2916 = vrot.lane.b32.xlu1 %v5968_v14, %s4619_s0  ;;  %v2673_v21 = vpop.permute.xlu1 %2672 }
 0x2ff   :  { %v2737_v22 = vsel %vm1189_vm12, %v2673_v21, %v2675_v33  ;;  %v5975_v17 = vpop.f32.mrb[1].mxu1  ;;  %v2679_v49 = vpop.permute.xlu0 %2678 }
 0x300   :  { %v5978_v32 = vmul.f32 %v2737_v22, %v5151_v55 }
 0x302   :  { %7980 = vst [vmem:[#allocation94_spill] sm:$0xff] %v5978_v32  ;;  %2918 = vrot.lane.b32.xlu0 %v5978_v32, %s4619_s0  ;;  %v2677_v24 = vpop.permute.xlu1 %2676 }
 0x303   :  { %v2738_v50 = vsel %vm1189_vm12, %v2677_v24, %v2679_v49  ;;  %v2683_v19 = vpop.permute.xlu0 %2682 }
 0x304   :  { %v5984_v5 = vmul.f32 %v2738_v50, %v7905_v63 }
 0x306   :  { %7981 = vst [vmem:[#allocation100_spill] sm:$0xff] %v5984_v5  ;;  %2920 = vrot.lane.b32.xlu1 %v5984_v5, %s4619_s0  ;;  %v2681_v33 = vpop.permute.xlu1 %2680 }
 0x307   :  { %v2739_v21 = vsel %vm1189_vm12, %v2681_v33, %v2683_v19  ;;  %v2687_v62 = vpop.permute.xlu0 %2686 }
 0x308   :  { %v5990_v22 = vmul.f32 %v2739_v21, %v7906_v26 }
 0x30a   :  { %7982 = vst [vmem:[#allocation99_spill] sm:$0xff] %v5990_v22  ;;  %v5992_v55 = vpop.f32.mrb[2].mxu1  ;;  %2922 = vrot.lane.b32.xlu0 %v5990_v22, %s4619_s0  ;;  %v2685_v49 = vpop.permute.xlu1 %2684 }
 0x30b   :  { %v2740_v24 = vsel %vm1189_vm12, %v2685_v49, %v2687_v62  ;;  %v5997_v50 = vpop.f32.mrb[3].mxu1  ;;  %v2691_v63 = vpop.permute.xlu0 %2690 }
 0x30c   :  { %v6000_v52 = vmul.f32 %v2740_v24, %v7907_v45 }
 0x30e   :  { %7983 = vst [vmem:[#allocation98_spill] sm:$0xff] %v6000_v52  ;;  %2924 = vrot.lane.b32.xlu1 %v6000_v52, %s4619_s0  ;;  %v2689_v19 = vpop.permute.xlu1 %2688 }
 0x30f   :  { %v2741_v33 = vsel %vm1189_vm12, %v2689_v19, %v2691_v63  ;;  %v2695_v21 = vpop.permute.xlu0 %2694 }
 0x310   :  { %v6006_v26 = vmul.f32 %v2741_v33, %v7908_v38 }
 0x312   :  { %7984 = vst [vmem:[#allocation102_spill] sm:$0xff] %v6006_v26  ;;  %2926 = vrot.lane.b32.xlu0 %v6006_v26, %s4619_s0  ;;  %v2693_v62 = vpop.permute.xlu1 %2692 }
 0x313   :  { %v2742_v49 = vsel %vm1189_vm12, %v2693_v62, %v2695_v21  ;;  %v2699_v44 = vpop.permute.xlu0 %2698 }
 0x314   :  { %v6012_v24 = vmul.f32 %v2742_v49, %v7909_v58 }
 0x316   :  { %7985 = vst [vmem:[#allocation101_spill] sm:$0xff] %v6012_v24  ;;  %2928 = vrot.lane.b32.xlu1 %v6012_v24, %s4619_s0  ;;  %v2697_v45 = vpop.permute.xlu1 %2696 }
 0x317   :  { %v2743_v63 = vsel %vm1189_vm12, %v2697_v45, %v2699_v44  ;;  %v2703_v33 = vpop.permute.xlu0 %2702 }
 0x318   :  { %v6018_v19 = vmul.f32 %v2743_v63, %v7910_v43 }
 0x31a   :  { %7986 = vst [vmem:[#allocation103_spill] sm:$0xff] %v6018_v19  ;;  %2930 = vrot.lane.b32.xlu0 %v6018_v19, %s4619_s0  ;;  %v2701_v38 = vpop.permute.xlu1 %2700 }
 0x31b   :  { %v2744_v21 = vsel %vm1189_vm12, %v2701_v38, %v2703_v33  ;;  %v2707_v47 = vpop.permute.xlu0 %2706 }
 0x31c   :  { %v6024_v62 = vmul.f32 %v2744_v21, %v7911_v2  ;;  %v4195_v49 = vpop.f32.mrb[4].mxu1 }
 0x31d   :  { %v1352_v58 = vpop.f32.mrb[5].mxu1 }
 0x31e   :  { %7987 = vst [vmem:[#allocation104_spill] sm:$0xff] %v6024_v62  ;;  %2932 = vrot.lane.b32.xlu1 %v6024_v62, %s4619_s0  ;;  %v2705_v44 = vpop.permute.xlu1 %2704 }
 0x31f   :  { %v2745_v45 = vsel %vm1189_vm12, %v2705_v44, %v2707_v47 }
 0x320   :  { %v6030_v63 = vmul.f32 %v2745_v45, %v7912_v30  ;;  %v4198_v43 = vpop.f32.mrb[6].mxu1 }
 0x321   :  { %v1362_v40 = vpop.f32.mrb[7].mxu1 }
 0x322   :  { %7988 = vst [vmem:[#allocation105_spill] sm:$0xff] %v6030_v63  ;;  %3012 = vrot.lane.b32.xlu1 %v5779_v8, %s4617_s28  ;;  %2934 = vrot.lane.b32.xlu0 %v6030_v63, %s4619_s0 }
 0x324   :  { %v4201_v38 = vpop.f32.mrb[8].mxu1 }
 0x325   :  { %v1372_v33 = vpop.f32.mrb[9].mxu1 }
 0x326   :  { %3016 = vrot.lane.b32.xlu1 %v5795_v41, %s4617_s28  ;;  %3014 = vrot.lane.b32.xlu0 %v5768_v18, %s4617_s28  ;;  %v8046_v18 = vld [vmem:[#allocation18_spill] sm:$0xff] }
 0x328   :  { %v4204_v47 = vpop.f32.mrb[10].mxu1 }
 0x329   :  { %v1382_v21 = vpop.f32.mrb[11].mxu1 }
 0x32a   :  { %3020 = vrot.lane.b32.xlu1 %v5812_v13, %s4617_s28  ;;  %3018 = vrot.lane.b32.xlu0 %v5785_v51, %s4617_s28  ;;  %v6056_v13 = vpop.permute.xlu1 %2860 }
 0x32b   :  { %7989 = vst [vmem:[#allocation106_spill] sm:$0xff] %v6056_v13 }
 0x32e   :  { %v4207_v44 = vpop.f32.mrb[12].mxu1  ;;  %3024 = vrot.lane.b32.xlu1 %v5829_v35, %s4617_s28  ;;  %3022 = vrot.lane.b32.xlu0 %v5801_v12, %s4617_s28  ;;  %v6064_v35 = vpop.permute.xlu1 %2864 }
 0x32f   :  { %v1392_v45 = vpop.f32.mrb[13].mxu1  ;;  %7991 = vst [vmem:[#allocation108_spill] sm:$0xff] %v6064_v35 }
 0x332   :  { %3028 = vrot.lane.b32.xlu1 %v5845_v10, %s4617_s28  ;;  %3026 = vrot.lane.b32.xlu0 %v5818_v28, %s4617_s28  ;;  %v6062_v10 = vpop.permute.xlu0 %2862 }
 0x333   :  { %7990 = vst [vmem:[#allocation107_spill] sm:$0xff] %v6062_v10  ;;  %v8045_v10 = vld [vmem:[#allocation20_spill] sm:$0xff] }
 0x336   :  { %v4210_v2 = vpop.f32.mrb[14].mxu1  ;;  %3032 = vrot.lane.b32.xlu1 %v5862_v39, %s4617_s28  ;;  %3030 = vrot.lane.b32.xlu0 %v5835_v53, %s4617_s28 }
 0x337   :  { %v1402_v30 = vpop.f32.mrb[15].mxu1 }
 0x33a   :  { %3036 = vrot.lane.b32.xlu1 %v5876_v56, %s4617_s28  ;;  %3034 = vrot.lane.b32.xlu0 %v5851_v15, %s4617_s28  ;;  %v6074_v56 = vpop.permute.xlu0 %2866  ;;  %v6076_v15 = vpop.permute.xlu1 %2868 }
 0x33b   :  { %7992 = vst [vmem:[#allocation109_spill] sm:$0xff] %v6074_v56  ;;  %7993 = vst [vmem:[#allocation110_spill] sm:$0xff] %v6076_v15 }
 0x33e   :  { %v4213_v28 = vpop.f32.mrb[16].mxu1  ;;  %1561 = vrot.lane.b32.xlu1 %v5970_v34, %s4617_s28  ;;  %3038 = vrot.lane.b32.xlu0 %v5868_v46, %s4617_s28  ;;  %v6081_v12 = vpop.permute.xlu0 %2870 }
 0x33f   :  { %v1412_v39 = vpop.f32.mrb[17].mxu1  ;;  %7994 = vst [vmem:[#allocation111_spill] sm:$0xff] %v6081_v12  ;;  %v6083_v46 = vpop.permute.xlu1 %2872 }
 0x340   :  { %7995 = vst [vmem:[#allocation112_spill] sm:$0xff] %v6083_v46 }
 0x342   :  { %1565 = vrot.lane.b32.xlu1 %v5992_v55, %s4617_s28  ;;  %1559 = vrot.lane.b32.xlu0 %v5975_v17, %s4617_s28  ;;  %v6089_v17 = vpop.permute.xlu0 %2874 }
 0x343   :  { %7996 = vst [vmem:[#allocation113_spill] sm:$0xff] %v6089_v17  ;;  %v6091_v15 = vpop.permute.xlu1 %2876 }
 0x344   :  { %7997 = vst [vmem:[#allocation114_spill] sm:$0xff] %v6091_v15 }
 0x346   :  { %v4216_v53 = vpop.f32.mrb[18].mxu1  ;;  %1569 = vrot.lane.b32.xlu1 %v4195_v49, %s4617_s28  ;;  %1563 = vrot.lane.b32.xlu0 %v5997_v50, %s4617_s28  ;;  %v6095_v50 = vpop.permute.xlu0 %2878 }
 0x347   :  { %v1422_v34 = vpop.f32.mrb[19].mxu1  ;;  %7998 = vst [vmem:[#allocation115_spill] sm:$0xff] %v6095_v50  ;;  %v6097_v46 = vpop.permute.xlu1 %2880 }
 0x348   :  { %7999 = vst [vmem:[#allocation116_spill] sm:$0xff] %v6097_v46 }
 0x34a   :  { %1573 = vrot.lane.b32.xlu1 %v4198_v43, %s4617_s28  ;;  %1567 = vrot.lane.b32.xlu0 %v1352_v58, %s4617_s28 }
 0x34e   :  { %v4219_v55 = vpop.f32.mrb[20].mxu1  ;;  %1577 = vrot.lane.b32.xlu1 %v4201_v38, %s4617_s28  ;;  %1571 = vrot.lane.b32.xlu0 %v1362_v40, %s4617_s28  ;;  %v6103_v40 = vpop.permute.xlu0 %2882 }
 0x34f   :  { %v1432_v49 = vpop.f32.mrb[21].mxu1  ;;  %8000 = vst [vmem:[#allocation117_spill] sm:$0xff] %v6103_v40  ;;  %v6105_v38 = vpop.permute.xlu1 %2884 }
 0x350   :  { %8001 = vst [vmem:[#allocation118_spill] sm:$0xff] %v6105_v38 }
 0x352   :  { %1581 = vrot.lane.b32.xlu1 %v4204_v47, %s4617_s28  ;;  %1575 = vrot.lane.b32.xlu0 %v1372_v33, %s4617_s28  ;;  %v6109_v46 = vpop.permute.xlu0 %2886 }
 0x353   :  { %8002 = vst [vmem:[#allocation119_spill] sm:$0xff] %v6109_v46 }
 0x356   :  { %v4222_v43 = vpop.f32.mrb[22].mxu1  ;;  %1585 = vrot.lane.b32.xlu1 %v4207_v44, %s4617_s28  ;;  %1579 = vrot.lane.b32.xlu0 %v1382_v21, %s4617_s28  ;;  %v6111_v44 = vpop.permute.xlu1 %2888 }
 0x357   :  { %v1442_v58 = vpop.f32.mrb[23].mxu1  ;;  %8003 = vst [vmem:[#allocation120_spill] sm:$0xff] %v6111_v44 }
 0x35a   :  { %1589 = vrot.lane.b32.xlu1 %v4210_v2, %s4617_s28  ;;  %1583 = vrot.lane.b32.xlu0 %v1392_v45, %s4617_s28  ;;  %v6117_v45 = vpop.permute.xlu0 %2890 }
 0x35b   :  { %8004 = vst [vmem:[#allocation121_spill] sm:$0xff] %v6117_v45 }
 0x35e   :  { %v4225_v47 = vpop.f32.mrb[24].mxu1  ;;  %1593 = vrot.lane.b32.xlu1 %v4213_v28, %s4617_s28  ;;  %1587 = vrot.lane.b32.xlu0 %v1402_v30, %s4617_s28  ;;  %v6119_v28 = vpop.permute.xlu1 %2892 }
 0x35f   :  { %v1452_v33 = vpop.f32.mrb[25].mxu1  ;;  %8005 = vst [vmem:[#allocation122_spill] sm:$0xff] %v6119_v28  ;;  %v6123_v30 = vpop.permute.xlu0 %2894 }
 0x360   :  { %8006 = vst [vmem:[#allocation123_spill] sm:$0xff] %v6123_v30 }
 0x362   :  { %1597 = vrot.lane.b32.xlu1 %v4216_v53, %s4617_s28  ;;  %1591 = vrot.lane.b32.xlu0 %v1412_v39, %s4617_s28  ;;  %v6125_v44 = vpop.permute.xlu1 %2896 }
 0x366   :  { %v4228_v2 = vpop.f32.mrb[26].mxu1  ;;  %1601 = vrot.lane.b32.xlu1 %v4219_v55, %s4617_s28  ;;  %1595 = vrot.lane.b32.xlu0 %v1422_v34, %s4617_s28  ;;  %v6129_v34 = vpop.permute.xlu0 %2898 }
 0x367   :  { %v1462_v21 = vpop.f32.mrb[27].mxu1  ;;  %v6131_v55 = vpop.permute.xlu1 %2900 }
 0x368   :  { %8007 = vst [vmem:[#allocation124_spill] sm:$0xff] %v6131_v55 }
 0x36a   :  { %1605 = vrot.lane.b32.xlu1 %v4222_v43, %s4617_s28  ;;  %1599 = vrot.lane.b32.xlu0 %v1432_v49, %s4617_s28  ;;  %v6135_v43 = vpop.permute.xlu0 %2902 }
 0x36b   :  { %v6137_v49 = vpop.permute.xlu1 %2904 }
 0x36c   :  { %8008 = vst [vmem:[#allocation125_spill] sm:$0xff] %v6137_v49 }
 0x36e   :  { %v4231_v53 = vpop.f32.mrb[28].mxu1  ;;  %1609 = vrot.lane.b32.xlu1 %v4225_v47, %s4617_s28  ;;  %1603 = vrot.lane.b32.xlu0 %v1442_v58, %s4617_s28  ;;  %v6141_v58 = vpop.permute.xlu0 %2906 }
 0x36f   :  { %v1472_v39 = vpop.f32.mrb[29].mxu1  ;;  %8009 = vst [vmem:[#allocation126_spill] sm:$0xff] %v6141_v58  ;;  %v6143_v30 = vpop.permute.xlu1 %2908 }
 0x370   :  { %8010 = vst [vmem:[#allocation127_spill] sm:$0xff] %v6143_v30 }
 0x372   :  { %1613 = vrot.lane.b32.xlu1 %v4228_v2, %s4617_s28  ;;  %1607 = vrot.lane.b32.xlu0 %v1452_v33, %s4617_s28  ;;  %v6147_v2 = vpop.permute.xlu0 %2910 }
 0x373   :  { %8011 = vst [vmem:[#allocation128_spill] sm:$0xff] %v6147_v2  ;;  %v6149_v33 = vpop.permute.xlu1 %2912  ;;  %v8051_v2 = vld [vmem:[#allocation32_spill] sm:$0xff] }
 0x374   :  { %8012 = vst [vmem:[#allocation129_spill] sm:$0xff] %v6149_v33  ;;  %v8048_v33 = vld [vmem:[#allocation22_spill] sm:$0xff] }
 0x376   :  { %v4234_v28 = vpop.f32.mrb[30].mxu1  ;;  %1617 = vrot.lane.b32.xlu1 %v4231_v53, %s4617_s28  ;;  %1611 = vrot.lane.b32.xlu0 %v1462_v21, %s4617_s28  ;;  %v6153_v21 = vpop.permute.xlu0 %2914 }
 0x377   :  { %v1482_v47 = vpop.f32.mrb[31].mxu1  ;;  %8013 = vst [vmem:[#allocation130_spill] sm:$0xff] %v6153_v21  ;;  %v6155_v53 = vpop.permute.xlu1 %2916 }
 0x378   :  { %8014 = vst [vmem:[#allocation131_spill] sm:$0xff] %v6155_v53 }
 0x37a   :  { %1621 = vrot.lane.b32.xlu1 %v4234_v28, %s4617_s28  ;;  %1615 = vrot.lane.b32.xlu0 %v1472_v39, %s4617_s28  ;;  %v6158_v46 = vpop.permute.xlu0 %2918 }
 0x37b   :  { %8015 = vst [vmem:[#allocation132_spill] sm:$0xff] %v6158_v46  ;;  %v6160_v28 = vpop.permute.xlu1 %2920 }
 0x37c   :  { %8016 = vst [vmem:[#allocation133_spill] sm:$0xff] %v6160_v28  ;;  %v8040_v28 = vld [vmem:[#allocation6_spill] sm:$0xff] }
 0x37e   :  { %v4237_v45 = vpop.f32.mrb[32].mxu1  ;;  %1619 = vrot.lane.b32.xlu0 %v1482_v47, %s4617_s28  ;;  %v6162_v39 = vpop.permute.xlu0 %2922 }
 0x37f   :  { %v1492_v38 = vpop.f32.mrb[33].mxu1  ;;  %1625 = vrot.lane.b32.xlu1 %v4237_v45, %s4617_s28  ;;  %8017 = vst [vmem:[#allocation134_spill] sm:$0xff] %v6162_v39  ;;  %v8042_v39 = vld [vmem:[#allocation10_spill] sm:$0xff] }
 0x380   :  { %v6164_v40 = vpop.permute.xlu1 %2924 }
 0x381   :  { %8018 = vst [vmem:[#allocation135_spill] sm:$0xff] %v6164_v40  ;;  %v2024_v40 = vld [vmem:[%s7645_s4] sm:$0xff] }
 0x382   :  { %1623 = vrot.lane.b32.xlu0 %v1492_v38, %s4617_s28 }
 0x384   :  { %v6167_v47 = vpop.permute.xlu0 %2926 }
 0x385   :  { %8019 = vst [vmem:[#allocation136_spill] sm:$0xff] %v6167_v47 }
 0x388   :  { %v6169_v45 = vpop.permute.xlu1 %2928 }
 0x389   :  { %8020 = vst [vmem:[#allocation137_spill] sm:$0xff] %v6169_v45 }
 0x38a   :  { %v4240_v15 = vpop.f32.mrb[34].mxu1 }
 0x38b   :  { %v1502_v50 = vpop.f32.mrb[35].mxu1  ;;  %1629 = vrot.lane.b32.xlu1 %v4240_v15, %s4617_s28  ;;  %v2025_v15 = vld [vmem:[%s7645_s4 + $0x8] sm:$0xff] }
 0x38c   :  { %1627 = vrot.lane.b32.xlu0 %v1502_v50, %s4617_s28  ;;  %v6172_v17 = vpop.permute.xlu0 %2930  ;;  %v4349_v45 = vpack.c.bf16 %v2025_v15, %v2024_v40 }
 0x38d   :  { %8021 = vst [vmem:[#allocation138_spill] sm:$0xff] %v6172_v17 }
 0x38e   :  { %4350 = vmatprep.subr.bf16.mxu1 %v4349_v45 }
 0x38f   :  { %4352 = vmatpush3.bf16.msra.mxu1 %v4349_v45 }
 0x390   :  { %v6174_v38 = vpop.permute.xlu1 %2932 }
 0x391   :  { %8022 = vst [vmem:[#allocation139_spill] sm:$0xff] %v6174_v38 }
 0x394   :  { %v6176_v12 = vpop.permute.xlu0 %2934  ;;  %v6178_v35 = vpop.permute.xlu1 %3012 }
 0x395   :  { %8023 = vst [vmem:[#allocation140_spill] sm:$0xff] %v6176_v12  ;;  %8024 = vst [vmem:[#allocation141_spill] sm:$0xff] %v6178_v35 }
 0x396   :  { %v4243_v47 = vpop.f32.mrb[36].mxu1 }
 0x397   :  { %v1512_v41 = vpop.f32.mrb[37].mxu1  ;;  %1633 = vrot.lane.b32.xlu1 %v4243_v47, %s4617_s28 }
 0x398   :  { %1631 = vrot.lane.b32.xlu0 %v1512_v41, %s4617_s28  ;;  %v6188_v50 = vpop.permute.xlu0 %3014  ;;  %v6190_v38 = vpop.permute.xlu1 %3016 }
 0x399   :  { %8025 = vst [vmem:[#allocation142_spill] sm:$0xff] %v6188_v50  ;;  %8026 = vst [vmem:[#allocation143_spill] sm:$0xff] %v6190_v38  ;;  %v8043_v50 = vld [vmem:[#allocation16_spill] sm:$0xff] }
 0x39b   :  { %3040 = vrot.lane.b32.xlu1 %v5888_v57, %s4617_s28  ;;  %v2026_v57 = vld [vmem:[%s7645_s4 + $0x10] sm:$0xff] }
 0x39c   :  { %3042 = vrot.lane.b32.xlu0 %v5883_v48, %s4617_s28  ;;  %v6196_v12 = vpop.permute.xlu0 %3018  ;;  %v6198_v40 = vpop.permute.xlu1 %3020  ;;  %v2027_v48 = vld [vmem:[%s7645_s4 + $0x18] sm:$0xff] }
 0x39d   :  { %8027 = vst [vmem:[#allocation144_spill] sm:$0xff] %v6196_v12  ;;  %8028 = vst [vmem:[#allocation145_spill] sm:$0xff] %v6198_v40  ;;  %v8038_v40 = vld [vmem:[#allocation8_spill] sm:$0xff] }
 0x39f   :  { %3044 = vrot.lane.b32.xlu1 %v5896_v25, %s4617_s28 }
 0x3a0   :  { %3046 = vrot.lane.b32.xlu0 %v5900_v20, %s4617_s28  ;;  %v6204_v41 = vpop.permute.xlu0 %3022  ;;  %v6206_v47 = vpop.permute.xlu1 %3024 }
 0x3a1   :  { %8029 = vst [vmem:[#allocation146_spill] sm:$0xff] %v6204_v41  ;;  %8030 = vst [vmem:[#allocation147_spill] sm:$0xff] %v6206_v47  ;;  %v4353_v47 = vpack.c.bf16 %v2027_v48, %v2026_v57  ;;  %v8039_v41 = vld [vmem:[#allocation61_spill] sm:$0xff]  ;;  %v8041_v48 = vld [vmem:[#allocation12_spill] sm:$0xff] }
 0x3a3   :  { %3048 = vrot.lane.b32.xlu1 %v5908_v16, %s4617_s28  ;;  %4354 = vmatprep.subr.bf16.mxu1 %v4353_v47 }
 0x3a4   :  { %3050 = vrot.lane.b32.xlu0 %v5914_v0, %s4617_s28  ;;  %v6212_v45 = vpop.permute.xlu0 %3026  ;;  %v6214_v15 = vpop.permute.xlu1 %3028  ;;  %4356 = vmatpush3.bf16.msra.mxu1 %v4353_v47 }
 0x3a5   :  { %8031 = vst [vmem:[#allocation148_spill] sm:$0xff] %v6212_v45  ;;  %8032 = vst [vmem:[#allocation149_spill] sm:$0xff] %v6214_v15 }
 0x3a7   :  { %3052 = vrot.lane.b32.xlu1 %v5920_v36, %s4617_s28 }
 0x3a8   :  { %3054 = vrot.lane.b32.xlu0 %v5926_v31, %s4617_s28  ;;  %v6220_v25 = vpop.permute.xlu0 %3030  ;;  %v6222_v20 = vpop.permute.xlu1 %3032 }
 0x3a9   :  { %8033 = vst [vmem:[#allocation150_spill] sm:$0xff] %v6220_v25  ;;  %8034 = vst [vmem:[#allocation151_spill] sm:$0xff] %v6222_v20 }
 0x3ac   :  { %v6230_v15 = vpop.permute.xlu0 %3034  ;;  %v6232_v45 = vpop.permute.xlu1 %3036 }
 0x3ad   :  { %8035 = vst [vmem:[#allocation152_spill] sm:$0xff] %v6230_v15  ;;  %8036 = vst [vmem:[#allocation153_spill] sm:$0xff] %v6232_v45 }
 0x3b0   :  { %v6234_v17 = vpop.permute.xlu0 %3038  ;;  %v1562_v25 = vpop.permute.xlu1 %1561 }
 0x3b1   :  { %8037 = vst [vmem:[#allocation154_spill] sm:$0xff] %v6234_v17  ;;  %v1674_v20 = vadd.f32 %v1562_v25, %v8038_v40 }
 0x3b3   :  { %v6238_v38 = vadd.f32 %v8039_v41, %v1674_v20 }
 0x3b4   :  { %v1560_v12 = vpop.permute.xlu0 %1559  ;;  %v1566_v56 = vpop.permute.xlu1 %1565 }
 0x3b5   :  { %v4019_v51 = vmul.f32 -1.442695, %v6238_v38  ;;  %v1673_v57 = vadd.f32 %v1560_v12, %v8040_v28  ;;  %v1676_v15 = vadd.f32 %v1566_v56, %v8041_v48  ;;  %v8044_v48 = vld [vmem:[#allocation14_spill] sm:$0xff] }
 0x3b7   :  { %4440 = vpow2.f32 %v4019_v51  ;;  %v6244_v45 = vadd.f32 %v8039_v41, %v1673_v57  ;;  %v6247_v47 = vadd.f32 %v8039_v41, %v1676_v15 }
 0x3b8   :  { %v1564_v17 = vpop.permute.xlu0 %1563  ;;  %v1570_v25 = vpop.permute.xlu1 %1569 }
 0x3b9   :  { %v4018_v20 = vmul.f32 -1.442695, %v6244_v45  ;;  %v4021_v40 = vmul.f32 -1.442695, %v6247_v47  ;;  %v1675_v35 = vadd.f32 %v1564_v17, %v8042_v39  ;;  %v1678_v13 = vadd.f32 %v1570_v25, %v8043_v50 }
 0x3bb   :  { %4442 = vpow2.f32 %v4018_v20  ;;  %v6254_v12 = vadd.f32 %v8039_v41, %v1675_v35  ;;  %v6257_v51 = vadd.f32 %v8039_v41, %v1678_v13 }
 0x3bc   :  { %4444 = vpow2.f32 %v4021_v40  ;;  %v1568_v56 = vpop.permute.xlu0 %1567  ;;  %v1574_v28 = vpop.permute.xlu1 %1573 }
 0x3bd   :  { %v4020_v15 = vmul.f32 -1.442695, %v6254_v12  ;;  %v4023_v57 = vmul.f32 -1.442695, %v6257_v51  ;;  %v1677_v8 = vadd.f32 %v1568_v56, %v8044_v48  ;;  %v1680_v17 = vadd.f32 %v1574_v28, %v8045_v10  ;;  %v8047_v56 = vld [vmem:[#allocation24_spill] sm:$0xff] }
 0x3bf   :  { %4446 = vpow2.f32 %v4020_v15  ;;  %v6264_v39 = vadd.f32 %v8039_v41, %v1677_v8  ;;  %v6267_v35 = vadd.f32 %v8039_v41, %v1680_v17 }
 0x3c0   :  { %4448 = vpow2.f32 %v4023_v57  ;;  %v1572_v13 = vpop.permute.xlu0 %1571  ;;  %v1578_v50 = vpop.permute.xlu1 %1577 }
 0x3c1   :  { %v4441_v25 = vpop.eup %4440  ;;  %v4022_v20 = vmul.f32 -1.442695, %v6264_v39  ;;  %v4025_v40 = vmul.f32 -1.442695, %v6267_v35  ;;  %v1679_v53 = vadd.f32 %v1572_v13, %v8046_v18  ;;  %v1682_v48 = vadd.f32 %v1578_v50, %v8047_v56 }
 0x3c2   :  { %v1873_v10 = vadd.f32 1.0, %v4441_v25  ;;  %v8049_v25 = vld [vmem:[#allocation28_spill] sm:$0xff] }
 0x3c3   :  { %4450 = vpow2.f32 %v4022_v20  ;;  %v6274_v8 = vadd.f32 %v8039_v41, %v1679_v53  ;;  %v6277_v28 = vadd.f32 %v8039_v41, %v1682_v48 }
 0x3c4   :  { %4452 = vrcp.f32 %v1873_v10  ;;  %v1576_v15 = vpop.permute.xlu0 %1575  ;;  %v1582_v57 = vpop.permute.xlu1 %1581 }
 0x3c5   :  { %v4443_v17 = vpop.eup %4442  ;;  %4454 = vpow2.f32 %v4025_v40  ;;  %v4024_v46 = vmul.f32 -1.442695, %v6274_v8  ;;  %v1681_v21 = vadd.f32 %v1576_v15, %v8048_v33  ;;  %v4027_v50 = vmul.f32 -1.442695, %v6277_v28  ;;  %v8050_v15 = vld [vmem:[#allocation26_spill] sm:$0xff] }
 0x3c6   :  { %v4445_v18 = vpop.eup %4444  ;;  %v1872_v13 = vadd.f32 1.0, %v4443_v17  ;;  %v1684_v20 = vadd.f32 %v1582_v57, %v8049_v25 }
 0x3c7   :  { %v1875_v53 = vadd.f32 1.0, %v4445_v18  ;;  %4456 = vpow2.f32 %v4024_v46  ;;  %v6284_v56 = vadd.f32 %v8039_v41, %v1681_v21 }
 0x3c8   :  { %4458 = vrcp.f32 %v1872_v13  ;;  %v6287_v48 = vadd.f32 %v8039_v41, %v1684_v20  ;;  %v1580_v40 = vpop.permute.xlu0 %1579  ;;  %v1586_v10 = vpop.permute.xlu1 %1585 }
 0x3c9   :  { %v4447_v30 = vpop.eup %4446  ;;  %4460 = vrcp.f32 %v1875_v53  ;;  %v4026_v33 = vmul.f32 -1.442695, %v6284_v56  ;;  %v1683_v17 = vadd.f32 %v1580_v40, %v8050_v15  ;;  %v1686_v49 = vadd.f32 %v1586_v10, %v8051_v2 }
 0x3ca   :  { %v4449_v57 = vpop.eup %4448  ;;  %v1874_v18 = vadd.f32 1.0, %v4447_v30  ;;  %4462 = vpow2.f32 %v4027_v50  ;;  %v4029_v46 = vmul.f32 -1.442695, %v6287_v48  ;;  %v8052_v50 = vld [vmem:[#allocation30_spill] sm:$0xff] }
 0x3cb   :  { %v1877_v21 = vadd.f32 1.0, %v4449_v57  ;;  %4464 = vpow2.f32 %v4026_v33  ;;  %v6294_v13 = vadd.f32 %v8039_v41, %v1683_v17  ;;  %v6297_v25 = vadd.f32 %v8039_v41, %v1686_v49 }
 0x3cc   :  { %4466 = vrcp.f32 %v1874_v18  ;;  %v1584_v20 = vpop.permute.xlu0 %1583  ;;  %v1590_v53 = vpop.permute.xlu1 %1589 }
 0x3cd   :  { %v4451_v58 = vpop.eup %4450  ;;  %4468 = vrcp.f32 %v1877_v21  ;;  %v4028_v2 = vmul.f32 -1.442695, %v6294_v13  ;;  %v4031_v30 = vmul.f32 -1.442695, %v6297_v25  ;;  %v1685_v40 = vadd.f32 %v1584_v20, %v8052_v50 }
 0x3ce   :  { %v4453_v10 = vpop.eup %4452  ;;  %v1876_v15 = vadd.f32 1.0, %v4451_v58  ;;  %4470 = vpow2.f32 %v4029_v46  ;;  %v1688_v33 = vadd.f32 %v1590_v53, %v7913_v37  ;;  %v8053_v46 = vld [vmem:[#allocation34_spill] sm:$0xff] }
 0x3cf   :  { %v4455_v17 = vpop.eup %4454  ;;  %v1987_v49 = vmul.f32 %v4453_v10, %v6238_v38  ;;  %4472 = vpow2.f32 %v4028_v2  ;;  %v6305_v57 = vadd.f32 %v8039_v41, %v1685_v40 }
 0x3d0   :  { %4474 = vrcp.f32 %v1876_v15  ;;  %v1879_v18 = vadd.f32 1.0, %v4455_v17  ;;  %v6308_v21 = vadd.f32 %v8039_v41, %v1688_v33  ;;  %v1588_v42 = vpop.permute.xlu0 %1587  ;;  %v1594_v55 = vpop.permute.xlu1 %1593 }
 0x3d1   :  { %v4457_v20 = vpop.eup %4456  ;;  %4476 = vpow2.f32 %v4031_v30  ;;  %v4030_v58 = vmul.f32 -1.442695, %v6305_v57  ;;  %v1687_v37 = vadd.f32 %v1588_v42, %v8053_v46  ;;  %v1690_v53 = vadd.f32 %v1594_v55, %v7915_v61  ;;  %2075 = vrot.lane.b32.xlu0 %v1987_v49, %s4617_s28 }
 0x3d2   :  { %v4459_v38 = vpop.eup %4458  ;;  %4478 = vrcp.f32 %v1879_v18  ;;  %v1878_v2 = vadd.f32 1.0, %v4457_v20  ;;  %v4033_v50 = vmul.f32 -1.442695, %v6308_v21 }
 0x3d3   :  { %v4461_v40 = vpop.eup %4460  ;;  %v1986_v10 = vmul.f32 %v4459_v38, %v6244_v45  ;;  %4480 = vpow2.f32 %v4030_v58  ;;  %v6317_v15 = vadd.f32 %v8039_v41, %v1687_v37  ;;  %v6320_v30 = vadd.f32 %v8039_v41, %v1690_v53 }
 0x3d4   :  { %v4463_v42 = vpop.eup %4462  ;;  %v1989_v61 = vmul.f32 %v4461_v40, %v6247_v47  ;;  %4482 = vrcp.f32 %v1878_v2  ;;  %v1592_v55 = vpop.permute.xlu0 %1591 }
 0x3d5   :  { %v1598_v33 = vpop.permute.xlu1 %1597  ;;  %v4465_v17 = vpop.eup %4464  ;;  %v1881_v49 = vadd.f32 1.0, %v4463_v42  ;;  %4484 = vpow2.f32 %v4033_v50  ;;  %v4032_v18 = vmul.f32 -1.442695, %v6317_v15  ;;  %2073 = vrot.lane.b32.xlu1 %v1986_v10, %s4617_s28  ;;  %v4035_v58 = vmul.f32 -1.442695, %v6320_v30 }
 0x3d6   :  { %v4467_v45 = vpop.eup %4466  ;;  %v1880_v20 = vadd.f32 1.0, %v4465_v17  ;;  %v1689_v46 = vadd.f32 %v1592_v55, %v7914_v7  ;;  %v1692_v37 = vadd.f32 %v1598_v33, %v7917_v27  ;;  %2079 = vrot.lane.b32.xlu0 %v1989_v61, %s4617_s28 }
 0x3d7   :  { %v4469_v47 = vpop.eup %4468  ;;  %v1988_v53 = vmul.f32 %v4467_v45, %v6254_v12  ;;  %4486 = vrcp.f32 %v1881_v49 }
 0x3d8   :  { %v4471_v38 = vpop.eup %4470  ;;  %v1991_v2 = vmul.f32 %v4469_v47, %v6257_v51  ;;  %4488 = vrcp.f32 %v1880_v20  ;;  %v6332_v50 = vadd.f32 %v8039_v41, %v1689_v46  ;;  %v6335_v40 = vadd.f32 %v8039_v41, %v1692_v37  ;;  %v1596_v10 = vpop.permute.xlu0 %1595 }
 0x3d9   :  { %v1602_v7 = vpop.permute.xlu1 %1601  ;;  %v4473_v42 = vpop.eup %4472  ;;  %v1883_v27 = vadd.f32 1.0, %v4471_v38  ;;  %4490 = vpow2.f32 %v4032_v18  ;;  %v1691_v61 = vadd.f32 %v1596_v10, %v7916_v60  ;;  %2077 = vrot.lane.b32.xlu1 %v1988_v53, %s4617_s28 }
 0x3da   :  { %v1694_v12 = vadd.f32 %v1602_v7, %v7919_v59  ;;  %v4475_v55 = vpop.eup %4474  ;;  %v1882_v51 = vadd.f32 1.0, %v4473_v42  ;;  %4492 = vpow2.f32 %v4035_v58  ;;  %v4034_v33 = vmul.f32 -1.442695, %v6332_v50  ;;  %2083 = vrot.lane.b32.xlu0 %v1991_v2, %s4617_s28 }
 0x3db   :  { %v4037_v17 = vmul.f32 -1.442695, %v6335_v40  ;;  %v4477_v49 = vpop.eup %4476  ;;  %v1990_v45 = vmul.f32 %v4475_v55, %v6264_v39  ;;  %4494 = vrcp.f32 %v1883_v27  ;;  %v6345_v18 = vadd.f32 %v8039_v41, %v1691_v61 }
 0x3dc   :  { %v6348_v60 = vadd.f32 %v8039_v41, %v1694_v12  ;;  %v4479_v59 = vpop.eup %4478  ;;  %4496 = vrcp.f32 %v1882_v51  ;;  %v1885_v20 = vadd.f32 1.0, %v4477_v49  ;;  %v1600_v58 = vpop.permute.xlu0 %1599 }
 0x3dd   :  { %v1606_v46 = vpop.permute.xlu1 %1605  ;;  %v4481_v37 = vpop.eup %4480  ;;  %v1993_v47 = vmul.f32 %v4479_v59, %v6267_v35  ;;  %4498 = vpow2.f32 %v4034_v33  ;;  %v4036_v53 = vmul.f32 -1.442695, %v6345_v18  ;;  %2081 = vrot.lane.b32.xlu1 %v1990_v45, %s4617_s28  ;;  %v1693_v2 = vadd.f32 %v1600_v58, %v7918_v29 }
 0x3de   :  { %v4483_v39 = vpop.eup %4482  ;;  %4500 = vrcp.f32 %v1885_v20  ;;  %v1884_v38 = vadd.f32 1.0, %v4481_v37  ;;  %v1696_v10 = vadd.f32 %v1606_v46, %v7921_v4  ;;  %v4039_v27 = vmul.f32 -1.442695, %v6348_v60  ;;  %v8054_v4 = vld [vmem:[#allocation50_spill] sm:$0xff] }
 0x3df   :  { %v4485_v7 = vpop.eup %4484  ;;  %v1992_v42 = vmul.f32 %v4483_v39, %v6274_v8  ;;  %4502 = vpow2.f32 %v4037_v17  ;;  %2087 = vrot.lane.b32.xlu0 %v1993_v47, %s4617_s28  ;;  %v6359_v61 = vadd.f32 %v8039_v41, %v1693_v2  ;;  %v8055_v8 = vld [vmem:[#allocation56_spill] sm:$0xff] }
 0x3e0   :  { %4504 = vrcp.f32 %v1884_v38  ;;  %v1887_v35 = vadd.f32 1.0, %v4485_v7  ;;  %v6362_v12 = vadd.f32 %v8039_v41, %v1696_v10  ;;  %v1604_v55 = vpop.permute.xlu0 %1603 }
 0x3e1   :  { %v1610_v29 = vpop.permute.xlu1 %1609  ;;  %v4487_v51 = vpop.eup %4486  ;;  %4506 = vpow2.f32 %v4036_v53  ;;  %v1695_v33 = vadd.f32 %v1604_v55, %v8054_v4  ;;  %2085 = vrot.lane.b32.xlu1 %v1992_v42, %s4617_s28  ;;  %v4038_v59 = vmul.f32 -1.442695, %v6359_v61 }
 0x3e2   :  { %v1698_v17 = vadd.f32 %v1610_v29, %v8055_v8  ;;  %v4489_v49 = vpop.eup %4488  ;;  %v1995_v45 = vmul.f32 %v4487_v51, %v6277_v28  ;;  %4508 = vrcp.f32 %v1887_v35  ;;  %v4041_v20 = vmul.f32 -1.442695, %v6362_v12  ;;  %v8056_v35 = vld [vmem:[#allocation54_spill] sm:$0xff]  ;;  %v8057_v29 = vld [vmem:[#allocation60_spill] sm:$0xff] }
 0x3e3   :  { %v4491_v58 = vpop.eup %4490  ;;  %v1994_v46 = vmul.f32 %v4489_v49, %v6284_v56  ;;  %4510 = vpow2.f32 %v4039_v27  ;;  %v6372_v37 = vadd.f32 %v8039_v41, %v1695_v33 }
 0x3e4   :  { %v6375_v47 = vadd.f32 %v8039_v41, %v1698_v17  ;;  %v4493_v53 = vpop.eup %4492  ;;  %v1886_v39 = vadd.f32 1.0, %v4491_v58  ;;  %4512 = vpow2.f32 %v4038_v59  ;;  %2091 = vrot.lane.b32.xlu0 %v1995_v45, %s4617_s28  ;;  %v1608_v28 = vpop.permute.xlu0 %1607 }
 0x3e5   :  { %v1614_v38 = vpop.permute.xlu1 %1613  ;;  %v4495_v2 = vpop.eup %4494  ;;  %v1889_v10 = vadd.f32 1.0, %v4493_v53  ;;  %4514 = vpow2.f32 %v4041_v20  ;;  %v4040_v7 = vmul.f32 -1.442695, %v6372_v37  ;;  %2089 = vrot.lane.b32.xlu1 %v1994_v46, %s4617_s28  ;;  %v1697_v55 = vadd.f32 %v1608_v28, %v8056_v35  ;;  %v8058_v46 = vld [vmem:[#allocation58_spill] sm:$0xff]  ;;  %v8059_v53 = vld [vmem:[#allocation67_spill] sm:$0xff] }
 0x3e6   :  { %v4043_v56 = vmul.f32 -1.442695, %v6375_v47  ;;  %v4497_v42 = vpop.eup %4496  ;;  %v1997_v27 = vmul.f32 %v4495_v2, %v6287_v48  ;;  %4516 = vrcp.f32 %v1886_v39  ;;  %v1700_v51 = vadd.f32 %v1614_v38, %v8057_v29 }
 0x3e7   :  { %v4499_v4 = vpop.eup %4498  ;;  %v1996_v33 = vmul.f32 %v4497_v42, %v6294_v13  ;;  %4518 = vrcp.f32 %v1889_v10  ;;  %v6386_v49 = vadd.f32 %v8039_v41, %v1697_v55 }
 0x3e8   :  { %v4501_v8 = vpop.eup %4500  ;;  %v1888_v17 = vadd.f32 1.0, %v4499_v4  ;;  %4520 = vpow2.f32 %v4040_v7  ;;  %v6389_v45 = vadd.f32 %v8039_v41, %v1700_v51  ;;  %2095 = vrot.lane.b32.xlu0 %v1997_v27, %s4617_s28  ;;  %v1612_v48 = vpop.permute.xlu0 %1611 }
 0x3e9   :  { %v1618_v59 = vpop.permute.xlu1 %1617  ;;  %v4503_v20 = vpop.eup %4502  ;;  %v1999_v58 = vmul.f32 %v4501_v8, %v6297_v25  ;;  %4522 = vpow2.f32 %v4043_v56  ;;  %v1699_v13 = vadd.f32 %v1612_v48, %v8058_v46  ;;  %2093 = vrot.lane.b32.xlu1 %v1996_v33, %s4617_s28  ;;  %v4042_v2 = vmul.f32 -1.442695, %v6386_v49  ;;  %v8060_v8 = vld [vmem:[#allocation63_spill] sm:$0xff]  ;;  %v8061_v48 = vld [vmem:[#allocation72_spill] sm:$0xff] }
 0x3ea   :  { %v1702_v39 = vadd.f32 %v1618_v59, %v8059_v53  ;;  %v4505_v28 = vpop.eup %4504  ;;  %4524 = vrcp.f32 %v1888_v17  ;;  %v1891_v38 = vadd.f32 1.0, %v4503_v20  ;;  %v4045_v42 = vmul.f32 -1.442695, %v6389_v45 }
 0x3eb   :  { %v4507_v10 = vpop.eup %4506  ;;  %v1998_v7 = vmul.f32 %v4505_v28, %v6305_v57  ;;  %v6400_v27 = vadd.f32 %v8039_v41, %v1699_v13 }
 0x3ec   :  { %v6403_v25 = vadd.f32 %v8039_v41, %v1702_v39  ;;  %v4509_v56 = vpop.eup %4508  ;;  %4526 = vrcp.f32 %v1891_v38  ;;  %v1890_v35 = vadd.f32 1.0, %v4507_v10  ;;  %2099 = vrot.lane.b32.xlu0 %v1999_v58, %s4617_s28  ;;  %v1616_v55 = vpop.permute.xlu0 %1615 }
 0x3ed   :  { %v1622_v29 = vpop.permute.xlu1 %1621  ;;  %v4511_v51 = vpop.eup %4510  ;;  %v2001_v4 = vmul.f32 %v4509_v56, %v6308_v21  ;;  %4528 = vpow2.f32 %v4042_v2  ;;  %2097 = vrot.lane.b32.xlu1 %v1998_v7, %s4617_s28  ;;  %v1701_v17 = vadd.f32 %v1616_v55, %v8060_v8  ;;  %v4044_v58 = vmul.f32 -1.442695, %v6400_v27  ;;  %v8062_v7 = vld [vmem:[#allocation70_spill] sm:$0xff] }
 0x3ee   :  { %v4513_v57 = vpop.eup %4512  ;;  %4530 = vrcp.f32 %v1890_v35  ;;  %v1893_v33 = vadd.f32 1.0, %v4511_v51  ;;  %v1704_v59 = vadd.f32 %v1622_v29, %v8061_v48  ;;  %v4047_v13 = vmul.f32 -1.442695, %v6403_v25 }
 0x3ef   :  { %v4515_v20 = vpop.eup %4514  ;;  %v1892_v46 = vadd.f32 1.0, %v4513_v57  ;;  %4532 = vpow2.f32 %v4045_v42  ;;  %v6413_v39 = vadd.f32 %v8039_v41, %v1701_v17 }
 0x3f0   :  { %v4517_v53 = vpop.eup %4516  ;;  %4534 = vrcp.f32 %v1893_v33  ;;  %v1895_v21 = vadd.f32 1.0, %v4515_v20  ;;  %v6416_v28 = vadd.f32 %v8039_v41, %v1704_v59  ;;  %2103 = vrot.lane.b32.xlu0 %v2001_v4, %s4617_s28  ;;  %v1620_v38 = vpop.permute.xlu0 %1619  ;;  %v8063_v4 = vld [vmem:[#allocation78_spill] sm:$0xff] }
 0x3f1   :  { %v4519_v2 = vpop.eup %4518  ;;  %v2000_v10 = vmul.f32 %v4517_v53, %v6317_v15  ;;  %4536 = vrcp.f32 %v1892_v46  ;;  %v1703_v42 = vadd.f32 %v1620_v38, %v8062_v7  ;;  %v1626_v56 = vpop.permute.xlu1 %1625  ;;  %v4046_v29 = vmul.f32 -1.442695, %v6413_v39  ;;  %v8064_v53 = vld [vmem:[#allocation76_spill] sm:$0xff] }
 0x3f2   :  { %v4521_v35 = vpop.eup %4520  ;;  %v2003_v55 = vmul.f32 %v4519_v2, %v6320_v30  ;;  %4538 = vrcp.f32 %v1895_v21  ;;  %v1706_v15 = vadd.f32 %v1626_v56, %v8063_v4  ;;  %v4049_v48 = vmul.f32 -1.442695, %v6416_v28 }
 0x3f3   :  { %v4523_v51 = vpop.eup %4522  ;;  %v1894_v57 = vadd.f32 1.0, %v4521_v35  ;;  %4540 = vpow2.f32 %v4044_v58  ;;  %v6424_v33 = vadd.f32 %v8039_v41, %v1703_v42  ;;  %2101 = vrot.lane.b32.xlu1 %v2000_v10, %s4617_s28 }
 0x3f4   :  { %v4525_v8 = vpop.eup %4524  ;;  %v1897_v17 = vadd.f32 1.0, %v4523_v51  ;;  %4542 = vpow2.f32 %v4047_v13  ;;  %2107 = vrot.lane.b32.xlu0 %v2003_v55, %s4617_s28  ;;  %v1624_v30 = vpop.permute.xlu0 %1623  ;;  %v6433_v46 = vadd.f32 %v8039_v41, %v1706_v15 }
 0x3f5   :  { %v2002_v59 = vmul.f32 %v4525_v8, %v6332_v50  ;;  %4544 = vrcp.f32 %v1894_v57  ;;  %v4048_v20 = vmul.f32 -1.442695, %v6424_v33  ;;  %v1705_v21 = vadd.f32 %v1624_v30, %v8064_v53  ;;  %v8065_v30 = vld [vmem:[#allocation84_spill] sm:$0xff]  ;;  %v8066_v53 = vld [vmem:[#allocation82_spill] sm:$0xff] }
 0x3f6   :  { %v4527_v58 = vpop.eup %4526  ;;  %4546 = vrcp.f32 %v1897_v17  ;;  %v4051_v2 = vmul.f32 -1.442695, %v6433_v46 }
 0x3f7   :  { %v4529_v38 = vpop.eup %4528  ;;  %v2005_v13 = vmul.f32 %v4527_v58, %v6335_v40  ;;  %4548 = vpow2.f32 %v4046_v29  ;;  %2105 = vrot.lane.b32.xlu1 %v2002_v59, %s4617_s28  ;;  %v6440_v7 = vadd.f32 %v8039_v41, %v1705_v21 }
 0x3f8   :  { %v4531_v10 = vpop.eup %4530  ;;  %v1896_v50 = vadd.f32 1.0, %v4529_v38  ;;  %4550 = vpow2.f32 %v4049_v48 }
 0x3f9   :  { %v4533_v42 = vpop.eup %4532  ;;  %v2004_v56 = vmul.f32 %v4531_v10, %v6345_v18  ;;  %4552 = vpow2.f32 %v4048_v20  ;;  %2111 = vrot.lane.b32.xlu0 %v2005_v13, %s4617_s28  ;;  %v4050_v55 = vmul.f32 -1.442695, %v6440_v7 }
 0x3fa   :  { %v4535_v35 = vpop.eup %4534  ;;  %4554 = vrcp.f32 %v1896_v50  ;;  %v1899_v40 = vadd.f32 1.0, %v4533_v42 }
 0x3fb   :  { %v4537_v29 = vpop.eup %4536  ;;  %v2007_v51 = vmul.f32 %v4535_v35, %v6348_v60  ;;  %4556 = vpow2.f32 %v4051_v2  ;;  %2109 = vrot.lane.b32.xlu1 %v2004_v56, %s4617_s28 }
 0x3fc   :  { %v4539_v57 = vpop.eup %4538  ;;  %v2006_v4 = vmul.f32 %v4537_v29, %v6359_v61  ;;  %4558 = vrcp.f32 %v1899_v40 }
 0x3fd   :  { %v4541_v15 = vpop.eup %4540  ;;  %v2009_v18 = vmul.f32 %v4539_v57, %v6362_v12  ;;  %4560 = vpow2.f32 %v4050_v55  ;;  %2115 = vrot.lane.b32.xlu0 %v2007_v51, %s4617_s28  ;;  %v1630_v8 = vpop.permute.xlu1 %1629 }
 0x3fe   :  { %v4543_v17 = vpop.eup %4542  ;;  %v1898_v48 = vadd.f32 1.0, %v4541_v15  ;;  %v1708_v59 = vadd.f32 %v1630_v8, %v8065_v30  ;;  %v1628_v20 = vpop.permute.xlu0 %1627 }
 0x3ff   :  { %v4545_v60 = vpop.eup %4544  ;;  %v1901_v58 = vadd.f32 1.0, %v4543_v17  ;;  %2113 = vrot.lane.b32.xlu1 %v2006_v4, %s4617_s28  ;;  %v1707_v21 = vadd.f32 %v1628_v20, %v8066_v53 }
 0x400   :  { %v4547_v61 = vpop.eup %4546  ;;  %v2008_v38 = vmul.f32 %v4545_v60, %v6372_v37  ;;  %4562 = vrcp.f32 %v1898_v48  ;;  %v6455_v12 = vadd.f32 %v8039_v41, %v1708_v59  ;;  %v8067_v48 = vld [vmem:[#allocation91_spill] sm:$0xff] }
 0x401   :  { %v4549_v13 = vpop.eup %4548  ;;  %v2011_v2 = vmul.f32 %v4547_v61, %v6375_v47  ;;  %4564 = vrcp.f32 %v1901_v58  ;;  %2119 = vrot.lane.b32.xlu0 %v2009_v18, %s4617_s28  ;;  %v6460_v10 = vadd.f32 %v8039_v41, %v1707_v21  ;;  %v8068_v58 = vld [vmem:[#allocation87_spill] sm:$0xff] }
 0x402   :  { %v4551_v50 = vpop.eup %4550  ;;  %v1900_v42 = vadd.f32 1.0, %v4549_v13  ;;  %v4053_v40 = vmul.f32 -1.442695, %v6455_v12 }
 0x403   :  { %v4553_v56 = vpop.eup %4552  ;;  %v1903_v35 = vadd.f32 1.0, %v4551_v50  ;;  %2117 = vrot.lane.b32.xlu1 %v2008_v38, %s4617_s28  ;;  %v4052_v51 = vmul.f32 -1.442695, %v6460_v10 }
 0x404   :  { %v4555_v37 = vpop.eup %4554  ;;  %4566 = vrcp.f32 %v1900_v42  ;;  %v1902_v55 = vadd.f32 1.0, %v4553_v56 }
 0x405   :  { %v4557_v29 = vpop.eup %4556  ;;  %v2010_v47 = vmul.f32 %v4555_v37, %v6386_v49  ;;  %4568 = vrcp.f32 %v1903_v35  ;;  %2123 = vrot.lane.b32.xlu0 %v2011_v2, %s4617_s28 }
 0x406   :  { %v4559_v57 = vpop.eup %4558  ;;  %4570 = vrcp.f32 %v1902_v55  ;;  %v1905_v4 = vadd.f32 1.0, %v4557_v29 }
 0x407   :  { %v4561_v15 = vpop.eup %4560  ;;  %v2013_v18 = vmul.f32 %v4559_v57, %v6389_v45  ;;  %4572 = vpow2.f32 %v4053_v40  ;;  %2121 = vrot.lane.b32.xlu1 %v2010_v47, %s4617_s28 }
 0x408   :  { %4574 = vrcp.f32 %v1905_v4  ;;  %v1904_v8 = vadd.f32 1.0, %v4561_v15 }
 0x409   :  { %4576 = vpow2.f32 %v4052_v51  ;;  %2127 = vrot.lane.b32.xlu0 %v2013_v18, %s4617_s28  ;;  %v1634_v49 = vpop.permute.xlu1 %1633 }
 0x40a   :  { %v4563_v17 = vpop.eup %4562  ;;  %4578 = vrcp.f32 %v1904_v8  ;;  %v1710_v30 = vadd.f32 %v1634_v49, %v8067_v48  ;;  %v1632_v59 = vpop.permute.xlu0 %1631 }
 0x40b   :  { %v4565_v20 = vpop.eup %4564  ;;  %v2012_v60 = vmul.f32 %v4563_v17, %v6400_v27  ;;  %v1709_v53 = vadd.f32 %v1632_v59, %v8068_v58 }
 0x40c   :  { %v2015_v45 = vmul.f32 %v4565_v20, %v6403_v25  ;;  %v1757_v21 = vadd.f32 %v8039_v41, %v1710_v30 }
 0x40d   :  { %2125 = vrot.lane.b32.xlu1 %v2012_v60, %s4617_s28  ;;  %v1756_v61 = vadd.f32 %v8039_v41, %v1709_v53 }
 0x40e   :  { %v4567_v38 = vpop.eup %4566  ;;  %2131 = vrot.lane.b32.xlu0 %v2015_v45, %s4617_s28  ;;  %v4055_v13 = vmul.f32 -1.442695, %v1757_v21  ;;  %v6494_v48 = vpop.permute.xlu0 %3042 }
 0x40f   :  { %v4569_v2 = vpop.eup %4568  ;;  %v2014_v50 = vmul.f32 %v4567_v38, %v6413_v39  ;;  %v4054_v42 = vmul.f32 -1.442695, %v1756_v61  ;;  %8069 = vst [vmem:[#allocation8_spill] sm:$0xff] %v6494_v48 }
 0x410   :  { %v4571_v56 = vpop.eup %4570  ;;  %v2017_v27 = vmul.f32 %v4569_v2, %v6416_v28  ;;  %4580 = vpow2.f32 %v4055_v13 }
 0x411   :  { %v4573_v35 = vpop.eup %4572  ;;  %v2016_v25 = vmul.f32 %v4571_v56, %v6424_v33  ;;  %4582 = vpow2.f32 %v4054_v42  ;;  %2129 = vrot.lane.b32.xlu1 %v2014_v50, %s4617_s28 }
 0x412   :  { %v4575_v40 = vpop.eup %4574  ;;  %v1907_v41 = vadd.f32 1.0, %v4573_v35  ;;  %2135 = vrot.lane.b32.xlu0 %v2017_v27, %s4617_s28 }
 0x413   :  { %v4577_v37 = vpop.eup %4576  ;;  %v2019_v55 = vmul.f32 %v4575_v40, %v6433_v46 }
 0x414   :  { %v4579_v29 = vpop.eup %4578  ;;  %4584 = vrcp.f32 %v1907_v41  ;;  %v1906_v39 = vadd.f32 1.0, %v4577_v37 }
 0x415   :  { %v2018_v47 = vmul.f32 %v4579_v29, %v6440_v7  ;;  %2133 = vrot.lane.b32.xlu1 %v2016_v25, %s4617_s28 }
 0x416   :  { %4586 = vrcp.f32 %v1906_v39  ;;  %2139 = vrot.lane.b32.xlu0 %v2019_v55, %s4617_s28 }
 0x419   :  { %2137 = vrot.lane.b32.xlu1 %v2018_v47, %s4617_s28 }
 0x41a   :  { %v4581_v28 = vpop.eup %4580 }
 0x41b   :  { %v4583_v33 = vpop.eup %4582  ;;  %v1909_v51 = vadd.f32 1.0, %v4581_v28 }
 0x41c   :  { %v1908_v57 = vadd.f32 1.0, %v4583_v33 }
 0x41d   :  { %4588 = vrcp.f32 %v1909_v51 }
 0x41e   :  { %v4585_v4 = vpop.eup %4584  ;;  %4590 = vrcp.f32 %v1908_v57 }
 0x41f   :  { %v2021_v46 = vmul.f32 %v4585_v4, %v6455_v12  ;;  %v6500_v12 = vpop.permute.xlu1 %3040 }
 0x420   :  { %v4587_v15 = vpop.eup %4586  ;;  %8070 = vst [vmem:[#allocation61_spill] sm:$0xff] %v6500_v12 }
 0x421   :  { %v2020_v18 = vmul.f32 %v4587_v15, %v6460_v10  ;;  %2143 = vrot.lane.b32.xlu0 %v2021_v46, %s4617_s28  ;;  %v6504_v10 = vpop.permute.xlu0 %3046 }
 0x422   :  { %8071 = vst [vmem:[#allocation6_spill] sm:$0xff] %v6504_v10 }
 0x423   :  { %2141 = vrot.lane.b32.xlu1 %v2020_v18, %s4617_s28  ;;  %v6510_v30 = vpop.permute.xlu1 %3044 }
 0x424   :  { %8072 = vst [vmem:[#allocation12_spill] sm:$0xff] %v6510_v30 }
 0x425   :  { %v6514_v59 = vpop.permute.xlu0 %3050 }
 0x427   :  { %v4589_v7 = vpop.eup %4588  ;;  %v6520_v20 = vpop.permute.xlu1 %3048 }
 0x428   :  { %v4591_v8 = vpop.eup %4590  ;;  %v2023_v49 = vmul.f32 %v4589_v7, %v1757_v21 }
 0x429   :  { %v2022_v17 = vmul.f32 %v4591_v8, %v1756_v61  ;;  %v6524_v60 = vpop.permute.xlu0 %3054 }
 0x42a   :  { %2147 = vrot.lane.b32.xlu0 %v2023_v49, %s4617_s28 }
 0x42b   :  { %2145 = vrot.lane.b32.xlu1 %v2022_v17, %s4617_s28  ;;  %v6530_v58 = vpop.permute.xlu1 %3052 }
 0x42e   :  { %3058 = vrot.lane.b32.xlu0 %v5938_v1, %s4617_s28 }
 0x42f   :  { %3056 = vrot.lane.b32.xlu1 %v5932_v54, %s4617_s28 }
 0x432   :  { %3062 = vrot.lane.b32.xlu0 %v5950_v6, %s4617_s28 }
 0x433   :  { %3060 = vrot.lane.b32.xlu1 %v5944_v3, %s4617_s28 }
 0x436   :  { %3066 = vrot.lane.b32.xlu0 %v5962_v11, %s4617_s28 }
 0x437   :  { %3064 = vrot.lane.b32.xlu1 %v5956_v9, %s4617_s28 }
 0x43a   :  { %3070 = vrot.lane.b32.xlu0 %v5978_v32, %s4617_s28 }
 0x43b   :  { %3068 = vrot.lane.b32.xlu1 %v5968_v14, %s4617_s28 }
 0x43e   :  { %3074 = vrot.lane.b32.xlu0 %v5990_v22, %s4617_s28 }
 0x43f   :  { %3072 = vrot.lane.b32.xlu1 %v5984_v5, %s4617_s28 }
 0x442   :  { %3078 = vrot.lane.b32.xlu0 %v6006_v26, %s4617_s28 }
 0x443   :  { %3076 = vrot.lane.b32.xlu1 %v6000_v52, %s4617_s28  ;;  %v2076_v53 = vpop.permute.xlu0 %2075 }
 0x446   :  { %3082 = vrot.lane.b32.xlu0 %v6018_v19, %s4617_s28 }
 0x447   :  { %3080 = vrot.lane.b32.xlu1 %v6012_v24, %s4617_s28  ;;  %v2074_v45 = vpop.permute.xlu1 %2073 }
 0x448   :  { %v2080_v21 = vpop.permute.xlu0 %2079  ;;  %4252 = vmatprep.mubr.msk.f32.mxu1 %vm1189_vm12, %v2074_v45 }
 0x449   :  { %4253 = vmatmul.mubr.msk.f32.vlgmr.msra.gmra.mrb[38].mxu1 %vm1189_vm12, %v2076_v53 }
 0x44a   :  { %3086 = vrot.lane.b32.xlu0 %v6030_v63, %s4617_s28 }
 0x44b   :  { %3084 = vrot.lane.b32.xlu1 %v6024_v62, %s4617_s28  ;;  %v2078_v61 = vpop.permute.xlu1 %2077 }
 0x44c   :  { %v2084_v38 = vpop.permute.xlu0 %2083  ;;  %4255 = vmatprep.mubr.msk.f32.mxu1 %vm1189_vm12, %v2078_v61 }
 0x44d   :  { %4256 = vmatmul.mubr.msk.f32.gmra.mrb[40].mxu1 %vm1189_vm12, %v2080_v21 }
 0x44f   :  { %v2082_v13 = vpop.permute.xlu1 %2081 }
 0x450   :  { %4258 = vmatprep.mubr.msk.f32.mxu1 %vm1189_vm12, %v2082_v13 }
 0x451   :  { %v2088_v2 = vpop.permute.xlu0 %2087  ;;  %4259 = vmatmul.mubr.msk.f32.gmra.mrb[42].mxu1 %vm1189_vm12, %v2084_v38 }
 0x453   :  { %v2086_v50 = vpop.permute.xlu1 %2085 }
 0x454   :  { %4261 = vmatprep.mubr.msk.f32.mxu1 %vm1189_vm12, %v2086_v50 }
 0x455   :  { %4262 = vmatmul.mubr.msk.f32.gmra.mrb[44].mxu1 %vm1189_vm12, %v2088_v2  ;;  %v6583_v2 = vld [vmem:[%s7646_s5] ss:$0 sm:$0xff]  ;;  %s4620_s5 = smov [#allocation2]  }
 0x456   :  { %v2092_v42 = vpop.permute.xlu0 %2091 }
 0x457   :  { %v2090_v56 = vpop.permute.xlu1 %2089 }
 0x458   :  { %4264 = vmatprep.mubr.msk.f32.mxu1 %vm1189_vm12, %v2090_v56 }
 0x459   :  { %4265 = vmatmul.mubr.msk.f32.gmra.mrb[46].mxu1 %vm1189_vm12, %v2092_v42 }
 0x45a   :  { %v2096_v27 = vpop.permute.xlu0 %2095 }
 0x45b   :  { %v2094_v35 = vpop.permute.xlu1 %2093 }
 0x45c   :  { %4267 = vmatprep.mubr.msk.f32.mxu1 %vm1189_vm12, %v2094_v35 }
 0x45d   :  { %4268 = vmatmul.mubr.msk.f32.gmra.mrb[48].mxu1 %vm1189_vm12, %v2096_v27 }
 0x45e   :  { %v2100_v25 = vpop.permute.xlu0 %2099 }
 0x45f   :  { %v2098_v40 = vpop.permute.xlu1 %2097 }
 0x460   :  { %4270 = vmatprep.mubr.msk.f32.mxu1 %vm1189_vm12, %v2098_v40 }
 0x461   :  { %4271 = vmatmul.mubr.msk.f32.gmra.mrb[50].mxu1 %vm1189_vm12, %v2100_v25 }
 0x462   :  { %v2104_v41 = vpop.permute.xlu0 %2103 }
 0x465   :  { %v2102_v37 = vpop.permute.xlu1 %2101 }
 0x466   :  { %v2108_v55 = vpop.permute.xlu0 %2107  ;;  %4273 = vmatprep.mubr.msk.f32.mxu1 %vm1189_vm12, %v2102_v37 }
 0x467   :  { %4274 = vmatmul.mubr.msk.f32.gmra.mrb[52].mxu1 %vm1189_vm12, %v2104_v41 }
 0x469   :  { %v2106_v29 = vpop.permute.xlu1 %2105 }
 0x46a   :  { %4276 = vmatprep.mubr.msk.f32.mxu1 %vm1189_vm12, %v2106_v29 }
 0x46b   :  { %v2112_v39 = vpop.permute.xlu0 %2111  ;;  %4277 = vmatmul.mubr.msk.f32.gmra.mrb[54].mxu1 %vm1189_vm12, %v2108_v55 }
 0x46d   :  { %v2110_v47 = vpop.permute.xlu1 %2109 }
 0x46e   :  { %4279 = vmatprep.mubr.msk.f32.mxu1 %vm1189_vm12, %v2110_v47 }
 0x46f   :  { %v2116_v28 = vpop.permute.xlu0 %2115  ;;  %4280 = vmatmul.mubr.msk.f32.gmra.mrb[56].mxu1 %vm1189_vm12, %v2112_v39 }
 0x471   :  { %v2114_v33 = vpop.permute.xlu1 %2113 }
 0x472   :  { %4282 = vmatprep.mubr.msk.f32.mxu1 %vm1189_vm12, %v2114_v33 }
 0x473   :  { %v2120_v51 = vpop.permute.xlu0 %2119  ;;  %4283 = vmatmul.mubr.msk.f32.gmra.mrb[58].mxu1 %vm1189_vm12, %v2116_v28 }
 0x475   :  { %v2118_v57 = vpop.permute.xlu1 %2117 }
 0x476   :  { %4285 = vmatprep.mubr.msk.f32.mxu1 %vm1189_vm12, %v2118_v57 }
 0x477   :  { %v2124_v4 = vpop.permute.xlu0 %2123  ;;  %4286 = vmatmul.mubr.msk.f32.gmra.mrb[60].mxu1 %vm1189_vm12, %v2120_v51 }
 0x479   :  { %v2122_v46 = vpop.permute.xlu1 %2121 }
 0x47a   :  { %4288 = vmatprep.mubr.msk.f32.mxu1 %vm1189_vm12, %v2122_v46 }
 0x47b   :  { %v2128_v15 = vpop.permute.xlu0 %2127  ;;  %4289 = vmatmul.mubr.msk.f32.gmra.mrb[62].mxu1 %vm1189_vm12, %v2124_v4 }
 0x47f   :  { %v2126_v18 = vpop.permute.xlu1 %2125 }
 0x480   :  { %v2132_v7 = vpop.permute.xlu0 %2131  ;;  %4291 = vmatprep.mubr.msk.f32.mxu1 %vm1189_vm12, %v2126_v18 }
 0x481   :  { %4292 = vmatmul.mubr.msk.f32.gmra.mrb[64].mxu1 %vm1189_vm12, %v2128_v15 }
 0x483   :  { %v2130_v8 = vpop.permute.xlu1 %2129 }
 0x484   :  { %4294 = vmatprep.mubr.msk.f32.mxu1 %vm1189_vm12, %v2130_v8  ;;  %v2136_v49 = vpop.permute.xlu0 %2135 }
 0x485   :  { %4295 = vmatmul.mubr.msk.f32.gmra.mrb[66].mxu1 %vm1189_vm12, %v2132_v7 }
 0x487   :  { %v2134_v17 = vpop.permute.xlu1 %2133 }
 0x488   :  { %4297 = vmatprep.mubr.msk.f32.mxu1 %vm1189_vm12, %v2134_v17  ;;  %v2140_v45 = vpop.permute.xlu0 %2139 }
 0x489   :  { %4298 = vmatmul.mubr.msk.f32.gmra.mrb[68].mxu1 %vm1189_vm12, %v2136_v49 }
 0x48b   :  { %v2138_v53 = vpop.permute.xlu1 %2137 }
 0x48c   :  { %4300 = vmatprep.mubr.msk.f32.mxu1 %vm1189_vm12, %v2138_v53 }
 0x48d   :  { %4301 = vmatmul.mubr.msk.f32.gmra.mrb[70].mxu1 %vm1189_vm12, %v2140_v45 }
 0x493   :  { %v2144_v61 = vpop.permute.xlu0 %2143 }
 0x495   :  { %v2142_v21 = vpop.permute.xlu1 %2141 }
 0x496   :  { %4303 = vmatprep.mubr.msk.f32.mxu1 %vm1189_vm12, %v2142_v21 }
 0x497   :  { %4304 = vmatmul.mubr.msk.f32.gmra.mrb[72].mxu1 %vm1189_vm12, %v2144_v61 }
 0x49c   :  { %v2148_v13 = vpop.permute.xlu0 %2147 }
 0x49d   :  { %v2146_v38 = vpop.permute.xlu1 %2145 }
 0x49e   :  { %4306 = vmatprep.mubr.msk.f32.mxu1 %vm1189_vm12, %v2146_v38 }
 0x49f   :  { %4307 = vmatmul.mubr.msk.f32.gmra.mrb[74].mxu1 %vm1189_vm12, %v2148_v13 }
 0x4a0   :  { %v6729_v48 = vpop.permute.xlu0 %3058 }
 0x4a1   :  { %8073 = vst [vmem:[#allocation10_spill] sm:$0xff] %v6729_v48  ;;  %v6733_v62 = vpop.permute.xlu1 %3056 }
 0x4a2   :  { %8074 = vst [vmem:[#allocation16_spill] sm:$0xff] %v6733_v62 }
 0x4a4   :  { %v6747_v19 = vpop.permute.xlu0 %3062 }
 0x4a5   :  { %8076 = vst [vmem:[#allocation20_spill] sm:$0xff] %v6747_v19  ;;  %v6749_v52 = vpop.permute.xlu1 %3060 }
 0x4a6   :  { %8077 = vst [vmem:[#allocation18_spill] sm:$0xff] %v6749_v52 }
 0x51c   :  { %v4254_v50 = vpop.f32.mrb[38].mxu1 }
 0x51d   :  { %v6586_v42 = vadd.f32 %v4254_v50, %v6583_v2  ;;  %v2291_v56 = vpop.f32.mrb[39].mxu1 }
 0x51e   :  { %v6589_v27 = vadd.f32 %v6583_v2, %v2291_v56 }
 0x51f   :  { %3204 = vrot.lane.b32.xlu0 %v6586_v42, %s4619_s0 }
 0x520   :  { %3202 = vrot.lane.b32.xlu1 %v6589_v27, %s4619_s0  ;;  %v4257_v35 = vpop.f32.mrb[40].mxu1 }
 0x521   :  { %v2301_v25 = vpop.f32.mrb[41].mxu1  ;;  %v6604_v55 = vadd.f32 %v4257_v35, %v6583_v2 }
 0x522   :  { %v6607_v39 = vadd.f32 %v6583_v2, %v2301_v25 }
 0x523   :  { %3356 = vrot.lane.b32.xlu0 %v6586_v42, %s4617_s28 }
 0x524   :  { %3354 = vrot.lane.b32.xlu1 %v6589_v27, %s4617_s28  ;;  %v4260_v40 = vpop.f32.mrb[42].mxu1 }
 0x525   :  { %v2311_v41 = vpop.f32.mrb[43].mxu1  ;;  %v6622_v4 = vadd.f32 %v4260_v40, %v6583_v2 }
 0x526   :  { %v6625_v15 = vadd.f32 %v6583_v2, %v2311_v41 }
 0x527   :  { %3508 = vrot.lane.b32.xlu0 %v6586_v42, %s4618_s16 }
 0x528   :  { %3506 = vrot.lane.b32.xlu1 %v6589_v27, %s4618_s16  ;;  %v4263_v37 = vpop.f32.mrb[44].mxu1 }
 0x529   :  { %v2321_v29 = vpop.f32.mrb[45].mxu1  ;;  %v6648_v17 = vadd.f32 %v4263_v37, %v6583_v2 }
 0x52a   :  { %v6651_v53 = vadd.f32 %v6583_v2, %v2321_v29 }
 0x52b   :  { %3208 = vrot.lane.b32.xlu0 %v6604_v55, %s4619_s0 }
 0x52c   :  { %3206 = vrot.lane.b32.xlu1 %v6607_v39, %s4619_s0  ;;  %v4266_v47 = vpop.f32.mrb[46].mxu1 }
 0x52d   :  { %v2331_v28 = vpop.f32.mrb[47].mxu1  ;;  %v6678_v56 = vadd.f32 %v4266_v47, %v6583_v2 }
 0x52e   :  { %v6681_v35 = vadd.f32 %v6583_v2, %v2331_v28 }
 0x52f   :  { %3360 = vrot.lane.b32.xlu0 %v6604_v55, %s4617_s28 }
 0x530   :  { %3358 = vrot.lane.b32.xlu1 %v6607_v39, %s4617_s28  ;;  %v4269_v33 = vpop.f32.mrb[48].mxu1 }
 0x531   :  { %v2341_v51 = vpop.f32.mrb[49].mxu1  ;;  %v6706_v47 = vadd.f32 %v4269_v33, %v6583_v2 }
 0x532   :  { %v6711_v30 = vadd.f32 %v6583_v2, %v2341_v51 }
 0x533   :  { %3512 = vrot.lane.b32.xlu0 %v6604_v55, %s4618_s16 }
 0x534   :  { %3510 = vrot.lane.b32.xlu1 %v6607_v39, %s4618_s16  ;;  %v4272_v57 = vpop.f32.mrb[50].mxu1 }
 0x535   :  { %v2351_v46 = vpop.f32.mrb[51].mxu1  ;;  %v6738_v63 = vadd.f32 %v4272_v57, %v6583_v2  ;;  %v6759_v57 = vpop.permute.xlu0 %3066 }
 0x536   :  { %v6741_v24 = vadd.f32 %v6583_v2, %v2351_v46  ;;  %8078 = vst [vmem:[#allocation24_spill] sm:$0xff] %v6759_v57  ;;  %v6763_v46 = vpop.permute.xlu1 %3064 }
 0x537   :  { %3212 = vrot.lane.b32.xlu0 %v6622_v4, %s4619_s0  ;;  %8079 = vst [vmem:[#allocation22_spill] sm:$0xff] %v6763_v46 }
 0x538   :  { %3210 = vrot.lane.b32.xlu1 %v6625_v15, %s4619_s0  ;;  %8075 = vst [vmem:[#allocation14_spill] sm:$0xff] %v6741_v24 }
 0x539   :  { %v6783_v46 = vpop.permute.xlu0 %3070 }
 0x53a   :  { %v6631_v18 = vpop.f32.mrb[52].mxu1  ;;  %8082 = vst [vmem:[#allocation32_spill] sm:$0xff] %v6783_v46  ;;  %v6785_v9 = vpop.permute.xlu1 %3068 }
 0x53b   :  { %v6633_v7 = vpop.f32.mrb[53].mxu1  ;;  %3364 = vrot.lane.b32.xlu0 %v6622_v4, %s4617_s28  ;;  %v6769_v22 = vadd.f32 %v6631_v18, %v6583_v2  ;;  %8083 = vst [vmem:[#allocation30_spill] sm:$0xff] %v6785_v9 }
 0x53c   :  { %3362 = vrot.lane.b32.xlu1 %v6625_v15, %s4617_s28  ;;  %v6773_v14 = vadd.f32 %v6583_v2, %v6633_v7 }
 0x53d   :  { %8080 = vst [vmem:[#allocation28_spill] sm:$0xff] %v6769_v22  ;;  %v6791_v18 = vpop.permute.xlu0 %3074 }
 0x53e   :  { %v6639_v8 = vpop.f32.mrb[54].mxu1  ;;  %8081 = vst [vmem:[#allocation26_spill] sm:$0xff] %v6773_v14  ;;  %8084 = vst [vmem:[#allocation34_spill] sm:$0xff] %v6791_v18  ;;  %v6795_v7 = vpop.permute.xlu1 %3072 }
 0x53f   :  { %v6641_v49 = vpop.f32.mrb[55].mxu1  ;;  %3516 = vrot.lane.b32.xlu0 %v6622_v4, %s4618_s16  ;;  %8085 = vst [vmem:[#allocation50_spill] sm:$0xff] %v6795_v7  ;;  %v6801_v46 = vadd.f32 %v6639_v8, %v6583_v2 }
 0x540   :  { %3514 = vrot.lane.b32.xlu1 %v6625_v15, %s4618_s16  ;;  %v6805_v9 = vadd.f32 %v6583_v2, %v6641_v49 }
 0x541   :  { %8086 = vst [vmem:[#allocation56_spill] sm:$0xff] %v6801_v46  ;;  %v6811_v18 = vpop.permute.xlu0 %3078 }
 0x542   :  { %v6653_v45 = vpop.f32.mrb[56].mxu1  ;;  %8087 = vst [vmem:[#allocation54_spill] sm:$0xff] %v6805_v9  ;;  %8088 = vst [vmem:[#allocation60_spill] sm:$0xff] %v6811_v18  ;;  %v6813_v7 = vpop.permute.xlu1 %3076 }
 0x543   :  { %v6655_v21 = vpop.f32.mrb[57].mxu1  ;;  %3216 = vrot.lane.b32.xlu0 %v6648_v17, %s4619_s0  ;;  %8089 = vst [vmem:[#allocation58_spill] sm:$0xff] %v6813_v7  ;;  %v6829_v18 = vadd.f32 %v6653_v45, %v6583_v2 }
 0x544   :  { %3214 = vrot.lane.b32.xlu1 %v6651_v53, %s4619_s0  ;;  %v6833_v7 = vadd.f32 %v6583_v2, %v6655_v21 }
 0x545   :  { %v6819_v8 = vpop.permute.xlu0 %3082  ;;  %8092 = vst [vmem:[#allocation72_spill] sm:$0xff] %v6829_v18 }
 0x546   :  { %v6661_v61 = vpop.f32.mrb[58].mxu1  ;;  %8090 = vst [vmem:[#allocation67_spill] sm:$0xff] %v6819_v8  ;;  %v6823_v49 = vpop.permute.xlu1 %3080  ;;  %8093 = vst [vmem:[#allocation70_spill] sm:$0xff] %v6833_v7 }
 0x547   :  { %v6663_v38 = vpop.f32.mrb[59].mxu1  ;;  %3368 = vrot.lane.b32.xlu0 %v6648_v17, %s4617_s28  ;;  %8091 = vst [vmem:[#allocation63_spill] sm:$0xff] %v6823_v49 }
 0x548   :  { %3366 = vrot.lane.b32.xlu1 %v6651_v53, %s4617_s28  ;;  %v6863_v11 = vadd.f32 %v6583_v2, %v6663_v38 }
 0x549   :  { %v6839_v8 = vpop.permute.xlu0 %3086 }
 0x54a   :  { %v6669_v13 = vpop.f32.mrb[60].mxu1  ;;  %8094 = vst [vmem:[#allocation78_spill] sm:$0xff] %v6839_v8  ;;  %v6841_v49 = vpop.permute.xlu1 %3084  ;;  %v6857_v8 = vadd.f32 %v6661_v61, %v6583_v2  ;;  %8099 = vst [vmem:[#allocation87_spill] sm:$0xff] %v6863_v11 }
 0x54b   :  { %v6671_v50 = vpop.f32.mrb[61].mxu1  ;;  %3520 = vrot.lane.b32.xlu0 %v6648_v17, %s4618_s16  ;;  %8095 = vst [vmem:[#allocation76_spill] sm:$0xff] %v6841_v49  ;;  %v6885_v19 = vadd.f32 %v6669_v13, %v6583_v2 }
 0x54c   :  { %3518 = vrot.lane.b32.xlu1 %v6651_v53, %s4618_s16  ;;  %8098 = vst [vmem:[#allocation91_spill] sm:$0xff] %v6857_v8 }
 0x54d   :  { %8103 = vst [vmem:[#allocation158_spill] sm:$0xff] %v6885_v19 }
 0x54e   :  { %v6683_v25 = vpop.f32.mrb[62].mxu1 }
 0x54f   :  { %v6685_v40 = vpop.f32.mrb[63].mxu1  ;;  %3220 = vrot.lane.b32.xlu0 %v6678_v56, %s4619_s0 }
 0x550   :  { %3218 = vrot.lane.b32.xlu1 %v6681_v35, %s4619_s0 }
 0x553   :  { %3372 = vrot.lane.b32.xlu0 %v6678_v56, %s4617_s28 }
 0x554   :  { %v6693_v41 = vpop.f32.mrb[64].mxu1  ;;  %3370 = vrot.lane.b32.xlu1 %v6681_v35, %s4617_s28 }
 0x555   :  { %v6697_v37 = vpop.f32.mrb[65].mxu1 }
 0x557   :  { %3524 = vrot.lane.b32.xlu0 %v6678_v56, %s4618_s16 }
 0x558   :  { %v6701_v29 = vpop.f32.mrb[66].mxu1  ;;  %3522 = vrot.lane.b32.xlu1 %v6681_v35, %s4618_s16 }
 0x559   :  { %v6708_v28 = vpop.f32.mrb[67].mxu1 }
 0x55b   :  { %3224 = vrot.lane.b32.xlu0 %v6706_v47, %s4619_s0 }
 0x55c   :  { %v6715_v10 = vpop.f32.mrb[68].mxu1  ;;  %3222 = vrot.lane.b32.xlu1 %v6711_v30, %s4619_s0 }
 0x55d   :  { %v6719_v12 = vpop.f32.mrb[69].mxu1 }
 0x55f   :  { %3376 = vrot.lane.b32.xlu0 %v6706_v47, %s4617_s28 }
 0x560   :  { %v6723_v33 = vpop.f32.mrb[70].mxu1  ;;  %3374 = vrot.lane.b32.xlu1 %v6711_v30, %s4617_s28 }
 0x561   :  { %v6727_v51 = vpop.f32.mrb[71].mxu1 }
 0x563   :  { %3528 = vrot.lane.b32.xlu0 %v6706_v47, %s4618_s16 }
 0x564   :  { %3526 = vrot.lane.b32.xlu1 %v6711_v30, %s4618_s16 }
 0x567   :  { %3228 = vrot.lane.b32.xlu0 %v6738_v63, %s4619_s0 }
 0x568   :  { %3226 = vrot.lane.b32.xlu1 %v6741_v24, %s4619_s0 }
 0x56a   :  { %v6751_v26 = vpop.f32.mrb[72].mxu1 }
 0x56b   :  { %v6753_v5 = vpop.f32.mrb[73].mxu1  ;;  %3380 = vrot.lane.b32.xlu0 %v6738_v63, %s4617_s28 }
 0x56c   :  { %3378 = vrot.lane.b32.xlu1 %v6741_v24, %s4617_s28 }
 0x56f   :  { %3532 = vrot.lane.b32.xlu0 %v6738_v63, %s4618_s16 }
 0x570   :  { %3530 = vrot.lane.b32.xlu1 %v6741_v24, %s4618_s16 }
 0x572   :  { %v6775_v32 = vpop.f32.mrb[74].mxu1 }
 0x573   :  { %3232 = vrot.lane.b32.xlu0 %v6769_v22, %s4619_s0  ;;  %v6779_v57 = vpop.f32.mrb[75].mxu1 }
 0x574   :  { %3230 = vrot.lane.b32.xlu1 %v6773_v14, %s4619_s0 }
 0x577   :  { %3384 = vrot.lane.b32.xlu0 %v6769_v22, %s4617_s28 }
 0x578   :  { %3382 = vrot.lane.b32.xlu1 %v6773_v14, %s4617_s28 }
 0x57b   :  { %3536 = vrot.lane.b32.xlu0 %v6769_v22, %s4618_s16  ;;  %v6987_v22 = vadd.f32 %v6583_v2, %v6708_v28 }
 0x57c   :  { %3534 = vrot.lane.b32.xlu1 %v6773_v14, %s4618_s16 }
 0x57f   :  { %3236 = vrot.lane.b32.xlu0 %v6801_v46, %s4619_s0 }
 0x580   :  { %3234 = vrot.lane.b32.xlu1 %v6805_v9, %s4619_s0 }
 0x583   :  { %3388 = vrot.lane.b32.xlu0 %v6801_v46, %s4617_s28 }
 0x584   :  { %3386 = vrot.lane.b32.xlu1 %v6805_v9, %s4617_s28 }
 0x587   :  { %3540 = vrot.lane.b32.xlu0 %v6801_v46, %s4618_s16  ;;  %v6955_v46 = vadd.f32 %v6583_v2, %v6697_v37 }
 0x588   :  { %3538 = vrot.lane.b32.xlu1 %v6805_v9, %s4618_s16 }
 0x589   :  { %8115 = vst [vmem:[#allocation170_spill] sm:$0xff] %v6955_v46 }
 0x58b   :  { %3240 = vrot.lane.b32.xlu0 %v6829_v18, %s4619_s0 }
 0x58c   :  { %3238 = vrot.lane.b32.xlu1 %v6833_v7, %s4619_s0 }
 0x58f   :  { %3392 = vrot.lane.b32.xlu0 %v6829_v18, %s4617_s28 }
 0x590   :  { %3390 = vrot.lane.b32.xlu1 %v6833_v7, %s4617_s28 }
 0x591   :  { %v6847_v45 = vpop.permute.xlu0 %3204 }
 0x592   :  { %8096 = vst [vmem:[#allocation84_spill] sm:$0xff] %v6847_v45  ;;  %v6849_v21 = vpop.permute.xlu1 %3202 }
 0x593   :  { %8097 = vst [vmem:[#allocation82_spill] sm:$0xff] %v6849_v21  ;;  %3544 = vrot.lane.b32.xlu0 %v6829_v18, %s4618_s16  ;;  %v6923_v18 = vadd.f32 %v6583_v2, %v6685_v40 }
 0x594   :  { %3542 = vrot.lane.b32.xlu1 %v6833_v7, %s4618_s16  ;;  %v6891_v7 = vadd.f32 %v6583_v2, %v6671_v50 }
 0x595   :  { %v6859_v49 = vpop.permute.xlu0 %3356  ;;  %8110 = vst [vmem:[#allocation165_spill] sm:$0xff] %v6923_v18 }
 0x596   :  { %v6865_v52 = vpop.permute.xlu1 %3354  ;;  %8104 = vst [vmem:[#allocation159_spill] sm:$0xff] %v6891_v7 }
 0x597   :  { %8100 = vst [vmem:[#allocation155_spill] sm:$0xff] %v6865_v52  ;;  %3244 = vrot.lane.b32.xlu0 %v6857_v8, %s4619_s0 }
 0x598   :  { %3242 = vrot.lane.b32.xlu1 %v6863_v11, %s4619_s0 }
 0x599   :  { %v3509_v21 = vpop.permute.xlu0 %3508 }
 0x59a   :  { %v3507_v45 = vpop.permute.xlu1 %3506 }
 0x59b   :  { %3396 = vrot.lane.b32.xlu0 %v6857_v8, %s4617_s28  ;;  %v3620_v28 = vsel %vm1189_vm12, %v6589_v27, %v3507_v45 }
 0x59c   :  { %3394 = vrot.lane.b32.xlu1 %v6863_v11, %s4617_s28  ;;  %v3659_v54 = vsel %vm3658_vm14, %v3620_v28, %v6865_v52 }
 0x59d   :  { %v6875_v61 = vpop.permute.xlu0 %3208 }
 0x59e   :  { %8101 = vst [vmem:[#allocation156_spill] sm:$0xff] %v6875_v61  ;;  %v6877_v38 = vpop.permute.xlu1 %3206 }
 0x59f   :  { %8102 = vst [vmem:[#allocation157_spill] sm:$0xff] %v6877_v38  ;;  %3548 = vrot.lane.b32.xlu0 %v6857_v8, %s4618_s16 }
 0x5a0   :  { %3546 = vrot.lane.b32.xlu1 %v6863_v11, %s4618_s16  ;;  %v6917_v11 = vadd.f32 %v6683_v25, %v6583_v2 }
 0x5a1   :  { %v6887_v3 = vpop.permute.xlu0 %3360 }
 0x5a2   :  { %v6893_v6 = vpop.permute.xlu1 %3358  ;;  %8108 = vst [vmem:[#allocation163_spill] sm:$0xff] %v6917_v11 }
 0x5a3   :  { %8105 = vst [vmem:[#allocation160_spill] sm:$0xff] %v6893_v6  ;;  %3248 = vrot.lane.b32.xlu0 %v6885_v19, %s4619_s0 }
 0x5a4   :  { %3246 = vrot.lane.b32.xlu1 %v6891_v7, %s4619_s0 }
 0x5a5   :  { %v6899_v38 = vpop.permute.xlu0 %3512 }
 0x5a6   :  { %v6901_v61 = vpop.permute.xlu1 %3510 }
 0x5a7   :  { %3400 = vrot.lane.b32.xlu0 %v6885_v19, %s4617_s28 }
 0x5a8   :  { %3398 = vrot.lane.b32.xlu1 %v6891_v7, %s4617_s28 }
 0x5a9   :  { %v6907_v13 = vpop.permute.xlu0 %3212 }
 0x5aa   :  { %8106 = vst [vmem:[#allocation161_spill] sm:$0xff] %v6907_v13  ;;  %v6909_v50 = vpop.permute.xlu1 %3210 }
 0x5ab   :  { %8107 = vst [vmem:[#allocation162_spill] sm:$0xff] %v6909_v50  ;;  %3552 = vrot.lane.b32.xlu0 %v6885_v19, %s4618_s16 }
 0x5ac   :  { %3550 = vrot.lane.b32.xlu1 %v6891_v7, %s4618_s16  ;;  %v6949_v7 = vadd.f32 %v6693_v41, %v6583_v2 }
 0x5ad   :  { %v6919_v8 = vpop.permute.xlu0 %3364 }
 0x5ae   :  { %8109 = vst [vmem:[#allocation164_spill] sm:$0xff] %v6919_v8  ;;  %v6925_v9 = vpop.permute.xlu1 %3362  ;;  %8114 = vst [vmem:[#allocation169_spill] sm:$0xff] %v6949_v7 }
 0x5af   :  { %8111 = vst [vmem:[#allocation166_spill] sm:$0xff] %v6925_v9  ;;  %3252 = vrot.lane.b32.xlu0 %v6917_v11, %s4619_s0 }
 0x5b0   :  { %3250 = vrot.lane.b32.xlu1 %v6923_v18, %s4619_s0 }
 0x5b1   :  { %v6931_v50 = vpop.permute.xlu0 %3516 }
 0x5b2   :  { %v6933_v13 = vpop.permute.xlu1 %3514 }
 0x5b3   :  { %3404 = vrot.lane.b32.xlu0 %v6917_v11, %s4617_s28 }
 0x5b4   :  { %3402 = vrot.lane.b32.xlu1 %v6923_v18, %s4617_s28 }
 0x5b5   :  { %v6939_v25 = vpop.permute.xlu0 %3216 }
 0x5b6   :  { %8112 = vst [vmem:[#allocation167_spill] sm:$0xff] %v6939_v25  ;;  %v6941_v40 = vpop.permute.xlu1 %3214 }
 0x5b7   :  { %8113 = vst [vmem:[#allocation168_spill] sm:$0xff] %v6941_v40  ;;  %3556 = vrot.lane.b32.xlu0 %v6917_v11, %s4618_s16 }
 0x5b8   :  { %3554 = vrot.lane.b32.xlu1 %v6923_v18, %s4618_s16  ;;  %v6981_v18 = vadd.f32 %v6701_v29, %v6583_v2  ;;  %v3621_v29 = vsel %vm1189_vm12, %v6586_v42, %v3509_v21  ;;  %v8120_v42 = vld [vmem:[#allocation7_spill] sm:$0xff]  ;;  %v8121_v21 = vld [vmem:[#allocation5_spill] sm:$0xff] }
 0x5b9   :  { %v6951_v19 = vpop.permute.xlu0 %3368 }
 0x5ba   :  { %v6957_v14 = vpop.permute.xlu1 %3366 }
 0x5bb   :  { %3256 = vrot.lane.b32.xlu0 %v6949_v7, %s4619_s0 }
 0x5bc   :  { %3254 = vrot.lane.b32.xlu1 %v6955_v46, %s4619_s0 }
 0x5bd   :  { %v6963_v40 = vpop.permute.xlu0 %3520 }
 0x5be   :  { %v6965_v25 = vpop.permute.xlu1 %3518 }
 0x5bf   :  { %3408 = vrot.lane.b32.xlu0 %v6949_v7, %s4617_s28 }
 0x5c0   :  { %3406 = vrot.lane.b32.xlu1 %v6955_v46, %s4617_s28 }
 0x5c1   :  { %v6971_v41 = vpop.permute.xlu0 %3220 }
 0x5c2   :  { %8116 = vst [vmem:[#allocation171_spill] sm:$0xff] %v6971_v41  ;;  %v6973_v37 = vpop.permute.xlu1 %3218 }
 0x5c3   :  { %8117 = vst [vmem:[#allocation172_spill] sm:$0xff] %v6973_v37  ;;  %3560 = vrot.lane.b32.xlu0 %v6949_v7, %s4618_s16  ;;  %v3660_v7 = vsel %vm3658_vm14, %v3621_v29, %v6859_v49  ;;  %v7029_v29 = vadd.f32 %v6715_v10, %v6583_v2  ;;  %v3623_v10 = vsel %vm1189_vm12, %v6604_v55, %v6899_v38 }
 0x5c4   :  { %3558 = vrot.lane.b32.xlu1 %v6955_v46, %s4618_s16  ;;  %v3698_v27 = vmul.f32 %v3660_v7, %v8120_v42 }
 0x5c5   :  { %v6983_v11 = vpop.permute.xlu0 %3372 }
 0x5c6   :  { %v6989_v62 = vpop.permute.xlu1 %3370 }
 0x5c7   :  { %3260 = vrot.lane.b32.xlu0 %v6981_v18, %s4619_s0 }
 0x5c8   :  { %3258 = vrot.lane.b32.xlu1 %v6987_v22, %s4619_s0 }
 0x5c9   :  { %v6995_v37 = vpop.permute.xlu0 %3524 }
 0x5ca   :  { %v6997_v41 = vpop.permute.xlu1 %3522 }
 0x5cb   :  { %3412 = vrot.lane.b32.xlu0 %v6981_v18, %s4617_s28 }
 0x5cc   :  { %3410 = vrot.lane.b32.xlu1 %v6987_v22, %s4617_s28 }
 0x5cd   :  { %v7007_v46 = vpop.permute.xlu0 %3224 }
 0x5ce   :  { %8118 = vst [vmem:[#allocation173_spill] sm:$0xff] %v7007_v46  ;;  %v7011_v48 = vpop.permute.xlu1 %3222  ;;  %v3697_v46 = vmul.f32 %v3659_v54, %v8121_v21 }
 0x5cf   :  { %8119 = vst [vmem:[#allocation174_spill] sm:$0xff] %v7011_v48  ;;  %3564 = vrot.lane.b32.xlu0 %v6981_v18, %s4618_s16  ;;  %v7035_v48 = vadd.f32 %v6583_v2, %v6719_v12  ;;  %v3622_v12 = vsel %vm1189_vm12, %v6607_v39, %v6901_v61  ;;  %v8124_v39 = vld [vmem:[#allocation11_spill] sm:$0xff] }
 0x5d0   :  { %3562 = vrot.lane.b32.xlu1 %v6987_v22, %s4618_s16  ;;  %v3661_v55 = vsel %vm3658_vm14, %v3622_v12, %v6893_v6  ;;  %v7085_v6 = vadd.f32 %v6583_v2, %v6727_v51  ;;  %v3624_v51 = vsel %vm1189_vm12, %v6625_v15, %v6933_v13  ;;  %v8128_v15 = vld [vmem:[#allocation15_spill] sm:$0xff] }
 0x5d1   :  { %v7020_v45 = vpop.permute.xlu0 %3376 }
 0x5d2   :  { %v7023_v24 = vpop.permute.xlu1 %3374 }
 0x5d3   :  { %3775 = vrot.lane.b32.xlu0 %v3698_v27, %s4618_s16  ;;  %v3662_v27 = vsel %vm3658_vm14, %v3623_v10, %v6887_v3  ;;  %v7079_v10 = vadd.f32 %v6723_v33, %v6583_v2  ;;  %v3625_v33 = vsel %vm1189_vm12, %v6622_v4, %v6931_v50  ;;  %v3663_v4 = vsel %vm3658_vm14, %v3624_v51, %v6925_v9 }
 0x5d4   :  { %3773 = vrot.lane.b32.xlu1 %v3697_v46, %s4618_s16  ;;  %v3700_v61 = vmul.f32 %v3662_v27, %v8124_v39  ;;  %v3664_v39 = vsel %vm3658_vm14, %v3625_v33, %v6919_v8  ;;  %v7129_v33 = vadd.f32 %v6751_v26, %v6583_v2  ;;  %v7135_v9 = vadd.f32 %v6583_v2, %v6753_v5 }
 0x5d5   :  { %v7031_v28 = vpop.permute.xlu0 %3528  ;;  %v3702_v13 = vmul.f32 %v3664_v39, %v8128_v15  ;;  %v2993_v26 = vadd.f32 %v6129_v34, %v5914_v0  ;;  %v2992_v5 = vadd.f32 %v6125_v44, %v5908_v16  ;;  %v7163_v0 = vadd.f32 %v6775_v32, %v6583_v2 }
 0x5d6   :  { %v7037_v7 = vpop.permute.xlu1 %3526  ;;  %v7169_v16 = vadd.f32 %v6583_v2, %v6779_v57  ;;  %v3627_v2 = vsel %vm1189_vm12, %v6648_v17, %v6963_v40  ;;  %v2995_v57 = vadd.f32 %v6135_v43, %v5926_v31  ;;  %v3629_v43 = vsel %vm1189_vm12, %v6678_v56, %v6995_v37 }
 0x5d7   :  { %3264 = vrot.lane.b32.xlu0 %v7029_v29, %s4619_s0  ;;  %v3145_v15 = vadd.f32 %v6514_v59, %v2993_v26  ;;  %v8131_v26 = vld [vmem:[#allocation124_spill] sm:$0xff]  ;;  %v3666_v17 = vsel %vm3658_vm14, %v3627_v2, %v6951_v19  ;;  %v8133_v2 = vld [vmem:[#allocation17_spill] sm:$0xff]  ;;  %v3668_v56 = vsel %vm3658_vm14, %v3629_v43, %v6983_v11 }
 0x5d8   :  { %3262 = vrot.lane.b32.xlu1 %v7035_v48, %s4619_s0 }
 0x5d9   :  { %v7043_v54 = vpop.permute.xlu0 %3228 }
 0x5da   :  { %8122 = vst [vmem:[#allocation7_spill] sm:$0xff] %v7043_v54  ;;  %v7045_v46 = vpop.permute.xlu1 %3226 }
 0x5db   :  { %8123 = vst [vmem:[#allocation5_spill] sm:$0xff] %v7045_v46  ;;  %3416 = vrot.lane.b32.xlu0 %v7029_v29, %s4617_s28  ;;  %v8125_v46 = vld [vmem:[#allocation9_spill] sm:$0xff] }
 0x5dc   :  { %3414 = vrot.lane.b32.xlu1 %v7035_v48, %s4617_s28  ;;  %v3699_v54 = vmul.f32 %v3661_v55, %v8125_v46 }
 0x5dd   :  { %v7057_v42 = vpop.permute.xlu0 %3380 }
 0x5de   :  { %v7061_v21 = vpop.permute.xlu1 %3378 }
 0x5df   :  { %3568 = vrot.lane.b32.xlu0 %v7029_v29, %s4618_s16 }
 0x5e0   :  { %3566 = vrot.lane.b32.xlu1 %v7035_v48, %s4618_s16 }
 0x5e1   :  { %v7070_v38 = vpop.permute.xlu0 %3532 }
 0x5e2   :  { %v7073_v52 = vpop.permute.xlu1 %3530  ;;  %v3633_v43 = vsel %vm1189_vm12, %v6738_v63, %v7070_v38  ;;  %v8142_v63 = vld [vmem:[#allocation25_spill] sm:$0xff] }
 0x5e3   :  { %3779 = vrot.lane.b32.xlu0 %v3700_v61, %s4618_s16 }
 0x5e4   :  { %3777 = vrot.lane.b32.xlu1 %v3699_v54, %s4618_s16 }
 0x5e5   :  { %v7081_v12 = vpop.permute.xlu0 %3232 }
 0x5e6   :  { %8126 = vst [vmem:[#allocation11_spill] sm:$0xff] %v7081_v12  ;;  %v7087_v27 = vpop.permute.xlu1 %3230 }
 0x5e7   :  { %8127 = vst [vmem:[#allocation9_spill] sm:$0xff] %v7087_v27  ;;  %3268 = vrot.lane.b32.xlu0 %v7079_v10, %s4619_s0  ;;  %v3701_v27 = vmul.f32 %v3663_v4, %v7951_v23 }
 0x5e8   :  { %3266 = vrot.lane.b32.xlu1 %v7085_v6, %s4619_s0 }
 0x5e9   :  { %v7093_v46 = vpop.permute.xlu0 %3384 }
 0x5ea   :  { %v7095_v54 = vpop.permute.xlu1 %3382 }
 0x5eb   :  { %3420 = vrot.lane.b32.xlu0 %v7079_v10, %s4617_s28 }
 0x5ec   :  { %3418 = vrot.lane.b32.xlu1 %v7085_v6, %s4617_s28 }
 0x5ed   :  { %v7107_v55 = vpop.permute.xlu0 %3536 }
 0x5ee   :  { %v7111_v61 = vpop.permute.xlu1 %3534 }
 0x5ef   :  { %3572 = vrot.lane.b32.xlu0 %v7079_v10, %s4618_s16 }
 0x5f0   :  { %3570 = vrot.lane.b32.xlu1 %v7085_v6, %s4618_s16 }
 0x5f1   :  { %v7120_v50 = vpop.permute.xlu0 %3236 }
 0x5f2   :  { %8129 = vst [vmem:[#allocation15_spill] sm:$0xff] %v7120_v50  ;;  %v7123_v12 = vpop.permute.xlu1 %3234 }
 0x5f3   :  { %8130 = vst [vmem:[#allocation175_spill] sm:$0xff] %v7123_v12  ;;  %3783 = vrot.lane.b32.xlu0 %v3702_v13, %s4618_s16  ;;  %v3144_v12 = vadd.f32 %v6520_v20, %v2992_v5  ;;  %v2994_v5 = vadd.f32 %v8131_v26, %v5920_v36  ;;  %v3628_v36 = vsel %vm1189_vm12, %v6681_v35, %v6997_v41 }
 0x5f4   :  { %3781 = vrot.lane.b32.xlu1 %v3701_v27, %s4618_s16  ;;  %v3667_v35 = vsel %vm3658_vm14, %v3628_v36, %v6989_v62  ;;  %v3631_v41 = vsel %vm1189_vm12, %v6706_v47, %v7031_v28  ;;  %v8137_v36 = vld [vmem:[#allocation14_spill] sm:$0xff] }
 0x5f5   :  { %v7131_v51 = vpop.permute.xlu0 %3388 }
 0x5f6   :  { %v7137_v39 = vpop.permute.xlu1 %3386 }
 0x5f7   :  { %3272 = vrot.lane.b32.xlu0 %v7129_v33, %s4619_s0 }
 0x5f8   :  { %3270 = vrot.lane.b32.xlu1 %v7135_v9, %s4619_s0 }
 0x5f9   :  { %v7143_v23 = vpop.permute.xlu0 %3540 }
 0x5fa   :  { %v7145_v27 = vpop.permute.xlu1 %3538 }
 0x5fb   :  { %3424 = vrot.lane.b32.xlu0 %v7129_v33, %s4617_s28 }
 0x5fc   :  { %3422 = vrot.lane.b32.xlu1 %v7135_v9, %s4617_s28 }
 0x5fd   :  { %v3241_v4 = vpop.permute.xlu0 %3240 }
 0x5fe   :  { %v3239_v13 = vpop.permute.xlu1 %3238  ;;  %v3335_v50 = vmul.f32 %v3241_v4, %v3145_v15  ;;  %v3147_v15 = vadd.f32 %v6524_v60, %v2995_v57 }
 0x5ff   :  { %3576 = vrot.lane.b32.xlu0 %v7129_v33, %s4618_s16  ;;  %v3334_v34 = vmul.f32 %v3239_v13, %v3144_v12  ;;  %v3146_v13 = vadd.f32 %v6530_v58, %v2994_v5  ;;  %v3630_v5 = vsel %vm1189_vm12, %v6711_v30, %v7037_v7  ;;  %v8136_v30 = vld [vmem:[#allocation126_spill] sm:$0xff] }
 0x600   :  { %3574 = vrot.lane.b32.xlu1 %v7135_v9, %s4618_s16  ;;  %v3669_v28 = vsel %vm3658_vm14, %v3630_v5, %v7023_v24  ;;  %v2997_v7 = vadd.f32 %v8136_v30, %v5938_v1  ;;  %v3672_v5 = vsel %vm3658_vm14, %v3633_v43, %v7057_v42  ;;  %v8146_v43 = vld [vmem:[#allocation31_spill] sm:$0xff] }
 0x601   :  { %v7165_v8 = vpop.permute.xlu0 %3392  ;;  %v3707_v38 = vmul.f32 %v3669_v28, %v8142_v63 }
 0x602   :  { %v7172_v44 = vadd.f32 %v7165_v8, %v3335_v50  ;;  %v7174_v59 = vpop.permute.xlu1 %3390  ;;  %v3626_v50 = vsel %vm1189_vm12, %v6651_v53, %v6965_v25  ;;  %v8132_v53 = vld [vmem:[#allocation19_spill] sm:$0xff] }
 0x603   :  { %v7177_v20 = vadd.f32 %v7174_v59, %v3334_v34  ;;  %3276 = vrot.lane.b32.xlu0 %v7163_v0, %s4619_s0  ;;  %v3665_v31 = vsel %vm3658_vm14, %v3626_v50, %v6957_v14  ;;  %v3704_v58 = vmul.f32 %v3666_v17, %v8132_v53  ;;  %v8138_v53 = vld [vmem:[#allocation89_spill] sm:$0xff] }
 0x604   :  { %3274 = vrot.lane.b32.xlu1 %v7169_v16, %s4619_s0  ;;  %v3703_v57 = vmul.f32 %v3665_v31, %v8133_v2  ;;  %v3670_v31 = vsel %vm3658_vm14, %v3631_v41, %v7020_v45  ;;  %v8140_v2 = vld [vmem:[#allocation27_spill] sm:$0xff] }
 0x605   :  { %v7183_v32 = vpop.permute.xlu0 %3544 }
 0x606   :  { %v7185_v12 = vpop.permute.xlu1 %3542 }
 0x607   :  { %3428 = vrot.lane.b32.xlu0 %v7163_v0, %s4617_s28 }
 0x608   :  { %3426 = vrot.lane.b32.xlu1 %v7169_v16, %s4617_s28  ;;  %s3968_s28 = sshll.u32 %s4620_s5, 4  ;;  %s3969_s28 = int_to_ptr.vmem [resolvable:$true] %s3968_s28 }
 0x609   :  { %v3245_v4 = vpop.permute.xlu0 %3244  ;;  %s4592_s8 = scalar_lea.vmem %s3969_s28, 4864  ;;  %p4597_p1 = scmp.lt.s32.totalorder %s3969_s28, %s3969_s28 }
 0x60a   :  { %v3243_v40 = vpop.permute.xlu1 %3242  ;;  %v3337_v60 = vmul.f32 %v3245_v4, %v3147_v15  ;;  %v8134_v4 = vld [vmem:[#allocation23_spill] sm:$0xff]  ;;  %p4593_p0 = scmp.ne.s32.totalorder %s3969_s28, %s4592_s8  ;;  %p4598_p2 = scmp.lt.s32.totalorder %s4592_s8, %s4592_s8 }
 0x60b   :  { %3580 = vrot.lane.b32.xlu0 %v7163_v0, %s4618_s16  ;;  %v3336_v25 = vmul.f32 %v3243_v40, %v3146_v13  ;;  %v3706_v15 = vmul.f32 %v3668_v56, %v8134_v4  ;;  %v8135_v40 = vld [vmem:[#allocation21_spill] sm:$0xff]  ;;  %v8143_v4 = vld [vmem:[#allocation16_spill] sm:$0xff] }
 0x60c   :  { %3578 = vrot.lane.b32.xlu1 %v7169_v16, %s4618_s16  ;;  %v3705_v13 = vmul.f32 %v3667_v35, %v8135_v40  ;;  %v8141_v35 = vld [vmem:[#allocation10_spill] sm:$0xff]  ;;  %v8144_v40 = vld [vmem:[#allocation28_spill] sm:$0xff]  ;;  %p4599_p3 = por %p4598_p2, %p4597_p1 }
 0x60d   :  { %v7218_v34 = vpop.permute.xlu0 %3396  ;;  %v3149_v41 = vadd.f32 %v8141_v35, %v2997_v7  ;;  %v3710_v7 = vmul.f32 %v3672_v5, %v8146_v43  ;;  %v8155_v43 = vld [vmem:[#allocation70_spill] sm:$0xff] }
 0x60e   :  { %v7224_v37 = vadd.f32 %v7218_v34, %v3337_v60  ;;  %v7226_v50 = vpop.permute.xlu1 %3394  ;;  %v3632_v60 = vsel %vm1189_vm12, %v8137_v36, %v7073_v52  ;;  %p4600_p4 = pnand %p4599_p3, %p4593_p0 }
 0x60f   :  { %v7234_v26 = vadd.f32 %v7226_v50, %v3336_v25  ;;  %3787 = vrot.lane.b32.xlu0 %v3704_v58, %s4618_s16  ;;  %v8139_v58 = vld [vmem:[#allocation125_spill] sm:$0xff]  ;;  %v3671_v52 = vsel %vm3658_vm14, %v3632_v60, %v7061_v21 }
 0x610   :  { %3785 = vrot.lane.b32.xlu1 %v3703_v57, %s4618_s16  ;;  %v2996_v25 = vadd.f32 %v8139_v58, %v8138_v53  ;;  %v3708_v57 = vmul.f32 %v3670_v31, %v8140_v2  ;;  %v8145_v31 = vld [vmem:[#allocation26_spill] sm:$0xff]  ;;  %v8147_v58 = vld [vmem:[#allocation29_spill] sm:$0xff] }
 0x611   :  { %v3549_v17 = vpop.permute.xlu0 %3548  ;;  %v3634_v30 = vsel %vm1189_vm12, %v8145_v31, %v7111_v61  ;;  %v8148_v61 = vld [vmem:[#allocation56_spill] sm:$0xff] }
 0x612   :  { %v3547_v47 = vpop.permute.xlu1 %3546 }
 0x613   :  { %3791 = vrot.lane.b32.xlu0 %v3706_v15, %s4618_s16  ;;  %v3148_v15 = vadd.f32 %v8143_v4, %v2996_v25  ;;  %v3709_v25 = vmul.f32 %v3671_v52, %v8147_v58  ;;  %v8151_v4 = vld [vmem:[#allocation33_spill] sm:$0xff]  ;;  %v8157_v58 = vld [vmem:[#allocation127_spill] sm:$0xff] }
 0x614   :  { %3789 = vrot.lane.b32.xlu1 %v3705_v13, %s4618_s16  ;;  %v3635_v13 = vsel %vm1189_vm12, %v8144_v40, %v7107_v55 }
 0x615   :  { %v3249_v56 = vpop.permute.xlu0 %3248  ;;  %v3674_v60 = vsel %vm3658_vm14, %v3635_v13, %v7093_v46  ;;  %v8152_v13 = vld [vmem:[#allocation72_spill] sm:$0xff] }
 0x616   :  { %v3247_v1 = vpop.permute.xlu1 %3246  ;;  %v3339_v28 = vmul.f32 %v3249_v56, %v3149_v41  ;;  %v3637_v56 = vsel %vm1189_vm12, %v8148_v61, %v7143_v23  ;;  %v8149_v41 = vld [vmem:[#allocation54_spill] sm:$0xff]  ;;  %v3639_v31 = vsel %vm1189_vm12, %v8152_v13, %v7183_v32  ;;  %v8160_v32 = vld [vmem:[#allocation37_spill] sm:$0xff] }
 0x617   :  { %3795 = vrot.lane.b32.xlu0 %v3708_v57, %s4618_s16  ;;  %v3338_v36 = vmul.f32 %v3247_v1, %v3148_v15  ;;  %v3673_v57 = vsel %vm3658_vm14, %v3634_v30, %v7095_v54  ;;  %v3636_v63 = vsel %vm1189_vm12, %v8149_v41, %v7145_v27  ;;  %v3676_v52 = vsel %vm3658_vm14, %v3637_v56, %v7131_v51  ;;  %v8153_v27 = vld [vmem:[#allocation97_spill] sm:$0xff]  ;;  %v8154_v30 = vld [vmem:[#allocation128_spill] sm:$0xff] }
 0x618   :  { %3793 = vrot.lane.b32.xlu1 %v3707_v38, %s4618_s16  ;;  %v8150_v38 = vld [vmem:[#allocation35_spill] sm:$0xff]  ;;  %v3711_v15 = vmul.f32 %v3673_v57, %v8151_v4  ;;  %v3675_v23 = vsel %vm3658_vm14, %v3636_v63, %v7137_v39  ;;  %v8159_v56 = vld [vmem:[#allocation20_spill] sm:$0xff]  ;;  %v8161_v4 = vld [vmem:[#allocation18_spill] sm:$0xff] }
 0x619   :  { %v3401_v53 = vpop.permute.xlu0 %3400  ;;  %v3712_v5 = vmul.f32 %v3674_v60, %v8150_v38  ;;  %v8158_v60 = vld [vmem:[#allocation39_spill] sm:$0xff]  ;;  %v3713_v63 = vmul.f32 %v3675_v23, %v8160_v32  ;;  %v3678_v38 = vsel %vm3658_vm14, %v3639_v31, %v7165_v8 }
 0x61a   :  { %v7279_v2 = vadd.f32 %v3401_v53, %v3339_v28  ;;  %v3399_v55 = vpop.permute.xlu1 %3398  ;;  %v2999_v28 = vadd.f32 %v8154_v30, %v8153_v27  ;;  %v3714_v57 = vmul.f32 %v3676_v52, %v8158_v60  ;;  %v8163_v52 = vld [vmem:[#allocation87_spill] sm:$0xff]  ;;  %v8166_v60 = vld [vmem:[#allocation158_spill] sm:$0xff] }
 0x61b   :  { %v7286_v35 = vadd.f32 %v3399_v55, %v3338_v36  ;;  %3799 = vrot.lane.b32.xlu0 %v3710_v7, %s4618_s16  ;;  %v3638_v7 = vsel %vm1189_vm12, %v8155_v43, %v7185_v12  ;;  %v8156_v36 = vld [vmem:[#allocation88_spill] sm:$0xff]  ;;  %v3640_v30 = vsel %vm1189_vm12, %v8163_v52, %v3547_v47  ;;  %v8164_v23 = vld [vmem:[#allocation43_spill] sm:$0xff] }
 0x61c   :  { %3797 = vrot.lane.b32.xlu1 %v3709_v25, %s4618_s16  ;;  %v2998_v25 = vadd.f32 %v8157_v58, %v8156_v36  ;;  %v3151_v41 = vadd.f32 %v8159_v56, %v2999_v28  ;;  %v3677_v12 = vsel %vm3658_vm14, %v3638_v7, %v7174_v59  ;;  %v3716_v43 = vmul.f32 %v3678_v38, %v8164_v23  ;;  %v8165_v36 = vld [vmem:[#allocation41_spill] sm:$0xff] }
 0x61d   :  { %v3553_v1 = vpop.permute.xlu0 %3552  ;;  %v3715_v58 = vmul.f32 %v3677_v12, %v8165_v36  ;;  %v8171_v12 = vld [vmem:[#allocation13_spill] sm:$0xff] }
 0x61e   :  { %v3551_v40 = vpop.permute.xlu1 %3550  ;;  %v3150_v13 = vadd.f32 %v8161_v4, %v2998_v25  ;;  %v3679_v25 = vsel %vm3658_vm14, %v3640_v30, %v7226_v50  ;;  %v3643_v47 = vsel %vm1189_vm12, %v8166_v60, %v3553_v1  ;;  %v8170_v1 = vld [vmem:[#allocation163_spill] sm:$0xff]  ;;  %v8174_v30 = vld [vmem:[#allocation96_spill] sm:$0xff] }
 0x61f   :  { %3803 = vrot.lane.b32.xlu0 %v3712_v5, %s4618_s16 }
 0x620   :  { %3801 = vrot.lane.b32.xlu1 %v3711_v15, %s4618_s16  ;;  %v8162_v15 = vld [vmem:[#allocation91_spill] sm:$0xff] }
 0x621   :  { %v3253_v61 = vpop.permute.xlu0 %3252  ;;  %v3641_v27 = vsel %vm1189_vm12, %v8162_v15, %v3549_v17  ;;  %v8172_v15 = vld [vmem:[#allocation130_spill] sm:$0xff] }
 0x622   :  { %v3251_v5 = vpop.permute.xlu1 %3250  ;;  %v3341_v28 = vmul.f32 %v3253_v61, %v3151_v41  ;;  %v3680_v59 = vsel %vm3658_vm14, %v3641_v27, %v7218_v34  ;;  %v8167_v61 = vld [vmem:[#allocation159_spill] sm:$0xff]  ;;  %v8173_v27 = vld [vmem:[#allocation165_spill] sm:$0xff] }
 0x623   :  { %3807 = vrot.lane.b32.xlu0 %v3714_v57, %s4618_s16  ;;  %v3340_v8 = vmul.f32 %v3251_v5, %v3150_v13  ;;  %v3642_v56 = vsel %vm1189_vm12, %v8167_v61, %v3551_v40  ;;  %v8168_v41 = vld [vmem:[#allocation47_spill] sm:$0xff]  ;;  %v3682_v5 = vsel %vm3658_vm14, %v3643_v47, %v3401_v53  ;;  %v3001_v40 = vadd.f32 %v8172_v15, %v8171_v12  ;;  %v8179_v47 = vld [vmem:[#allocation22_spill] sm:$0xff] }
 0x624   :  { %3805 = vrot.lane.b32.xlu1 %v3713_v63, %s4618_s16  ;;  %v3718_v34 = vmul.f32 %v3680_v59, %v8168_v41  ;;  %v8169_v63 = vld [vmem:[#allocation45_spill] sm:$0xff]  ;;  %v3681_v4 = vsel %vm3658_vm14, %v3642_v56, %v3399_v55  ;;  %v8176_v53 = vld [vmem:[#allocation51_spill] sm:$0xff]  ;;  %v8177_v55 = vld [vmem:[#allocation24_spill] sm:$0xff] }
 0x625   :  { %v3405_v31 = vpop.permute.xlu0 %3404  ;;  %v3717_v38 = vmul.f32 %v3679_v25, %v8169_v63  ;;  %v3153_v36 = vadd.f32 %v8177_v55, %v3001_v40  ;;  %v8187_v55 = vld [vmem:[#allocation95_spill] sm:$0xff] }
 0x626   :  { %v7329_v7 = vadd.f32 %v3405_v31, %v3341_v28  ;;  %v3403_v17 = vpop.permute.xlu1 %3402  ;;  %v8175_v28 = vld [vmem:[#allocation129_spill] sm:$0xff] }
 0x627   :  { %v7335_v57 = vadd.f32 %v3403_v17, %v3340_v8  ;;  %3811 = vrot.lane.b32.xlu0 %v3716_v43, %s4618_s16  ;;  %v3000_v23 = vadd.f32 %v8175_v28, %v8174_v30  ;;  %v3720_v43 = vmul.f32 %v3682_v5, %v8176_v53  ;;  %v8181_v5 = vld [vmem:[#allocation53_spill] sm:$0xff]  ;;  %v8184_v30 = vld [vmem:[#allocation94_spill] sm:$0xff]  ;;  %v8185_v28 = vld [vmem:[#allocation132_spill] sm:$0xff] }
 0x628   :  { %3809 = vrot.lane.b32.xlu1 %v3715_v58, %s4618_s16  ;;  %v8178_v58 = vld [vmem:[#allocation49_spill] sm:$0xff]  ;;  %v8186_v53 = vld [vmem:[#allocation59_spill] sm:$0xff] }
 0x629   :  { %v3557_v32 = vpop.permute.xlu0 %3556  ;;  %v3719_v59 = vmul.f32 %v3681_v4, %v8178_v58  ;;  %v3152_v61 = vadd.f32 %v8179_v47, %v3000_v23  ;;  %v3003_v23 = vadd.f32 %v8185_v28, %v8184_v30  ;;  %v8190_v47 = vld [vmem:[#allocation32_spill] sm:$0xff]  ;;  %v8197_v28 = vld [vmem:[#allocation141_spill] sm:$0xff] }
 0x62a   :  { %v3555_v50 = vpop.permute.xlu1 %3554  ;;  %v3645_v13 = vsel %vm1189_vm12, %v8170_v1, %v3557_v32 }
 0x62b   :  { %3815 = vrot.lane.b32.xlu0 %v3718_v34, %s4618_s16  ;;  %v3644_v52 = vsel %vm1189_vm12, %v8173_v27, %v3555_v50  ;;  %v3684_v25 = vsel %vm3658_vm14, %v3645_v13, %v3405_v31  ;;  %v8180_v34 = vld [vmem:[#allocation55_spill] sm:$0xff]  ;;  %v8182_v13 = vld [vmem:[#allocation169_spill] sm:$0xff]  ;;  %v8183_v27 = vld [vmem:[#allocation170_spill] sm:$0xff] }
 0x62c   :  { %3813 = vrot.lane.b32.xlu1 %v3717_v38, %s4618_s16  ;;  %v3683_v56 = vsel %vm3658_vm14, %v3644_v52, %v3403_v17  ;;  %v3722_v32 = vmul.f32 %v3684_v25, %v8180_v34 }
 0x62d   :  { %v3257_v8 = vpop.permute.xlu0 %3256  ;;  %v3721_v50 = vmul.f32 %v3683_v56, %v8181_v5  ;;  %v8192_v5 = vld [vmem:[#allocation36_spill] sm:$0xff] }
 0x62e   :  { %v3255_v60 = vpop.permute.xlu1 %3254  ;;  %v3343_v41 = vmul.f32 %v3257_v8, %v3153_v36  ;;  %v8188_v36 = vld [vmem:[#allocation131_spill] sm:$0xff] }
 0x62f   :  { %3819 = vrot.lane.b32.xlu0 %v3720_v43, %s4618_s16  ;;  %v3342_v63 = vmul.f32 %v3255_v60, %v3152_v61  ;;  %v3002_v58 = vadd.f32 %v8188_v36, %v8187_v55  ;;  %v3155_v61 = vadd.f32 %v8190_v47, %v3003_v23 }
 0x630   :  { %3817 = vrot.lane.b32.xlu1 %v3719_v59, %s4618_s16  ;;  %v8189_v59 = vld [vmem:[#allocation57_spill] sm:$0xff] }
 0x631   :  { %v3409_v38 = vpop.permute.xlu0 %3408 }
 0x632   :  { %v7365_v1 = vadd.f32 %v3409_v38, %v3343_v41  ;;  %v3407_v4 = vpop.permute.xlu1 %3406  ;;  %v8191_v41 = vld [vmem:[#allocation30_spill] sm:$0xff] }
 0x633   :  { %v7367_v31 = vadd.f32 %v3407_v4, %v3342_v63  ;;  %3823 = vrot.lane.b32.xlu0 %v3722_v32, %s4618_s16  ;;  %v3154_v34 = vadd.f32 %v8191_v41, %v3002_v58  ;;  %v8199_v58 = vld [vmem:[#allocation82_spill] sm:$0xff] }
 0x634   :  { %3821 = vrot.lane.b32.xlu1 %v3721_v50, %s4618_s16  ;;  %v8193_v50 = vld [vmem:[#allocation107_spill] sm:$0xff] }
 0x635   :  { %v3561_v17 = vpop.permute.xlu0 %3560 }
 0x636   :  { %v3647_v12 = vsel %vm1189_vm12, %v8182_v13, %v3561_v17  ;;  %v3559_v15 = vpop.permute.xlu1 %3558 }
 0x637   :  { %v3686_v40 = vsel %vm3658_vm14, %v3647_v12, %v3409_v38  ;;  %v3646_v52 = vsel %vm1189_vm12, %v8183_v27, %v3559_v15  ;;  %v8194_v12 = vld [vmem:[#allocation38_spill] sm:$0xff] }
 0x638   :  { %v3724_v43 = vmul.f32 %v3686_v40, %v8186_v53  ;;  %v3685_v8 = vsel %vm3658_vm14, %v3646_v52, %v3407_v4  ;;  %v2975_v4 = vadd.f32 %v8193_v50, %v8192_v5  ;;  %v8195_v15 = vld [vmem:[#allocation106_spill] sm:$0xff] }
 0x639   :  { %v3723_v25 = vmul.f32 %v3685_v8, %v8189_v59  ;;  %v3261_v60 = vpop.permute.xlu0 %3260  ;;  %v2974_v40 = vadd.f32 %v8195_v15, %v8194_v12  ;;  %v8196_v52 = vld [vmem:[#allocation142_spill] sm:$0xff]  ;;  %v8206_v15 = vld [vmem:[#allocation133_spill] sm:$0xff] }
 0x63a   :  { %3827 = vrot.lane.b32.xlu0 %v3724_v43, %s4618_s16  ;;  %v3259_v56 = vpop.permute.xlu1 %3258  ;;  %v3345_v32 = vmul.f32 %v3261_v60, %v3155_v61  ;;  %v3127_v30 = vadd.f32 %v8196_v52, %v2975_v4  ;;  %v8198_v43 = vld [vmem:[#allocation84_spill] sm:$0xff]  ;;  %v8200_v61 = vld [vmem:[#allocation66_spill] sm:$0xff] }
 0x63b   :  { %3825 = vrot.lane.b32.xlu1 %v3723_v25, %s4618_s16  ;;  %v3344_v63 = vmul.f32 %v3259_v56, %v3154_v34  ;;  %v3126_v23 = vadd.f32 %v8197_v28, %v2974_v40  ;;  %v8201_v34 = vld [vmem:[#allocation155_spill] sm:$0xff] }
 0x63c   :  { %v3317_v8 = vmul.f32 %v8198_v43, %v3127_v30  ;;  %v8207_v30 = vld [vmem:[#allocation34_spill] sm:$0xff] }
 0x63d   :  { %v3413_v38 = vpop.permute.xlu0 %3412  ;;  %v3316_v59 = vmul.f32 %v8199_v58, %v3126_v23  ;;  %v8209_v58 = vld [vmem:[#allocation40_spill] sm:$0xff] }
 0x63e   :  { %v7389_v17 = vadd.f32 %v3413_v38, %v3345_v32  ;;  %v3411_v13 = vpop.permute.xlu1 %3410  ;;  %v3469_v47 = vadd.f32 %v6859_v49, %v3317_v8  ;;  %v8204_v49 = vld [vmem:[#allocation134_spill] sm:$0xff] }
 0x63f   :  { %v7393_v27 = vadd.f32 %v3411_v13, %v3344_v63  ;;  %v3468_v32 = vadd.f32 %v8201_v34, %v3316_v59  ;;  %v8202_v63 = vld [vmem:[#allocation62_spill] sm:$0xff]  ;;  %v8210_v59 = vld [vmem:[#allocation109_spill] sm:$0xff] }
 0x641   :  { %v3565_v53 = vpop.permute.xlu0 %3564 }
 0x642   :  { %v3649_v55 = vsel %vm1189_vm12, %v6981_v18, %v3565_v53  ;;  %v3563_v36 = vpop.permute.xlu1 %3562  ;;  %v8208_v53 = vld [vmem:[#allocation50_spill] sm:$0xff] }
 0x643   :  { %v3688_v25 = vsel %vm3658_vm14, %v3649_v55, %v3413_v38  ;;  %v3648_v60 = vsel %vm1189_vm12, %v6987_v22, %v3563_v36  ;;  %v8203_v22 = vld [vmem:[#allocation99_spill] sm:$0xff] }
 0x644   :  { %v3726_v56 = vmul.f32 %v3688_v25, %v8200_v61  ;;  %v3687_v41 = vsel %vm3658_vm14, %v3648_v60, %v3411_v13  ;;  %v3005_v12 = vadd.f32 %v8204_v49, %v8203_v22  ;;  %v8205_v13 = vld [vmem:[#allocation100_spill] sm:$0xff]  ;;  %v2977_v25 = vadd.f32 %v8210_v59, %v8209_v58  ;;  %v8211_v61 = vld [vmem:[#allocation42_spill] sm:$0xff] }
 0x645   :  { %v3725_v5 = vmul.f32 %v3687_v41, %v8202_v63  ;;  %v3776_v50 = vpop.permute.xlu0 %3775  ;;  %v3004_v40 = vadd.f32 %v8206_v15, %v8205_v13 }
 0x646   :  { %v3888_v18 = vsel %vm1189_vm12, %v3469_v47, %v3776_v50  ;;  %3831 = vrot.lane.b32.xlu0 %v3726_v56, %s4618_s16  ;;  %v3774_v4 = vpop.permute.xlu1 %3773  ;;  %v3157_v28 = vadd.f32 %v8207_v30, %v3005_v12  ;;  %v8212_v56 = vld [vmem:[#allocation108_spill] sm:$0xff]  ;;  %v8216_v12 = vld [vmem:[#allocation157_spill] sm:$0xff]  ;;  %v8217_v30 = vld [vmem:[#allocation71_spill] sm:$0xff] }
 0x647   :  { %3926 = vst [vmem:[#allocation2 + $0x8] sm:$0xff] %v3888_v18  ;;  %v3887_v38 = vsel %vm1189_vm12, %v3468_v32, %v3774_v4  ;;  %3829 = vrot.lane.b32.xlu1 %v3725_v5, %s4618_s16  ;;  %v3156_v43 = vadd.f32 %v8208_v53, %v3004_v40  ;;  %v2976_v41 = vadd.f32 %v8212_v56, %v8211_v61  ;;  %v8213_v32 = vld [vmem:[#allocation144_spill] sm:$0xff]  ;;  %v8214_v5 = vld [vmem:[#allocation143_spill] sm:$0xff] }
 0x648   :  { %3925 = vst [vmem:[#allocation2] sm:$0xff] %v3887_v38  ;;  %v3129_v63 = vadd.f32 %v8213_v32, %v2977_v25  ;;  %v8215_v4 = vld [vmem:[#allocation156_spill] sm:$0xff]  ;;  %v8223_v61 = vld [vmem:[#allocation135_spill] sm:$0xff] }
 0x649   :  { %v3265_v52 = vpop.permute.xlu0 %3264  ;;  %v3128_v50 = vadd.f32 %v8214_v5, %v2976_v41  ;;  %v8218_v53 = vld [vmem:[#allocation160_spill] sm:$0xff] }
 0x64a   :  { %v3263_v23 = vpop.permute.xlu1 %3262  ;;  %v3347_v8 = vmul.f32 %v3265_v52, %v3157_v28  ;;  %v3319_v38 = vmul.f32 %v8215_v4, %v3129_v63  ;;  %v8224_v32 = vld [vmem:[#allocation60_spill] sm:$0xff] }
 0x64b   :  { %v3346_v55 = vmul.f32 %v3263_v23, %v3156_v43  ;;  %v3318_v13 = vmul.f32 %v8216_v12, %v3128_v50  ;;  %v8225_v50 = vld [vmem:[#allocation58_spill] sm:$0xff]  ;;  %v8227_v12 = vld [vmem:[#allocation111_spill] sm:$0xff] }
 0x64c   :  { %v3471_v52 = vadd.f32 %v6887_v3, %v3319_v38  ;;  %v8220_v3 = vld [vmem:[#allocation102_spill] sm:$0xff] }
 0x64d   :  { %v3417_v36 = vpop.permute.xlu0 %3416  ;;  %v3470_v43 = vadd.f32 %v8218_v53, %v3318_v13  ;;  %v8230_v53 = vld [vmem:[#allocation146_spill] sm:$0xff] }
 0x64e   :  { %v7421_v60 = vadd.f32 %v3417_v36, %v3347_v8  ;;  %v3415_v47 = vpop.permute.xlu1 %3414  ;;  %v8219_v8 = vld [vmem:[#allocation69_spill] sm:$0xff] }
 0x64f   :  { %v7425_v34 = vadd.f32 %v3415_v47, %v3346_v55 }
 0x651   :  { %v3569_v18 = vpop.permute.xlu0 %3568 }
 0x652   :  { %v3651_v22 = vsel %vm1189_vm12, %v7029_v29, %v3569_v18  ;;  %v3567_v49 = vpop.permute.xlu1 %3566 }
 0x653   :  { %v3690_v15 = vsel %vm3658_vm14, %v3651_v22, %v3417_v36  ;;  %v3650_v40 = vsel %vm1189_vm12, %v7035_v48, %v3567_v49  ;;  %v8221_v48 = vld [vmem:[#allocation136_spill] sm:$0xff] }
 0x654   :  { %v3728_v28 = vmul.f32 %v3690_v15, %v8217_v30  ;;  %v3689_v23 = vsel %vm3658_vm14, %v3650_v40, %v3415_v47  ;;  %v3007_v25 = vadd.f32 %v8221_v48, %v8220_v3  ;;  %v8222_v47 = vld [vmem:[#allocation98_spill] sm:$0xff]  ;;  %v8226_v49 = vld [vmem:[#allocation44_spill] sm:$0xff] }
 0x655   :  { %v3727_v55 = vmul.f32 %v3689_v23, %v8219_v8  ;;  %v3780_v58 = vpop.permute.xlu0 %3779  ;;  %v3006_v56 = vadd.f32 %v8223_v61, %v8222_v47  ;;  %v2979_v13 = vadd.f32 %v8227_v12, %v8226_v49  ;;  %v8229_v30 = vld [vmem:[#allocation110_spill] sm:$0xff]  ;;  %v8231_v8 = vld [vmem:[#allocation145_spill] sm:$0xff] }
 0x656   :  { %v3890_v29 = vsel %vm1189_vm12, %v3471_v52, %v3780_v58  ;;  %3835 = vrot.lane.b32.xlu0 %v3728_v28, %s4618_s16  ;;  %v3778_v59 = vpop.permute.xlu1 %3777  ;;  %v3159_v63 = vadd.f32 %v8224_v32, %v3007_v25  ;;  %v8228_v52 = vld [vmem:[#allocation46_spill] sm:$0xff]  ;;  %v8235_v32 = vld [vmem:[#allocation77_spill] sm:$0xff] }
 0x657   :  { %3928 = vst [vmem:[#allocation2 + $0x18] sm:$0xff] %v3890_v29  ;;  %v3889_v36 = vsel %vm1189_vm12, %v3470_v43, %v3778_v59  ;;  %3833 = vrot.lane.b32.xlu1 %v3727_v55, %s4618_s16  ;;  %v3158_v18 = vadd.f32 %v8225_v50, %v3006_v56  ;;  %v2978_v28 = vadd.f32 %v8229_v30, %v8228_v52  ;;  %v8232_v29 = vld [vmem:[#allocation161_spill] sm:$0xff]  ;;  %v8233_v48 = vld [vmem:[#allocation162_spill] sm:$0xff]  ;;  %v8234_v56 = vld [vmem:[#allocation164_spill] sm:$0xff] }
 0x658   :  { %3927 = vst [vmem:[#allocation2 + $0x10] sm:$0xff] %v3889_v36  ;;  %v3131_v43 = vadd.f32 %v8230_v53, %v2979_v13  ;;  %v8236_v50 = vld [vmem:[#allocation166_spill] sm:$0xff]  ;;  %v8241_v30 = vld [vmem:[#allocation137_spill] sm:$0xff] }
 0x659   :  { %v3269_v41 = vpop.permute.xlu0 %3268  ;;  %v3130_v55 = vadd.f32 %v8231_v8, %v2978_v28  ;;  %v8239_v13 = vld [vmem:[#allocation138_spill] sm:$0xff] }
 0x65a   :  { %v3267_v5 = vpop.permute.xlu1 %3266  ;;  %v3349_v4 = vmul.f32 %v3269_v41, %v3159_v63  ;;  %v3321_v59 = vmul.f32 %v8232_v29, %v3131_v43  ;;  %v8242_v43 = vld [vmem:[#allocation67_spill] sm:$0xff] }
 0x65b   :  { %v3348_v38 = vmul.f32 %v3267_v5, %v3158_v18  ;;  %v3320_v25 = vmul.f32 %v8233_v48, %v3130_v55 }
 0x65c   :  { %v3473_v41 = vadd.f32 %v8234_v56, %v3321_v59 }
 0x65d   :  { %v3421_v22 = vpop.permute.xlu0 %3420  ;;  %v3472_v18 = vadd.f32 %v8236_v50, %v3320_v25  ;;  %v8245_v50 = vld [vmem:[#allocation140_spill] sm:$0xff] }
 0x65e   :  { %v7453_v15 = vadd.f32 %v3421_v22, %v3349_v4  ;;  %v3419_v40 = vpop.permute.xlu1 %3418  ;;  %v8237_v4 = vld [vmem:[#allocation75_spill] sm:$0xff] }
 0x65f   :  { %v7457_v23 = vadd.f32 %v3419_v40, %v3348_v38 }
 0x661   :  { %v3573_v58 = vpop.permute.xlu0 %3572 }
 0x662   :  { %v3653_v36 = vsel %vm1189_vm12, %v7079_v10, %v3573_v58  ;;  %v3571_v3 = vpop.permute.xlu1 %3570  ;;  %v8243_v58 = vld [vmem:[#allocation63_spill] sm:$0xff] }
 0x663   :  { %v3692_v47 = vsel %vm3658_vm14, %v3653_v36, %v3421_v22  ;;  %v3652_v61 = vsel %vm1189_vm12, %v7085_v6, %v3571_v3  ;;  %v8238_v6 = vld [vmem:[#allocation103_spill] sm:$0xff] }
 0x664   :  { %v3730_v63 = vmul.f32 %v3692_v47, %v8235_v32  ;;  %v3691_v5 = vsel %vm3658_vm14, %v3652_v61, %v3419_v40  ;;  %v3009_v52 = vadd.f32 %v8239_v13, %v8238_v6  ;;  %v8240_v40 = vld [vmem:[#allocation101_spill] sm:$0xff] }
 0x665   :  { %v3729_v38 = vmul.f32 %v3691_v5, %v8237_v4  ;;  %v3784_v49 = vpop.permute.xlu0 %3783  ;;  %v3008_v28 = vadd.f32 %v8241_v30, %v8240_v40  ;;  %v8244_v5 = vld [vmem:[#allocation105_spill] sm:$0xff]  ;;  %v8246_v4 = vld [vmem:[#allocation83_spill] sm:$0xff] }
 0x666   :  { %v3892_v10 = vsel %vm1189_vm12, %v3473_v41, %v3784_v49  ;;  %3839 = vrot.lane.b32.xlu0 %v3730_v63, %s4618_s16  ;;  %v3782_v12 = vpop.permute.xlu1 %3781  ;;  %v3161_v8 = vadd.f32 %v8242_v43, %v3009_v52  ;;  %v8249_v6 = vld [vmem:[#allocation81_spill] sm:$0xff] }
 0x667   :  { %3930 = vst [vmem:[#allocation2 + $0x28] sm:$0xff] %v3892_v10  ;;  %v3891_v22 = vsel %vm1189_vm12, %v3472_v18, %v3782_v12  ;;  %3837 = vrot.lane.b32.xlu1 %v3729_v38, %s4618_s16  ;;  %v3160_v29 = vadd.f32 %v8243_v58, %v3008_v28  ;;  %v3011_v18 = vadd.f32 %v8245_v50, %v8244_v5  ;;  %v8247_v10 = vld [vmem:[#allocation104_spill] sm:$0xff]  ;;  %v8248_v12 = vld [vmem:[#allocation139_spill] sm:$0xff]  ;;  %v8253_v58 = vld [vmem:[#allocation113_spill] sm:$0xff] }
 0x668   :  { %3929 = vst [vmem:[#allocation2 + $0x20] sm:$0xff] %v3891_v22  ;;  %v3010_v22 = vadd.f32 %v8248_v12, %v8247_v10  ;;  %v8251_v28 = vld [vmem:[#allocation76_spill] sm:$0xff] }
 0x669   :  { %v3273_v53 = vpop.permute.xlu0 %3272 }
 0x66a   :  { %v3271_v55 = vpop.permute.xlu1 %3270  ;;  %v3351_v59 = vmul.f32 %v3273_v53, %v3161_v8 }
 0x66b   :  { %v3350_v36 = vmul.f32 %v3271_v55, %v3160_v29  ;;  %v8252_v55 = vld [vmem:[#allocation48_spill] sm:$0xff] }
 0x66c   :  { %v2981_v29 = vadd.f32 %v8253_v58, %v8252_v55  ;;  %v8265_v55 = vld [vmem:[#allocation90_spill] sm:$0xff] }
 0x66d   :  { %v3425_v3 = vpop.permute.xlu0 %3424 }
 0x66e   :  { %v7483_v48 = vadd.f32 %v3425_v3, %v3351_v59  ;;  %v3423_v25 = vpop.permute.xlu1 %3422 }
 0x66f   :  { %v7485_v47 = vadd.f32 %v3423_v25, %v3350_v36 }
 0x671   :  { %v3577_v61 = vpop.permute.xlu0 %3576 }
 0x672   :  { %v3655_v56 = vsel %vm1189_vm12, %v7129_v33, %v3577_v61  ;;  %v3575_v41 = vpop.permute.xlu1 %3574  ;;  %v8250_v33 = vld [vmem:[#allocation78_spill] sm:$0xff] }
 0x673   :  { %v3694_v32 = vsel %vm3658_vm14, %v3655_v56, %v3425_v3  ;;  %v3654_v63 = vsel %vm1189_vm12, %v7135_v9, %v3575_v41  ;;  %v3163_v40 = vadd.f32 %v8250_v33, %v3011_v18  ;;  %v3162_v9 = vadd.f32 %v8251_v28, %v3010_v22  ;;  %v8254_v3 = vld [vmem:[#allocation52_spill] sm:$0xff]  ;;  %v8258_v18 = vld [vmem:[#allocation74_spill] sm:$0xff] }
 0x674   :  { %v3732_v38 = vmul.f32 %v3694_v32, %v8246_v4  ;;  %v3693_v49 = vsel %vm3658_vm14, %v3654_v63, %v3423_v25  ;;  %v8255_v25 = vld [vmem:[#allocation112_spill] sm:$0xff]  ;;  %v8257_v63 = vld [vmem:[#allocation147_spill] sm:$0xff] }
 0x675   :  { %v3731_v13 = vmul.f32 %v3693_v49, %v8249_v6  ;;  %v3277_v52 = vpop.permute.xlu0 %3276  ;;  %v2980_v61 = vadd.f32 %v8255_v25, %v8254_v3  ;;  %v8256_v41 = vld [vmem:[#allocation148_spill] sm:$0xff]  ;;  %v8259_v4 = vld [vmem:[#allocation115_spill] sm:$0xff] }
 0x676   :  { %3843 = vrot.lane.b32.xlu0 %v3732_v38, %s4618_s16  ;;  %v3275_v30 = vpop.permute.xlu1 %3274  ;;  %v3353_v53 = vmul.f32 %v3277_v52, %v3163_v40  ;;  %v3133_v32 = vadd.f32 %v8256_v41, %v2981_v29  ;;  %v2983_v38 = vadd.f32 %v8259_v4, %v8258_v18  ;;  %v8260_v49 = vld [vmem:[#allocation167_spill] sm:$0xff]  ;;  %v8261_v6 = vld [vmem:[#allocation68_spill] sm:$0xff] }
 0x677   :  { %3841 = vrot.lane.b32.xlu1 %v3731_v13, %s4618_s16  ;;  %v3352_v43 = vmul.f32 %v3275_v30, %v3162_v9  ;;  %v3132_v5 = vadd.f32 %v8257_v63, %v2980_v61  ;;  %v8262_v13 = vld [vmem:[#allocation114_spill] sm:$0xff]  ;;  %v8263_v33 = vld [vmem:[#allocation168_spill] sm:$0xff]  ;;  %v8268_v63 = vld [vmem:[#allocation65_spill] sm:$0xff] }
 0x678   :  { %v3323_v10 = vmul.f32 %v8260_v49, %v3133_v32  ;;  %v2982_v52 = vadd.f32 %v8262_v13, %v8261_v6  ;;  %v8264_v9 = vld [vmem:[#allocation150_spill] sm:$0xff]  ;;  %v8271_v4 = vld [vmem:[#allocation64_spill] sm:$0xff]  ;;  %v8275_v13 = vld [vmem:[#allocation151_spill] sm:$0xff] }
 0x679   :  { %v3429_v8 = vpop.permute.xlu0 %3428  ;;  %v3322_v40 = vmul.f32 %v8263_v33, %v3132_v5  ;;  %v8267_v61 = vld [vmem:[#allocation86_spill] sm:$0xff]  ;;  %v8273_v49 = vld [vmem:[#allocation172_spill] sm:$0xff] }
 0x67a   :  { %v7505_v59 = vadd.f32 %v3429_v8, %v3353_v53  ;;  %v3427_v36 = vpop.permute.xlu1 %3426  ;;  %v3135_v53 = vadd.f32 %v8264_v9, %v2983_v38  ;;  %v8272_v38 = vld [vmem:[#allocation116_spill] sm:$0xff] }
 0x67b   :  { %v7509_v56 = vadd.f32 %v3427_v36, %v3352_v43  ;;  %v3475_v43 = vadd.f32 %v6951_v19, %v3323_v10  ;;  %v3474_v25 = vadd.f32 %v6957_v14, %v3322_v40 }
 0x67d   :  { %v3581_v50 = vpop.permute.xlu0 %3580 }
 0x67e   :  { %v3657_v12 = vsel %vm1189_vm12, %v7163_v0, %v3581_v50  ;;  %v3579_v22 = vpop.permute.xlu1 %3578  ;;  %v8266_v0 = vld [vmem:[#allocation149_spill] sm:$0xff]  ;;  %v8270_v50 = vld [vmem:[#allocation171_spill] sm:$0xff] }
 0x67f   :  { %v3696_v30 = vsel %vm3658_vm14, %v3657_v12, %v3429_v8  ;;  %v3656_v28 = vsel %vm1189_vm12, %v7169_v16, %v3579_v22  ;;  %v3134_v3 = vadd.f32 %v8266_v0, %v2982_v52  ;;  %v8269_v8 = vld [vmem:[#allocation117_spill] sm:$0xff]  ;;  %v3325_v16 = vmul.f32 %v8270_v50, %v3135_v53  ;;  %v8274_v12 = vld [vmem:[#allocation152_spill] sm:$0xff]  ;;  %v8280_v0 = vld [vmem:[#allocation118_spill] sm:$0xff] }
 0x680   :  { %v3734_v58 = vmul.f32 %v3696_v30, %v8265_v55  ;;  %v3695_v29 = vsel %vm3658_vm14, %v3656_v28, %v3427_v36  ;;  %v2985_v5 = vadd.f32 %v8269_v8, %v8268_v63  ;;  %v2984_v36 = vadd.f32 %v8272_v38, %v8271_v4  ;;  %v8276_v30 = vld [vmem:[#allocation85_spill] sm:$0xff]  ;;  %v8277_v28 = vld [vmem:[#allocation119_spill] sm:$0xff] }
 0x681   :  { %v3733_v41 = vmul.f32 %v3695_v29, %v8267_v61  ;;  %v3788_v32 = vpop.permute.xlu0 %3787  ;;  %v3324_v10 = vmul.f32 %v8273_v49, %v3134_v3  ;;  %v3477_v6 = vadd.f32 %v6983_v11, %v3325_v16  ;;  %v2987_v9 = vadd.f32 %v8277_v28, %v8276_v30  ;;  %v8278_v53 = vld [vmem:[#allocation173_spill] sm:$0xff]  ;;  %v8279_v29 = vld [vmem:[#allocation79_spill] sm:$0xff]  ;;  %v8284_v16 = vld [vmem:[#allocation80_spill] sm:$0xff] }
 0x682   :  { %v3894_v18 = vsel %vm1189_vm12, %v3475_v43, %v3788_v32  ;;  %3847 = vrot.lane.b32.xlu0 %v3734_v58, %s4618_s16  ;;  %v3786_v19 = vpop.permute.xlu1 %3785  ;;  %v3137_v22 = vadd.f32 %v8274_v12, %v2985_v5  ;;  %v3136_v52 = vadd.f32 %v8275_v13, %v2984_v36  ;;  %v2986_v3 = vadd.f32 %v8280_v0, %v8279_v29  ;;  %v8283_v63 = vld [vmem:[#allocation153_spill] sm:$0xff]  ;;  %v8286_v4 = vld [vmem:[#allocation7_spill] sm:$0xff]  ;;  %v8290_v13 = vld [vmem:[#allocation8_spill] sm:$0xff] }
 0x683   :  { %3932 = vst [vmem:[#allocation2 + $0x38] sm:$0xff] %v3894_v18  ;;  %v3893_v14 = vsel %vm1189_vm12, %v3474_v25, %v3786_v19  ;;  %3845 = vrot.lane.b32.xlu1 %v3733_v41, %s4618_s16  ;;  %v3476_v33 = vadd.f32 %v6989_v62, %v3324_v10  ;;  %v8281_v25 = vld [vmem:[#allocation174_spill] sm:$0xff]  ;;  %v8285_v18 = vld [vmem:[#allocation121_spill] sm:$0xff] }
 0x684   :  { %3931 = vst [vmem:[#allocation2 + $0x30] sm:$0xff] %v3893_v14  ;;  %v3327_v43 = vmul.f32 %v8278_v53, %v3137_v22  ;;  %v3326_v61 = vmul.f32 %v8281_v25, %v3136_v52  ;;  %v8282_v41 = vld [vmem:[#allocation154_spill] sm:$0xff]  ;;  %v3138_v8 = vadd.f32 %v8283_v63, %v2986_v3  ;;  %v2989_v19 = vadd.f32 %v8285_v18, %v8284_v16  ;;  %v8287_v10 = vld [vmem:[#allocation73_spill] sm:$0xff]  ;;  %v8288_v14 = vld [vmem:[#allocation120_spill] sm:$0xff] }
 0x685   :  { %v3792_v40 = vpop.permute.xlu0 %3791  ;;  %v3139_v32 = vadd.f32 %v8282_v41, %v2987_v9  ;;  %v2988_v12 = vadd.f32 %v8288_v14, %v8287_v10  ;;  %v8289_v22 = vld [vmem:[#allocation5_spill] sm:$0xff]  ;;  %v8292_v9 = vld [vmem:[#allocation92_spill] sm:$0xff]  ;;  %v8293_v53 = vld [vmem:[#allocation123_spill] sm:$0xff] }
 0x686   :  { %v3896_v55 = vsel %vm1189_vm12, %v3477_v6, %v3792_v40  ;;  %v3790_v58 = vpop.permute.xlu1 %3789  ;;  %v3479_v62 = vadd.f32 %v7020_v45, %v3327_v43  ;;  %v3478_v5 = vadd.f32 %v7023_v24, %v3326_v61  ;;  %v3328_v6 = vmul.f32 %v8289_v22, %v3138_v8  ;;  %v8295_v3 = vld [vmem:[#allocation93_spill] sm:$0xff]  ;;  %v8296_v25 = vld [vmem:[#allocation122_spill] sm:$0xff]  ;;  %v8299_v63 = vld [vmem:[#allocation12_spill] sm:$0xff] }
 0x687   :  { %3934 = vst [vmem:[#allocation2 + $0x48] sm:$0xff] %v3896_v55  ;;  %v3895_v11 = vsel %vm1189_vm12, %v3476_v33, %v3790_v58  ;;  %v3329_v38 = vmul.f32 %v8286_v4, %v3139_v32  ;;  %v3141_v52 = vadd.f32 %v8290_v13, %v2989_v19  ;;  %v8291_v33 = vld [vmem:[#allocation61_spill] sm:$0xff]  ;;  %v2991_v43 = vadd.f32 %v8293_v53, %v8292_v9  ;;  %v8294_v55 = vld [vmem:[#allocation11_spill] sm:$0xff]  ;;  %v8298_v32 = vld [vmem:[#allocation6_spill] sm:$0xff] }
 0x688   :  { %3933 = vst [vmem:[#allocation2 + $0x40] sm:$0xff] %v3895_v11  ;;  %v3140_v40 = vadd.f32 %v8291_v33, %v2988_v12  ;;  %v3480_v30 = vadd.f32 %v7061_v21, %v3328_v6  ;;  %v2990_v61 = vadd.f32 %v8296_v25, %v8295_v3  ;;  %v8297_v11 = vld [vmem:[#allocation9_spill] sm:$0xff]  ;;  %v8300_v16 = vld [vmem:[#allocation15_spill] sm:$0xff] }
 0x689   :  { %v3796_v50 = vpop.permute.xlu0 %3795  ;;  %v3481_v24 = vadd.f32 %v7057_v42, %v3329_v38  ;;  %v3331_v58 = vmul.f32 %v8294_v55, %v3141_v52  ;;  %v8301_v38 = vld [vmem:[#allocation175_spill] sm:$0xff] }
 0x68a   :  { %v3898_v36 = vsel %vm1189_vm12, %v3479_v62, %v3796_v50  ;;  %v3794_v49 = vpop.permute.xlu1 %3793  ;;  %v3330_v41 = vmul.f32 %v8297_v11, %v3140_v40  ;;  %v3143_v62 = vadd.f32 %v8298_v32, %v2991_v43  ;;  %v3142_v8 = vadd.f32 %v8299_v63, %v2990_v61 }
 0x68b   :  { %3936 = vst [vmem:[#allocation2 + $0x58] sm:$0xff] %v3898_v36  ;;  %v3897_v45 = vsel %vm1189_vm12, %v3478_v5, %v3794_v49  ;;  %v3483_v21 = vadd.f32 %v7093_v46, %v3331_v58 }
 0x68c   :  { %3935 = vst [vmem:[#allocation2 + $0x50] sm:$0xff] %v3897_v45  ;;  %v3482_v5 = vadd.f32 %v7095_v54, %v3330_v41  ;;  %v3333_v18 = vmul.f32 %v8300_v16, %v3143_v62  ;;  %v3332_v36 = vmul.f32 %v8301_v38, %v3142_v8 }
 0x68d   :  { %v3800_v28 = vpop.permute.xlu0 %3799 }
 0x68e   :  { %v3900_v29 = vsel %vm1189_vm12, %v3481_v24, %v3800_v28  ;;  %v3798_v0 = vpop.permute.xlu1 %3797  ;;  %v3485_v10 = vadd.f32 %v7131_v51, %v3333_v18  ;;  %v3484_v46 = vadd.f32 %v7137_v39, %v3332_v36 }
 0x68f   :  { %3938 = vst [vmem:[#allocation2 + $0x68] sm:$0xff] %v3900_v29  ;;  %v3899_v42 = vsel %vm1189_vm12, %v3480_v30, %v3798_v0 }
 0x690   :  { %3937 = vst [vmem:[#allocation2 + $0x60] sm:$0xff] %v3899_v42 }
 0x691   :  { %v3804_v50 = vpop.permute.xlu0 %3803 }
 0x692   :  { %v3902_v19 = vsel %vm1189_vm12, %v3483_v21, %v3804_v50  ;;  %v3802_v4 = vpop.permute.xlu1 %3801 }
 0x693   :  { %3940 = vst [vmem:[#allocation2 + $0x78] sm:$0xff] %v3902_v19  ;;  %v3901_v49 = vsel %vm1189_vm12, %v3482_v5, %v3802_v4 }
 0x694   :  { %3939 = vst [vmem:[#allocation2 + $0x70] sm:$0xff] %v3901_v49 }
 0x695   :  { %v3808_v14 = vpop.permute.xlu0 %3807 }
 0x696   :  { %v3904_v12 = vsel %vm1189_vm12, %v3485_v10, %v3808_v14  ;;  %v3806_v54 = vpop.permute.xlu1 %3805 }
 0x697   :  { %3942 = vst [vmem:[#allocation2 + $0x88] sm:$0xff] %v3904_v12  ;;  %v3903_v22 = vsel %vm1189_vm12, %v3484_v46, %v3806_v54 }
 0x698   :  { %3941 = vst [vmem:[#allocation2 + $0x80] sm:$0xff] %v3903_v22 }
 0x699   :  { %v3812_v6 = vpop.permute.xlu0 %3811 }
 0x69a   :  { %v3906_v45 = vsel %vm1189_vm12, %v7172_v44, %v3812_v6  ;;  %v3810_v13 = vpop.permute.xlu1 %3809 }
 0x69b   :  { %3944 = vst [vmem:[#allocation2 + $0x98] sm:$0xff] %v3906_v45  ;;  %v3905_v51 = vsel %vm1189_vm12, %v7177_v20, %v3810_v13 }
 0x69c   :  { %3943 = vst [vmem:[#allocation2 + $0x90] sm:$0xff] %v3905_v51 }
 0x69d   :  { %v3816_v52 = vpop.permute.xlu0 %3815 }
 0x69e   :  { %v3908_v39 = vsel %vm1189_vm12, %v7224_v37, %v3816_v52  ;;  %v3814_v24 = vpop.permute.xlu1 %3813 }
 0x69f   :  { %3946 = vst [vmem:[#allocation2 + $0xa8] sm:$0xff] %v3908_v39  ;;  %v3907_v33 = vsel %vm1189_vm12, %v7234_v26, %v3814_v24 }
 0x6a0   :  { %3945 = vst [vmem:[#allocation2 + $0xa0] sm:$0xff] %v3907_v33 }
 0x6a1   :  { %v3820_v40 = vpop.permute.xlu0 %3819 }
 0x6a2   :  { %v3910_v44 = vsel %vm1189_vm12, %v7279_v2, %v3820_v40  ;;  %v3818_v30 = vpop.permute.xlu1 %3817 }
 0x6a3   :  { %3948 = vst [vmem:[#allocation2 + $0xb8] sm:$0xff] %v3910_v44  ;;  %v3909_v20 = vsel %vm1189_vm12, %v7286_v35, %v3818_v30 }
 0x6a4   :  { %3947 = vst [vmem:[#allocation2 + $0xb0] sm:$0xff] %v3909_v20 }
 0x6a5   :  { %v3824_v28 = vpop.permute.xlu0 %3823 }
 0x6a6   :  { %v3912_v37 = vsel %vm1189_vm12, %v7329_v7, %v3824_v28  ;;  %v3822_v9 = vpop.permute.xlu1 %3821 }
 0x6a7   :  { %3950 = vst [vmem:[#allocation2 + $0xc8] sm:$0xff] %v3912_v37  ;;  %v3911_v26 = vsel %vm1189_vm12, %v7335_v57, %v3822_v9 }
 0x6a8   :  { %3949 = vst [vmem:[#allocation2 + $0xc0] sm:$0xff] %v3911_v26 }
 0x6ac   :  { %v3828_v53 = vpop.permute.xlu0 %3827 }
 0x6ad   :  { %v3914_v2 = vsel %vm1189_vm12, %v7365_v1, %v3828_v53  ;;  %v3826_v43 = vpop.permute.xlu1 %3825 }
 0x6ae   :  { %3952 = vst [vmem:[#allocation2 + $0xd8] sm:$0xff] %v3914_v2  ;;  %v3913_v35 = vsel %vm1189_vm12, %v7367_v31, %v3826_v43 }
 0x6af   :  { %3951 = vst [vmem:[#allocation2 + $0xd0] sm:$0xff] %v3913_v35 }
 0x6b8   :  { %v3832_v55 = vpop.permute.xlu0 %3831 }
 0x6b9   :  { %v3916_v7 = vsel %vm1189_vm12, %v7389_v17, %v3832_v55  ;;  %v3830_v58 = vpop.permute.xlu1 %3829 }
 0x6ba   :  { %3954 = vst [vmem:[#allocation2 + $0xe8] sm:$0xff] %v3916_v7  ;;  %v3915_v57 = vsel %vm1189_vm12, %v7393_v27, %v3830_v58 }
 0x6bb   :  { %3953 = vst [vmem:[#allocation2 + $0xe0] sm:$0xff] %v3915_v57 }
 0x6c8   :  { %v3836_v29 = vpop.permute.xlu0 %3835 }
 0x6c9   :  { %v3918_v1 = vsel %vm1189_vm12, %v7421_v60, %v3836_v29  ;;  %v3834_v0 = vpop.permute.xlu1 %3833 }
 0x6ca   :  { %3956 = vst [vmem:[#allocation2 + $0xf8] sm:$0xff] %v3918_v1  ;;  %v3917_v31 = vsel %vm1189_vm12, %v7425_v34, %v3834_v0 }
 0x6cb   :  { %3955 = vst [vmem:[#allocation2 + $0xf0] sm:$0xff] %v3917_v31 }
 0x6d8   :  { %v3840_v3 = vpop.permute.xlu0 %3839 }
 0x6d9   :  { %v3920_v17 = vsel %vm1189_vm12, %v7453_v15, %v3840_v3  ;;  %v3838_v25 = vpop.permute.xlu1 %3837 }
 0x6da   :  { %3958 = vst [vmem:[#allocation2 + $0x108] sm:$0xff] %v3920_v17  ;;  %v3919_v27 = vsel %vm1189_vm12, %v7457_v23, %v3838_v25 }
 0x6db   :  { %3957 = vst [vmem:[#allocation2 + $0x100] sm:$0xff] %v3919_v27 }
 0x6e8   :  { %v3844_v61 = vpop.permute.xlu0 %3843 }
 0x6e9   :  { %v3922_v60 = vsel %vm1189_vm12, %v7483_v48, %v3844_v61  ;;  %v3842_v11 = vpop.permute.xlu1 %3841 }
 0x6ea   :  { %3960 = vst [vmem:[#allocation2 + $0x118] sm:$0xff] %v3922_v60  ;;  %v3921_v34 = vsel %vm1189_vm12, %v7485_v47, %v3842_v11 }
 0x6eb   :  { %3959 = vst [vmem:[#allocation2 + $0x110] sm:$0xff] %v3921_v34 }
 0x6f4   :  { %v3848_v41 = vpop.permute.xlu0 %3847 }
 0x6f5   :  { %v3924_v15 = vsel %vm1189_vm12, %v7505_v59, %v3848_v41  ;;  %v3846_v42 = vpop.permute.xlu1 %3845 }
 0x6f6   :  { %3962 = vst [vmem:[#allocation2 + $0x128] sm:$0xff] %v3924_v15  ;;  %v3923_v23 = vsel %vm1189_vm12, %v7509_v56, %v3846_v42 }
 0x6f7   :  { %3961 = vst [vmem:[#allocation2 + $0x120] sm:$0xff] %v3923_v23 }
 0x6f8   :  { %4603 = shalt.err (!%p4600_p4)
}
 0x6f9   :  { %s4604_s11 = scalar_lea.hbm %s7647_s6, 4864 }
 0x6fa   :  { %p4605_p5 = scmp.ne.s32.totalorder %s7647_s6, %s4604_s11  ;;  %p4608_p6 = scmp.lt.u32.totalorder %s4604_s11, %s7647_s6 }
 0x6fc   :  { %p4610_p7 = pnand %p4608_p6, %p4605_p5 }
 0x6fe   :  { %4613 = shalt.err (!%p4610_p7)
}
 0x6ff   :  { %s4621_s16 = smov 128   ;;  %s4622_s0 = smov 8  }
 0x700   :  { %3974 = dma.vmem_to_hbm [thread:$0]  %s3969_s28, 4864, %s7647_s6, [#allocation3], %s4621_s16, %s4621_s16, %s4622_s0  }
 0x701   :  { %4614 = dma.done.wait [#allocation3], 4864  }
 0x702   :  { %4615 = vsyncadd [#allocation3], 4294962432 }
 0x703   :  { %3978 = vsyncpa [#allocation3], 1 }

</bundles_post_ra>
